<compile_context>
chip_gen: v6e
topology: v6e:2x2x1
jax: 0.10.0
libtpu: 0.0.40
codegen_flags: <defaults>
</compile_context>

<pallas_src>
import functools

import numpy as np
import jax
import jax.numpy as jnp
from jax import lax
from jax.experimental import pallas as pl
from jax.experimental.pallas import tpu as pltpu


# ----------------------------------------------------------------------------
# Pallas kernel: the whole net as 6 chained (matmul + bias [+ ReLU]) stages,
# fully VMEM-resident.
# ----------------------------------------------------------------------------
def _fused_net_kernel(x_ref,
                      t1_ref, b1_ref, t2_ref, b2_ref, t3_ref, b3_ref,
                      t4_ref, b4_ref, t5_ref, b5_ref, t6_ref, b6_ref,
                      o_ref, *, limit_y_t):
    def stage(a, t_ref, b_ref, relu):
        y = jnp.dot(a, t_ref[...], preferred_element_type=jnp.float32)  # MXU
        y = y + b_ref[...]                       # (1, N) broadcasts over batch
        return jnp.maximum(y, 0.0) if relu else y

    a = x_ref[...]                               # (B, Cin0*L0), f32
    a = stage(a, t1_ref, b1_ref, True)           # conv1    + ReLU
    a = stage(a, t2_ref, b2_ref, True)           # conv2    + ReLU
    a = stage(a, t3_ref, b3_ref, True)           # conv4    + ReLU
    a = stage(a, t4_ref, b4_ref, True)           # conv5    + ReLU
    a = stage(a, t5_ref, b5_ref, True)           # de_conv1 + ReLU
    a = stage(a, t6_ref, b6_ref, False)          # de_conv2
    o_ref[...] = a[:, :limit_y_t].astype(o_ref.dtype)


def net_forward(dense_params, x, *, limit_y_t):
    """x: (B, 1, L) float32 -> (B, limit_y_t) float32 via one pallas_call."""
    B = x.shape[0]
    x2d = x.reshape(B, -1)                       # (B, Cin0*L0); Cin0 == 1

    operands = [x2d]
    for t, b in zip(dense_params["mats"], dense_params["biases"]):
        operands += [t, b]

    vmem_spec = pl.BlockSpec(memory_space=pltpu.MemorySpace.VMEM)
    kernel = functools.partial(_fused_net_kernel, limit_y_t=limit_y_t)
    return pl.pallas_call(
        kernel,
        out_shape=jax.ShapeDtypeStruct((B, limit_y_t), jnp.float32),
        in_specs=[vmem_spec] * len(operands),
        out_specs=vmem_spec,
    )(*operands)


# ----------------------------------------------------------------------------
# One-time weight folding: conv / conv-transpose -> dense matmul matrices.
# ----------------------------------------------------------------------------
def _conv1d_dense(w, lin, stride, pad):
    """Conv1d weight (Cout, Cin, K) -> dense (Cin*Lin, Cout*Lout)."""
    cout, cin, k = w.shape
    lout = (lin + 2 * pad - k) // stride + 1
    t = np.zeros((cin, lin, cout, lout), dtype=np.float32)
    for lo in range(lout):
        for kk in range(k):
            li = lo * stride + kk - pad
            if 0 <= li < lin:
                t[:, li, :, lo] += w[:, :, kk].T          # (Cin, Cout)
    return t.reshape(cin * lin, cout * lout), lout, cout


def _conv_transpose1d_dense(w, lin, stride, pad):
    """ConvTranspose1d weight (Cin, Cout, K) -> dense (Cin*Lin, Cout*Lout)."""
    cin, cout, k = w.shape
    lout = (lin - 1) * stride - 2 * pad + k               # output_padding = 0
    t = np.zeros((cin, lin, cout, lout), dtype=np.float32)
    for li in range(lin):
        for kk in range(k):
            lo = li * stride - pad + kk
            if 0 <= lo < lout:
                t[:, li, :, lo] += w[:, :, kk]            # (Cin, Cout)
    return t.reshape(cin * lin, cout * lout), lout, cout


def prepare_dense_params(params, lin):
    """Fold all conv weights once (host side) into matmul matrices + bias rows."""
    layers = [
        ("conv1",   _conv1d_dense,           dict(stride=2, pad=2)),
        ("conv2",   _conv1d_dense,           dict(stride=2, pad=2)),
        ("conv4",   _conv1d_dense,           dict(stride=1, pad=2)),
        ("conv5",   _conv1d_dense,           dict(stride=1, pad=2)),
        ("deconv1", _conv_transpose1d_dense, dict(stride=2, pad=2)),
        ("deconv2", _conv_transpose1d_dense, dict(stride=2, pad=2)),
    ]
    mats, biases = [], []
    l = lin
    for name, fold, kw in layers:
        w = np.asarray(params[name + "_w"], dtype=np.float32)
        b = np.asarray(params[name + "_b"], dtype=np.float32)
        t, lout, cout = fold(w, l, **kw)
        mats.append(jnp.asarray(t))
        # (1, Cout*Lout) bias row matching the (co*Lout + lo) flattening.
        biases.append(jnp.asarray(np.repeat(b, lout)[None, :]))
        l = lout
    return {"mats": tuple(mats), "biases": tuple(biases)}, l


# ----------------------------------------------------------------------------
# Parameter init (PyTorch layouts: Conv1d (Cout,Cin,K); ConvTranspose1d (Cin,Cout,K))
# ----------------------------------------------------------------------------
def init_params(key):
    def mk(k, shape, scale=0.1):
        return scale * jax.random.normal(k, shape, dtype=jnp.float32)

    ks = jax.random.split(key, 12)
    return {
        "conv1_w": mk(ks[0], (16, 1, 5)),    "conv1_b": mk(ks[1], (16,)),
        "conv2_w": mk(ks[2], (32, 16, 5)),   "conv2_b": mk(ks[3], (32,)),
        "conv4_w": mk(ks[4], (32, 32, 5)),   "conv4_b": mk(ks[5], (32,)),
        "conv5_w": mk(ks[6], (32, 32, 5)),   "conv5_b": mk(ks[7], (32,)),
        "deconv1_w": mk(ks[8], (32, 16, 5)), "deconv1_b": mk(ks[9], (16,)),
        "deconv2_w": mk(ks[10], (16, 1, 7)), "deconv2_b": mk(ks[11], (1,)),
    }


# ----------------------------------------------------------------------------
# Pure-JAX reference (lax.conv) used only for a numerical cross-check.
# ----------------------------------------------------------------------------
def _reference_forward(params, x, limit_y_t):
    dn = ("NCH", "OIH", "NCH")

    def conv(v, w, b, stride, pad):
        y = lax.conv_general_dilated(v, w, (stride,), [(pad, pad)],
                                     dimension_numbers=dn)
        return y + b[None, :, None]

    def deconv(v, w, b, stride, pad):
        k = w.shape[2]
        w_eq = jnp.flip(jnp.transpose(w, (1, 0, 2)), axis=2)   # (Cout, Cin, K)
        y = lax.conv_general_dilated(v, w_eq, (1,),
                                     [(k - 1 - pad, k - 1 - pad)],
                                     lhs_dilation=(stride,),
                                     dimension_numbers=dn)
        return y + b[None, :, None]

    relu = lambda v: jnp.maximum(v, 0.0)
    x = relu(conv(x, params["conv1_w"], params["conv1_b"], 2, 2))
    x = relu(conv(x, params["conv2_w"], params["conv2_b"], 2, 2))
    x = relu(conv(x, params["conv4_w"], params["conv4_b"], 1, 2))
    x = relu(conv(x, params["conv5_w"], params["conv5_b"], 1, 2))
    x = relu(deconv(x, params["deconv1_w"], params["deconv1_b"], 2, 2))
    x = deconv(x, params["deconv2_w"], params["deconv2_b"], 2, 2)
    x = x.reshape(x.shape[0], -1)
    return x[:, :limit_y_t]


if __name__ == "__main__":
    key = jax.random.PRNGKey(0)
    pkey, xkey = jax.random.split(key)

    B, L = 2, 64
    limit_y_t = 60                       # final flattened length is 63
    params = init_params(pkey)
    dense_params, final_len = prepare_dense_params(params, L)
    assert limit_y_t <= final_len, (limit_y_t, final_len)

    x = jax.random.normal(xkey, (B, 1, L), dtype=jnp.float32)

    fwd = jax.jit(functools.partial(net_forward, limit_y_t=limit_y_t))
    out = fwd(dense_params, x)
    jax.block_until_ready(out)
    assert out.shape == (B, limit_y_t), out.shape

    # Numerical cross-check of the fused Pallas kernel against lax.conv.
    ref = _reference_forward(params, x, limit_y_t)
    max_err = float(jnp.max(jnp.abs(out - ref)))
    assert jnp.allclose(out, ref, atol=1e-3, rtol=1e-3), max_err

    print("KERNEL_OK")
</pallas_src>

<mosaic_0001>
module attributes {stable_mosaic.version = 11 : i64} {
  func.func @_fused_net_kernel(%arg0: memref<2x64xf32, #tpu.memory_space<vmem>>, %arg1: memref<64x512xf32, #tpu.memory_space<vmem>>, %arg2: memref<1x512xf32, #tpu.memory_space<vmem>>, %arg3: memref<512x512xf32, #tpu.memory_space<vmem>>, %arg4: memref<1x512xf32, #tpu.memory_space<vmem>>, %arg5: memref<512x512xf32, #tpu.memory_space<vmem>>, %arg6: memref<1x512xf32, #tpu.memory_space<vmem>>, %arg7: memref<512x512xf32, #tpu.memory_space<vmem>>, %arg8: memref<1x512xf32, #tpu.memory_space<vmem>>, %arg9: memref<512x496xf32, #tpu.memory_space<vmem>>, %arg10: memref<1x496xf32, #tpu.memory_space<vmem>>, %arg11: memref<496x63xf32, #tpu.memory_space<vmem>>, %arg12: memref<1x63xf32, #tpu.memory_space<vmem>>, %arg13: memref<2x60xf32, #tpu.memory_space<vmem>>) attributes {dimension_semantics = [], scalar_prefetch = 0 : i64, scratch_operands = 0 : i64, tpu.core_type = #tpu.core_type<tc>} {
    %c0 = arith.constant 0 : index
    %c0_0 = arith.constant 0 : index
    %0 = vector.load %arg0[%c0, %c0_0] : memref<2x64xf32, #tpu.memory_space<vmem>>, vector<2x64xf32>
    %c0_1 = arith.constant 0 : index
    %c0_2 = arith.constant 0 : index
    %1 = vector.load %arg1[%c0_1, %c0_2] : memref<64x512xf32, #tpu.memory_space<vmem>>, vector<64x512xf32>
    %cst = arith.constant dense<0.000000e+00> : vector<2x512xf32>
    %2 = tpu.matmul %0, %1, %cst {dimension_numbers = #tpu.dot_dimension_numbers<[1], [0], [0], [1], [0, 0, 1, 1], [], []>} : vector<2x64xf32>, vector<64x512xf32>, vector<2x512xf32> -> vector<2x512xf32>
    %c0_3 = arith.constant 0 : index
    %c0_4 = arith.constant 0 : index
    %3 = vector.load %arg2[%c0_3, %c0_4] : memref<1x512xf32, #tpu.memory_space<vmem>>, vector<1x512xf32>
    %4 = vector.broadcast %3 : vector<1x512xf32> to vector<2x512xf32>
    %5 = arith.addf %2, %4 : vector<2x512xf32>
    %cst_5 = arith.constant 0.000000e+00 : f32
    %6 = vector.broadcast %cst_5 : f32 to vector<2x512xf32>
    %7 = arith.maximumf %5, %6 : vector<2x512xf32>
    %c0_6 = arith.constant 0 : index
    %c0_7 = arith.constant 0 : index
    %8 = vector.load %arg3[%c0_6, %c0_7] : memref<512x512xf32, #tpu.memory_space<vmem>>, vector<512x512xf32>
    %cst_8 = arith.constant dense<0.000000e+00> : vector<2x512xf32>
    %9 = tpu.matmul %7, %8, %cst_8 {dimension_numbers = #tpu.dot_dimension_numbers<[1], [0], [0], [1], [0, 0, 1, 1], [], []>} : vector<2x512xf32>, vector<512x512xf32>, vector<2x512xf32> -> vector<2x512xf32>
    %c0_9 = arith.constant 0 : index
    %c0_10 = arith.constant 0 : index
    %10 = vector.load %arg4[%c0_9, %c0_10] : memref<1x512xf32, #tpu.memory_space<vmem>>, vector<1x512xf32>
    %11 = vector.broadcast %10 : vector<1x512xf32> to vector<2x512xf32>
    %12 = arith.addf %9, %11 : vector<2x512xf32>
    %cst_11 = arith.constant 0.000000e+00 : f32
    %13 = vector.broadcast %cst_11 : f32 to vector<2x512xf32>
    %14 = arith.maximumf %12, %13 : vector<2x512xf32>
    %c0_12 = arith.constant 0 : index
    %c0_13 = arith.constant 0 : index
    %15 = vector.load %arg5[%c0_12, %c0_13] : memref<512x512xf32, #tpu.memory_space<vmem>>, vector<512x512xf32>
    %cst_14 = arith.constant dense<0.000000e+00> : vector<2x512xf32>
    %16 = tpu.matmul %14, %15, %cst_14 {dimension_numbers = #tpu.dot_dimension_numbers<[1], [0], [0], [1], [0, 0, 1, 1], [], []>} : vector<2x512xf32>, vector<512x512xf32>, vector<2x512xf32> -> vector<2x512xf32>
    %c0_15 = arith.constant 0 : index
    %c0_16 = arith.constant 0 : index
    %17 = vector.load %arg6[%c0_15, %c0_16] : memref<1x512xf32, #tpu.memory_space<vmem>>, vector<1x512xf32>
    %18 = vector.broadcast %17 : vector<1x512xf32> to vector<2x512xf32>
    %19 = arith.addf %16, %18 : vector<2x512xf32>
    %cst_17 = arith.constant 0.000000e+00 : f32
    %20 = vector.broadcast %cst_17 : f32 to vector<2x512xf32>
    %21 = arith.maximumf %19, %20 : vector<2x512xf32>
    %c0_18 = arith.constant 0 : index
    %c0_19 = arith.constant 0 : index
    %22 = vector.load %arg7[%c0_18, %c0_19] : memref<512x512xf32, #tpu.memory_space<vmem>>, vector<512x512xf32>
    %cst_20 = arith.constant dense<0.000000e+00> : vector<2x512xf32>
    %23 = tpu.matmul %21, %22, %cst_20 {dimension_numbers = #tpu.dot_dimension_numbers<[1], [0], [0], [1], [0, 0, 1, 1], [], []>} : vector<2x512xf32>, vector<512x512xf32>, vector<2x512xf32> -> vector<2x512xf32>
    %c0_21 = arith.constant 0 : index
    %c0_22 = arith.constant 0 : index
    %24 = vector.load %arg8[%c0_21, %c0_22] : memref<1x512xf32, #tpu.memory_space<vmem>>, vector<1x512xf32>
    %25 = vector.broadcast %24 : vector<1x512xf32> to vector<2x512xf32>
    %26 = arith.addf %23, %25 : vector<2x512xf32>
    %cst_23 = arith.constant 0.000000e+00 : f32
    %27 = vector.broadcast %cst_23 : f32 to vector<2x512xf32>
    %28 = arith.maximumf %26, %27 : vector<2x512xf32>
    %c0_24 = arith.constant 0 : index
    %c0_25 = arith.constant 0 : index
    %29 = vector.load %arg9[%c0_24, %c0_25] : memref<512x496xf32, #tpu.memory_space<vmem>>, vector<512x496xf32>
    %cst_26 = arith.constant dense<0.000000e+00> : vector<2x496xf32>
    %30 = tpu.matmul %28, %29, %cst_26 {dimension_numbers = #tpu.dot_dimension_numbers<[1], [0], [0], [1], [0, 0, 1, 1], [], []>} : vector<2x512xf32>, vector<512x496xf32>, vector<2x496xf32> -> vector<2x496xf32>
    %c0_27 = arith.constant 0 : index
    %c0_28 = arith.constant 0 : index
    %31 = vector.load %arg10[%c0_27, %c0_28] : memref<1x496xf32, #tpu.memory_space<vmem>>, vector<1x496xf32>
    %32 = vector.broadcast %31 : vector<1x496xf32> to vector<2x496xf32>
    %33 = arith.addf %30, %32 : vector<2x496xf32>
    %cst_29 = arith.constant 0.000000e+00 : f32
    %34 = vector.broadcast %cst_29 : f32 to vector<2x496xf32>
    %35 = arith.maximumf %33, %34 : vector<2x496xf32>
    %c0_30 = arith.constant 0 : index
    %c0_31 = arith.constant 0 : index
    %36 = vector.load %arg11[%c0_30, %c0_31] : memref<496x63xf32, #tpu.memory_space<vmem>>, vector<496x63xf32>
    %cst_32 = arith.constant dense<0.000000e+00> : vector<2x63xf32>
    %37 = tpu.matmul %35, %36, %cst_32 {dimension_numbers = #tpu.dot_dimension_numbers<[1], [0], [0], [1], [0, 0, 1, 1], [], []>} : vector<2x496xf32>, vector<496x63xf32>, vector<2x63xf32> -> vector<2x63xf32>
    %c0_33 = arith.constant 0 : index
    %c0_34 = arith.constant 0 : index
    %38 = vector.load %arg12[%c0_33, %c0_34] : memref<1x63xf32, #tpu.memory_space<vmem>>, vector<1x63xf32>
    %39 = vector.broadcast %38 : vector<1x63xf32> to vector<2x63xf32>
    %40 = arith.addf %37, %39 : vector<2x63xf32>
    %41 = vector.extract_strided_slice %40 {offsets = [0, 0], sizes = [2, 60], strides = [1, 1]} : vector<2x63xf32> to vector<2x60xf32>
    %c0_35 = arith.constant 0 : index
    %c0_36 = arith.constant 0 : index
    %42 = vector.load %arg13[%c0_35, %c0_36] : memref<2x60xf32, #tpu.memory_space<vmem>>, vector<2x60xf32>
    tpu.vector_store %arg13[%c0_35, %c0_36], %41 {strides = array<i32>} : memref<2x60xf32, #tpu.memory_space<vmem>>, vector<2x60xf32>,
    return
  }
}

</mosaic_0001>

<bundles_post_ra>
// kernel: net_forward.1
= control target key start
LH: loop header
LB: loop body
LE: loop exit
PB: predicated region body
PF: predicated region fallthrough
CT: control target
= control target key end

     0   :  { %18 = vsyncpa [#allocation3], 0  ;;  %s5674_s0 = inlined_call_operand.vmem [shape: f32[2,64], index: 0, kind: input, shape index: {}]   ;;  %s5675_s1 = inlined_call_operand.vmem [shape: f32[64,512], index: 1, kind: input, shape index: {}]   ;;  %s5676_s2 = inlined_call_operand.vmem [shape: f32[1,512], index: 2, kind: input, shape index: {}]   ;;  %s5677_s3 = inlined_call_operand.vmem [shape: f32[512,512], index: 3, kind: input, shape index: {}]   ;;  %s5678_s4 = inlined_call_operand.vmem [shape: f32[1,512], index: 4, kind: input, shape index: {}]   ;;  %s5679_s5 = inlined_call_operand.vmem [shape: f32[512,512], index: 5, kind: input, shape index: {}]   ;;  %s5680_s6 = inlined_call_operand.vmem [shape: f32[1,512], index: 6, kind: input, shape index: {}]   ;;  %s5681_s7 = inlined_call_operand.hbm [shape: f32[512,512], index: 7, kind: input, shape index: {}]   ;;  %s5682_s8 = inlined_call_operand.vmem [shape: f32[1,512], index: 8, kind: input, shape index: {}]   ;;  %s5683_s9 = inlined_call_operand.vmem [shape: f32[512,496], index: 9, kind: input, shape index: {}]   ;;  %s5684_s10 = inlined_call_operand.vmem [shape: f32[1,496], index: 10, kind: input, shape index: {}]   ;;  %s5685_s11 = inlined_call_operand.vmem [shape: f32[496,63], index: 11, kind: input, shape index: {}]   ;;  %s5686_s12 = inlined_call_operand.vmem [shape: f32[1,63], index: 12, kind: input, shape index: {}]   ;;  %s5687_s13 = inlined_call_operand.hbm [shape: f32[2,60], index: 13, kind: output, shape index: {}]  }
   0x1   :  { %19 = vsyncpa [#allocation4], 0  ;;  %s2846_s25 = smov [#allocation2]  }
   0x2   :  { %s39_s26 = sshll.u32 %s2846_s25, 4  ;;  %s40_s26 = int_to_ptr.vmem [resolvable:$true] %s39_s26 }
   0x3   :  { %s2810_s27 = scalar_lea.vmem %s40_s26, 32768  ;;  %p2815_p1 = scmp.lt.s32.totalorder %s40_s26, %s40_s26 }
   0x4   :  { %p2811_p0 = scmp.ne.s32.totalorder %s40_s26, %s2810_s27  ;;  %p2816_p2 = scmp.lt.s32.totalorder %s2810_s27, %s2810_s27 }
   0x6   :  { %p2817_p3 = por %p2816_p2, %p2815_p1 }
   0x8   :  { %p2818_p4 = pnand %p2817_p3, %p2811_p0 }
   0xa   :  { %2821 = shalt.err (!%p2818_p4)
}
   0xb   :  { %s2847_s28 = smov 512   ;;  %s2848_s29 = smov 32  }
   0xc   :  { %45 = dma.hbm_to_vmem [thread:$0]  %s5681_s7, 32768, %s40_s26, [#allocation3], %s2847_s28, %s2847_s28, %s2848_s29  }
   0xd   :  { %2842 = dma.done.wait [#allocation3], 32768  }
   0xe   :  { %2843 = vsyncadd [#allocation3], 4294934528  ;;  %v2849_v0 = vmov 0.0   ;;  %v89_v1 = vld [vmem:[%s5675_s1 + $0xe8] sm:$0xff]  ;;  %v88_v2 = vld [vmem:[%s5675_s1 + $0xe0] sm:$0xff]  ;;  %vm114_vm0 = vcmask 523264  }
   0xf   :  { %182 = vmatprep.mubr.f32.mxu0 %v2849_v0  ;;  %v85_v3 = vld [vmem:[%s5675_s1 + $0xc8] sm:$0xff]  ;;  %134 = vmatprep.subr.mxu0 %v89_v1  ;;  %v84_v4 = vld [vmem:[%s5675_s1 + $0xc0] sm:$0xff]  ;;  %v91_v18 = vld [vmem:[%s5675_s1 + $0xf8] sm:$0xff]  ;;  %vm2597_vm1 = vcmask 916480   ;;  %s2850_s24 = smov [#allocation5]   ;;  %vm2741_vm2 = vcmask 484352  }
  0x10   :  { %135 = vmatpush1.msra.mxu0 %v88_v2  ;;  %v81_v5 = vld [vmem:[%s5675_s1 + $0xa8] sm:$0xff]  ;;  %v80_v6 = vld [vmem:[%s5675_s1 + $0xa0] sm:$0xff]  ;;  %v90_v19 = vld [vmem:[%s5675_s1 + $0xf0] sm:$0xff] }
  0x11   :  { %136 = vmatprep.subr.mxu0 %v85_v3  ;;  %v77_v7 = vld [vmem:[%s5675_s1 + $0x88] sm:$0xff]  ;;  %v76_v8 = vld [vmem:[%s5675_s1 + $0x80] sm:$0xff]  ;;  %v87_v20 = vld [vmem:[%s5675_s1 + $0xd8] sm:$0xff] }
  0x12   :  { %137 = vmatpush1.msra.mxu0 %v84_v4  ;;  %v73_v9 = vld [vmem:[%s5675_s1 + $0x68] sm:$0xff]  ;;  %v72_v10 = vld [vmem:[%s5675_s1 + $0x60] sm:$0xff]  ;;  %v86_v22 = vld [vmem:[%s5675_s1 + $0xd0] sm:$0xff] }
  0x13   :  { %138 = vmatprep.subr.mxu0 %v81_v5  ;;  %v69_v11 = vld [vmem:[%s5675_s1 + $0x48] sm:$0xff]  ;;  %v68_v12 = vld [vmem:[%s5675_s1 + $0x40] sm:$0xff]  ;;  %v83_v24 = vld [vmem:[%s5675_s1 + $0xb8] sm:$0xff] }
  0x14   :  { %139 = vmatpush1.msra.mxu0 %v80_v6  ;;  %v65_v13 = vld [vmem:[%s5675_s1 + $0x28] sm:$0xff]  ;;  %v64_v14 = vld [vmem:[%s5675_s1 + $0x20] sm:$0xff]  ;;  %v82_v26 = vld [vmem:[%s5675_s1 + $0xb0] sm:$0xff] }
  0x15   :  { %140 = vmatprep.subr.mxu0 %v77_v7  ;;  %v61_v15 = vld [vmem:[%s5675_s1 + $0x8] sm:$0xff]  ;;  %v60_v16 = vld [vmem:[%s5675_s1] sm:$0xff]  ;;  %v79_v28 = vld [vmem:[%s5675_s1 + $0x98] sm:$0xff] }
  0x16   :  { %141 = vmatpush1.msra.mxu0 %v76_v8  ;;  %v2976_v17 = vld [vmem:[%s5674_s0] sm:$0x3]  ;;  %v453_v21 = vld [vmem:[%s5677_s3 + $0x5e8] sm:$0xff]  ;;  %v78_v30 = vld [vmem:[%s5675_s1 + $0x90] sm:$0xff] }
  0x17   :  { %142 = vmatprep.subr.mxu0 %v73_v9  ;;  %v452_v23 = vld [vmem:[%s5677_s3 + $0x5e0] sm:$0xff]  ;;  %v449_v25 = vld [vmem:[%s5677_s3 + $0x5c8] sm:$0xff]  ;;  %613 = vmatprep.subr.mxu1 %v453_v21  ;;  %v75_v32 = vld [vmem:[%s5675_s1 + $0x78] sm:$0xff] }
  0x18   :  { %143 = vmatpush1.msra.mxu0 %v72_v10  ;;  %v448_v27 = vld [vmem:[%s5677_s3 + $0x5c0] sm:$0xff]  ;;  %614 = vmatpush1.msra.mxu1 %v452_v23  ;;  %v445_v29 = vld [vmem:[%s5677_s3 + $0x5a8] sm:$0xff]  ;;  %v74_v34 = vld [vmem:[%s5675_s1 + $0x70] sm:$0xff] }
  0x19   :  { %144 = vmatprep.subr.mxu0 %v69_v11  ;;  %615 = vmatprep.subr.mxu1 %v449_v25  ;;  %v444_v31 = vld [vmem:[%s5677_s3 + $0x5a0] sm:$0xff]  ;;  %v441_v33 = vld [vmem:[%s5677_s3 + $0x588] sm:$0xff]  ;;  %v71_v36 = vld [vmem:[%s5675_s1 + $0x58] sm:$0xff] }
  0x1a   :  { %145 = vmatpush1.msra.mxu0 %v68_v12  ;;  %616 = vmatpush1.msra.mxu1 %v448_v27  ;;  %v440_v35 = vld [vmem:[%s5677_s3 + $0x580] sm:$0xff]  ;;  %v437_v37 = vld [vmem:[%s5677_s3 + $0x568] sm:$0xff]  ;;  %v70_v38 = vld [vmem:[%s5675_s1 + $0x50] sm:$0xff] }
  0x1b   :  { %146 = vmatprep.subr.mxu0 %v65_v13  ;;  %617 = vmatprep.subr.mxu1 %v445_v29  ;;  %v436_v39 = vld [vmem:[%s5677_s3 + $0x560] sm:$0xff]  ;;  %v67_v40 = vld [vmem:[%s5675_s1 + $0x38] sm:$0xff]  ;;  %v433_v41 = vld [vmem:[%s5677_s3 + $0x548] sm:$0xff] }
  0x1c   :  { %147 = vmatpush1.msra.mxu0 %v64_v14  ;;  %618 = vmatpush1.msra.mxu1 %v444_v31  ;;  %v66_v42 = vld [vmem:[%s5675_s1 + $0x30] sm:$0xff]  ;;  %v432_v43 = vld [vmem:[%s5677_s3 + $0x540] sm:$0xff]  ;;  %v63_v44 = vld [vmem:[%s5675_s1 + $0x18] sm:$0xff] }
  0x1d   :  { %148 = vmatprep.subr.mxu0 %v61_v15  ;;  %619 = vmatprep.subr.mxu1 %v441_v33  ;;  %v429_v45 = vld [vmem:[%s5677_s3 + $0x528] sm:$0xff]  ;;  %v62_v46 = vld [vmem:[%s5675_s1 + $0x10] sm:$0xff]  ;;  %v428_v47 = vld [vmem:[%s5677_s3 + $0x520] sm:$0xff] }
  0x1e   :  { %149 = vmatpush1.msra.mxu0 %v60_v16  ;;  %620 = vmatpush1.msra.mxu1 %v440_v35  ;;  %v325_v48 = vld [vmem:[%s5677_s3 + $0x1e8] sm:$0xff]  ;;  %v324_v49 = vld [vmem:[%s5677_s3 + $0x1e0] sm:$0xff] }
  0x1f   :  { %2758 = vmatmul.mubr.msk.f32.vlgmr.msra.gmra.mxu0 %vm114_vm0, %v2976_v17  ;;  %205 = vmatprep.subr.mxu0 %v91_v18  ;;  %v425_v50 = vld [vmem:[%s5677_s3 + $0x508] sm:$0xff]  ;;  %v424_v52 = vld [vmem:[%s5677_s3 + $0x500] sm:$0xff] }
  0x20   :  { %206 = vmatpush1.msra.mxu0 %v90_v19  ;;  %253 = vmatprep.mubr.f32.mxu0 %v2849_v0  ;;  %v321_v51 = vld [vmem:[%s5677_s3 + $0x1c8] sm:$0xff]  ;;  %v320_v53 = vld [vmem:[%s5677_s3 + $0x1c0] sm:$0xff] }
  0x21   :  { %207 = vmatprep.subr.mxu0 %v87_v20  ;;  %621 = vmatprep.subr.mxu1 %v437_v37  ;;  %v421_v54 = vld [vmem:[%s5677_s3 + $0x4e8] sm:$0xff]  ;;  %v420_v56 = vld [vmem:[%s5677_s3 + $0x4e0] sm:$0xff] }
  0x22   :  { %208 = vmatpush1.msra.mxu0 %v86_v22  ;;  %622 = vmatpush1.msra.mxu1 %v436_v39  ;;  %v317_v55 = vld [vmem:[%s5677_s3 + $0x1a8] sm:$0xff]  ;;  %v316_v57 = vld [vmem:[%s5677_s3 + $0x1a0] sm:$0xff] }
  0x23   :  { %209 = vmatprep.subr.mxu0 %v83_v24  ;;  %623 = vmatprep.subr.mxu1 %v433_v41  ;;  %v417_v58 = vld [vmem:[%s5677_s3 + $0x4c8] sm:$0xff]  ;;  %v416_v60 = vld [vmem:[%s5677_s3 + $0x4c0] sm:$0xff] }
  0x24   :  { %210 = vmatpush1.msra.mxu0 %v82_v26  ;;  %624 = vmatpush1.msra.mxu1 %v432_v43  ;;  %v313_v59 = vld [vmem:[%s5677_s3 + $0x188] sm:$0xff]  ;;  %v312_v61 = vld [vmem:[%s5677_s3 + $0x180] sm:$0xff] }
  0x25   :  { %211 = vmatprep.subr.mxu0 %v79_v28  ;;  %625 = vmatprep.subr.mxu1 %v429_v45  ;;  %v413_v62 = vld [vmem:[%s5677_s3 + $0x4a8] sm:$0xff]  ;;  %v412_v1 = vld [vmem:[%s5677_s3 + $0x4a0] sm:$0xff] }
  0x26   :  { %212 = vmatpush1.msra.mxu0 %v78_v30  ;;  %626 = vmatpush1.msra.mxu1 %v428_v47  ;;  %v309_v63 = vld [vmem:[%s5677_s3 + $0x168] sm:$0xff]  ;;  %v308_v2 = vld [vmem:[%s5677_s3 + $0x160] sm:$0xff] }
  0x27   :  { %213 = vmatprep.subr.mxu0 %v75_v32  ;;  %627 = vmatprep.subr.mxu1 %v425_v50  ;;  %v409_v3 = vld [vmem:[%s5677_s3 + $0x488] sm:$0xff]  ;;  %v408_v5 = vld [vmem:[%s5677_s3 + $0x480] sm:$0xff] }
  0x28   :  { %214 = vmatpush1.msra.mxu0 %v74_v34  ;;  %628 = vmatpush1.msra.mxu1 %v424_v52  ;;  %v305_v4 = vld [vmem:[%s5677_s3 + $0x148] sm:$0xff]  ;;  %v304_v6 = vld [vmem:[%s5677_s3 + $0x140] sm:$0xff] }
  0x29   :  { %215 = vmatprep.subr.mxu0 %v71_v36  ;;  %629 = vmatprep.subr.mxu1 %v421_v54  ;;  %v405_v7 = vld [vmem:[%s5677_s3 + $0x468] sm:$0xff]  ;;  %v404_v9 = vld [vmem:[%s5677_s3 + $0x460] sm:$0xff] }
  0x2a   :  { %216 = vmatpush1.msra.mxu0 %v70_v38  ;;  %630 = vmatpush1.msra.mxu1 %v420_v56  ;;  %v301_v8 = vld [vmem:[%s5677_s3 + $0x128] sm:$0xff]  ;;  %v300_v10 = vld [vmem:[%s5677_s3 + $0x120] sm:$0xff] }
  0x2b   :  { %217 = vmatprep.subr.mxu0 %v67_v40  ;;  %631 = vmatprep.subr.mxu1 %v417_v58  ;;  %v401_v11 = vld [vmem:[%s5677_s3 + $0x448] sm:$0xff]  ;;  %v400_v13 = vld [vmem:[%s5677_s3 + $0x440] sm:$0xff] }
  0x2c   :  { %218 = vmatpush1.msra.mxu0 %v66_v42  ;;  %632 = vmatpush1.msra.mxu1 %v416_v60  ;;  %v297_v12 = vld [vmem:[%s5677_s3 + $0x108] sm:$0xff]  ;;  %v296_v14 = vld [vmem:[%s5677_s3 + $0x100] sm:$0xff] }
  0x2d   :  { %219 = vmatprep.subr.mxu0 %v63_v44  ;;  %633 = vmatprep.subr.mxu1 %v413_v62  ;;  %v397_v15 = vld [vmem:[%s5677_s3 + $0x428] sm:$0xff]  ;;  %v292_v18 = vld [vmem:[%s5677_s3 + $0xe0] sm:$0xff] }
  0x2e   :  { %220 = vmatpush1.msra.mxu0 %v62_v46  ;;  %634 = vmatpush1.msra.mxu1 %v412_v1  ;;  %v293_v16 = vld [vmem:[%s5677_s3 + $0xe8] sm:$0xff]  ;;  %v392_v21 = vld [vmem:[%s5677_s3 + $0x400] sm:$0xff] }
  0x2f   :  { %2759 = vmatmul.mubr.msk.f32.vlgmr.msra.gmra.mxu0 %vm114_vm0, %v2976_v17  ;;  %542 = vmatprep.subr.mxu0 %v325_v48  ;;  %v396_v17 = vld [vmem:[%s5677_s3 + $0x420] sm:$0xff]  ;;  %v393_v19 = vld [vmem:[%s5677_s3 + $0x408] sm:$0xff] }
  0x30   :  { %543 = vmatpush1.msra.mxu0 %v324_v49  ;;  %635 = vmatprep.subr.mxu1 %v409_v3  ;;  %v289_v20 = vld [vmem:[%s5677_s3 + $0xc8] sm:$0xff]  ;;  %v288_v22 = vld [vmem:[%s5677_s3 + $0xc0] sm:$0xff] }
  0x31   :  { %544 = vmatprep.subr.mxu0 %v321_v51  ;;  %636 = vmatpush1.msra.mxu1 %v408_v5  ;;  %v517_v23 = vld [vmem:[%s5677_s3 + $0x7e8] sm:$0xff]  ;;  %v516_v25 = vld [vmem:[%s5677_s3 + $0x7e0] sm:$0xff] }
  0x32   :  { %545 = vmatpush1.msra.mxu0 %v320_v53  ;;  %637 = vmatprep.subr.mxu1 %v405_v7  ;;  %v285_v24 = vld [vmem:[%s5677_s3 + $0xa8] sm:$0xff]  ;;  %v284_v26 = vld [vmem:[%s5677_s3 + $0xa0] sm:$0xff] }
  0x33   :  { %546 = vmatprep.subr.mxu0 %v317_v55  ;;  %638 = vmatpush1.msra.mxu1 %v404_v9  ;;  %v513_v27 = vld [vmem:[%s5677_s3 + $0x7c8] sm:$0xff]  ;;  %v512_v29 = vld [vmem:[%s5677_s3 + $0x7c0] sm:$0xff] }
  0x34   :  { %547 = vmatpush1.msra.mxu0 %v316_v57  ;;  %639 = vmatprep.subr.mxu1 %v401_v11  ;;  %v281_v28 = vld [vmem:[%s5677_s3 + $0x88] sm:$0xff]  ;;  %v280_v30 = vld [vmem:[%s5677_s3 + $0x80] sm:$0xff] }
  0x35   :  { %548 = vmatprep.subr.mxu0 %v313_v59  ;;  %640 = vmatpush1.msra.mxu1 %v400_v13  ;;  %v509_v31 = vld [vmem:[%s5677_s3 + $0x7a8] sm:$0xff]  ;;  %v508_v33 = vld [vmem:[%s5677_s3 + $0x7a0] sm:$0xff] }
  0x36   :  { %549 = vmatpush1.msra.mxu0 %v312_v61  ;;  %641 = vmatprep.subr.mxu1 %v397_v15  ;;  %v277_v32 = vld [vmem:[%s5677_s3 + $0x68] sm:$0xff]  ;;  %v276_v34 = vld [vmem:[%s5677_s3 + $0x60] sm:$0xff] }
  0x37   :  { %550 = vmatprep.subr.mxu0 %v309_v63  ;;  %642 = vmatpush1.msra.mxu1 %v396_v17  ;;  %v505_v35 = vld [vmem:[%s5677_s3 + $0x788] sm:$0xff]  ;;  %v504_v37 = vld [vmem:[%s5677_s3 + $0x780] sm:$0xff] }
  0x38   :  { %551 = vmatpush1.msra.mxu0 %v308_v2  ;;  %643 = vmatprep.subr.mxu1 %v393_v19  ;;  %v273_v36 = vld [vmem:[%s5677_s3 + $0x48] sm:$0xff]  ;;  %v272_v38 = vld [vmem:[%s5677_s3 + $0x40] sm:$0xff] }
  0x39   :  { %552 = vmatprep.subr.mxu0 %v305_v4  ;;  %644 = vmatpush1.msra.mxu1 %v392_v21  ;;  %v501_v39 = vld [vmem:[%s5677_s3 + $0x768] sm:$0xff]  ;;  %v268_v41 = vld [vmem:[%s5677_s3 + $0x20] sm:$0xff] }
  0x3a   :  { %553 = vmatpush1.msra.mxu0 %v304_v6  ;;  %645 = vmatprep.subr.mxu1 %v517_v23  ;;  %v269_v40 = vld [vmem:[%s5677_s3 + $0x28] sm:$0xff]  ;;  %v264_v43 = vld [vmem:[%s5677_s3] sm:$0xff] }
  0x3b   :  { %554 = vmatprep.subr.mxu0 %v301_v8  ;;  %646 = vmatpush2.msra.mxu1 %v516_v25  ;;  %v265_v42 = vld [vmem:[%s5677_s3 + $0x8] sm:$0xff]  ;;  %v388_v45 = vld [vmem:[%s5677_s3 + $0x3e0] sm:$0xff] }
  0x3c   :  { %555 = vmatpush1.msra.mxu0 %v300_v10  ;;  %647 = vmatprep.subr.mxu1 %v513_v27  ;;  %v389_v44 = vld [vmem:[%s5677_s3 + $0x3e8] sm:$0xff]  ;;  %v384_v47 = vld [vmem:[%s5677_s3 + $0x3c0] sm:$0xff] }
  0x3d   :  { %556 = vmatprep.subr.mxu0 %v297_v12  ;;  %648 = vmatpush2.msra.mxu1 %v512_v29  ;;  %v385_v46 = vld [vmem:[%s5677_s3 + $0x3c8] sm:$0xff]  ;;  %v380_v49 = vld [vmem:[%s5677_s3 + $0x3a0] sm:$0xff] }
  0x3e   :  { %557 = vmatpush1.msra.mxu0 %v296_v14  ;;  %649 = vmatprep.subr.mxu1 %v509_v31  ;;  %v381_v48 = vld [vmem:[%s5677_s3 + $0x3a8] sm:$0xff]  ;;  %v376_v51 = vld [vmem:[%s5677_s3 + $0x380] sm:$0xff] }
  0x3f   :  { %558 = vmatprep.subr.mxu0 %v293_v16  ;;  %650 = vmatpush2.msra.mxu1 %v508_v33  ;;  %v377_v50 = vld [vmem:[%s5677_s3 + $0x388] sm:$0xff]  ;;  %v372_v53 = vld [vmem:[%s5677_s3 + $0x360] sm:$0xff] }
  0x40   :  { %559 = vmatpush1.msra.mxu0 %v292_v18  ;;  %651 = vmatprep.subr.mxu1 %v505_v35  ;;  %v373_v52 = vld [vmem:[%s5677_s3 + $0x368] sm:$0xff]  ;;  %v368_v55 = vld [vmem:[%s5677_s3 + $0x340] sm:$0xff] }
  0x41   :  { %560 = vmatprep.subr.mxu0 %v289_v20  ;;  %652 = vmatpush2.msra.mxu1 %v504_v37  ;;  %v369_v54 = vld [vmem:[%s5677_s3 + $0x348] sm:$0xff]  ;;  %v364_v57 = vld [vmem:[%s5677_s3 + $0x320] sm:$0xff]  ;;  %v455_v37 = vld [vmem:[%s5677_s3 + $0x5f8] sm:$0xff] }
  0x42   :  { %561 = vmatpush1.msra.mxu0 %v288_v22  ;;  %653 = vmatprep.subr.mxu1 %v501_v39  ;;  %v365_v56 = vld [vmem:[%s5677_s3 + $0x328] sm:$0xff]  ;;  %v360_v59 = vld [vmem:[%s5677_s3 + $0x300] sm:$0xff] }
  0x43   :  { %562 = vmatprep.subr.mxu0 %v285_v24  ;;  %v361_v58 = vld [vmem:[%s5677_s3 + $0x308] sm:$0xff]  ;;  %v356_v61 = vld [vmem:[%s5677_s3 + $0x2e0] sm:$0xff] }
  0x44   :  { %563 = vmatpush1.msra.mxu0 %v284_v26  ;;  %v357_v60 = vld [vmem:[%s5677_s3 + $0x2e8] sm:$0xff]  ;;  %v500_v63 = vld [vmem:[%s5677_s3 + $0x760] sm:$0xff]  ;;  %v327_v26 = vld [vmem:[%s5677_s3 + $0x1f8] sm:$0xff] }
  0x45   :  { %564 = vmatprep.subr.mxu0 %v281_v28  ;;  %v353_v62 = vld [vmem:[%s5677_s3 + $0x2c8] sm:$0xff]  ;;  %v352_v1 = vld [vmem:[%s5677_s3 + $0x2c0] sm:$0xff]  ;;  %654 = vmatpush2.msra.mxu1 %v500_v63  ;;  %v307_v63 = vld [vmem:[%s5677_s3 + $0x158] sm:$0xff] }
  0x46   :  { %565 = vmatpush1.msra.mxu0 %v280_v30  ;;  %v497_v2 = vld [vmem:[%s5677_s3 + $0x748] sm:$0xff]  ;;  %v496_v4 = vld [vmem:[%s5677_s3 + $0x740] sm:$0xff] }
  0x47   :  { %566 = vmatprep.subr.mxu0 %v277_v32  ;;  %v349_v3 = vld [vmem:[%s5677_s3 + $0x2a8] sm:$0xff]  ;;  %655 = vmatprep.subr.mxu1 %v497_v2  ;;  %v348_v5 = vld [vmem:[%s5677_s3 + $0x2a0] sm:$0xff] }
  0x48   :  { %567 = vmatpush1.msra.mxu0 %v276_v34  ;;  %656 = vmatpush2.msra.mxu1 %v496_v4  ;;  %v493_v6 = vld [vmem:[%s5677_s3 + $0x728] sm:$0xff]  ;;  %v492_v8 = vld [vmem:[%s5677_s3 + $0x720] sm:$0xff]  ;;  %v303_v4 = vld [vmem:[%s5677_s3 + $0x138] sm:$0xff] }
  0x49   :  { %568 = vmatprep.subr.mxu0 %v273_v36  ;;  %v345_v7 = vld [vmem:[%s5677_s3 + $0x288] sm:$0xff]  ;;  %657 = vmatprep.subr.mxu1 %v493_v6  ;;  %v344_v9 = vld [vmem:[%s5677_s3 + $0x280] sm:$0xff] }
  0x4a   :  { %569 = vmatpush1.msra.mxu0 %v272_v38  ;;  %658 = vmatpush2.msra.mxu1 %v492_v8  ;;  %v489_v10 = vld [vmem:[%s5677_s3 + $0x708] sm:$0xff]  ;;  %v488_v12 = vld [vmem:[%s5677_s3 + $0x700] sm:$0xff]  ;;  %v94_v38 = vlaneseq }
  0x4b   :  { %570 = vmatprep.subr.mxu0 %v269_v40  ;;  %v341_v11 = vld [vmem:[%s5677_s3 + $0x268] sm:$0xff]  ;;  %659 = vmatprep.subr.mxu1 %v489_v10  ;;  %v340_v13 = vld [vmem:[%s5677_s3 + $0x260] sm:$0xff]  ;;  %v298_v10 = vld [vmem:[%s5677_s3 + $0x110] sm:$0xff] }
  0x4c   :  { %571 = vmatpush1.msra.mxu0 %v268_v41  ;;  %660 = vmatpush2.msra.mxu1 %v488_v12  ;;  %v485_v14 = vld [vmem:[%s5677_s3 + $0x6e8] sm:$0xff]  ;;  %v484_v16 = vld [vmem:[%s5677_s3 + $0x6e0] sm:$0xff]  ;;  %v95_v39 = vshrl.u32 %v94_v38, 7  ;;  %v295_v12 = vld [vmem:[%s5677_s3 + $0xf8] sm:$0xff] }
  0x4d   :  { %572 = vmatprep.subr.mxu0 %v265_v42  ;;  %v337_v15 = vld [vmem:[%s5677_s3 + $0x248] sm:$0xff]  ;;  %661 = vmatprep.subr.mxu1 %v485_v14  ;;  %v336_v17 = vld [vmem:[%s5677_s3 + $0x240] sm:$0xff]  ;;  %v294_v14 = vld [vmem:[%s5677_s3 + $0xf0] sm:$0xff] }
  0x4e   :  { %573 = vmatpush1.msra.mxu0 %v264_v43  ;;  %662 = vmatpush2.msra.mxu1 %v484_v16  ;;  %v333_v18 = vld [vmem:[%s5677_s3 + $0x228] sm:$0xff]  ;;  %v332_v20 = vld [vmem:[%s5677_s3 + $0x220] sm:$0xff]  ;;  %v3421_v40 = vsub.s32 0, %v95_v39  ;;  %v3426_v42 = vsub.s32 1, %v95_v39  ;;  %v291_v16 = vld [vmem:[%s5677_s3 + $0xd8] sm:$0xff] }
  0x4f   :  { %574 = vmatprep.subr.mxu0 %v389_v44  ;;  %v481_v19 = vld [vmem:[%s5677_s3 + $0x6c8] sm:$0xff]  ;;  %v480_v21 = vld [vmem:[%s5677_s3 + $0x6c0] sm:$0xff]  ;;  %v270_v38 = vld [vmem:[%s5677_s3 + $0x30] sm:$0xff] }
  0x50   :  { %575 = vmatpush2.msra.mxu0 %v388_v45  ;;  %663 = vmatprep.subr.mxu1 %v481_v19  ;;  %v329_v22 = vld [vmem:[%s5677_s3 + $0x208] sm:$0xff]  ;;  %v328_v24 = vld [vmem:[%s5677_s3 + $0x200] sm:$0xff]  ;;  %v450_v19 = vld [vmem:[%s5677_s3 + $0x5d0] sm:$0xff] }
  0x51   :  { %576 = vmatprep.subr.mxu0 %v385_v46  ;;  %664 = vmatpush2.msra.mxu1 %v480_v21  ;;  %v477_v23 = vld [vmem:[%s5677_s3 + $0x6a8] sm:$0xff]  ;;  %v476_v25 = vld [vmem:[%s5677_s3 + $0x6a0] sm:$0xff]  ;;  %v447_v21 = vld [vmem:[%s5677_s3 + $0x5b8] sm:$0xff] }
  0x52   :  { %577 = vmatpush2.msra.mxu0 %v384_v47  ;;  %665 = vmatprep.subr.mxu1 %v477_v23  ;;  %v473_v27 = vld [vmem:[%s5677_s3 + $0x688] sm:$0xff]  ;;  %v472_v28 = vld [vmem:[%s5677_s3 + $0x680] sm:$0xff]  ;;  %v446_v23 = vld [vmem:[%s5677_s3 + $0x5b0] sm:$0xff] }
  0x53   :  { %578 = vmatprep.subr.mxu0 %v381_v48  ;;  %666 = vmatpush2.msra.mxu1 %v476_v25  ;;  %v469_v29 = vld [vmem:[%s5677_s3 + $0x668] sm:$0xff]  ;;  %v468_v30 = vld [vmem:[%s5677_s3 + $0x660] sm:$0xff]  ;;  %v443_v25 = vld [vmem:[%s5677_s3 + $0x598] sm:$0xff] }
  0x54   :  { %579 = vmatpush2.msra.mxu0 %v380_v49  ;;  %667 = vmatprep.subr.mxu1 %v473_v27  ;;  %v465_v31 = vld [vmem:[%s5677_s3 + $0x648] sm:$0xff]  ;;  %v464_v32 = vld [vmem:[%s5677_s3 + $0x640] sm:$0xff]  ;;  %v442_v27 = vld [vmem:[%s5677_s3 + $0x590] sm:$0xff] }
  0x55   :  { %580 = vmatprep.subr.mxu0 %v377_v50  ;;  %668 = vmatpush2.msra.mxu1 %v472_v28  ;;  %v461_v33 = vld [vmem:[%s5677_s3 + $0x628] sm:$0xff]  ;;  %v460_v34 = vld [vmem:[%s5677_s3 + $0x620] sm:$0xff]  ;;  %v279_v28 = vld [vmem:[%s5677_s3 + $0x78] sm:$0xff] }
  0x56   :  { %581 = vmatpush2.msra.mxu0 %v376_v51  ;;  %669 = vmatprep.subr.mxu1 %v469_v29  ;;  %v457_v35 = vld [vmem:[%s5677_s3 + $0x608] sm:$0xff]  ;;  %v456_v36 = vld [vmem:[%s5677_s3 + $0x600] sm:$0xff]  ;;  %v326_v51 = vld [vmem:[%s5677_s3 + $0x1f0] sm:$0xff] }
  0x57   :  { %582 = vmatprep.subr.mxu0 %v373_v52  ;;  %670 = vmatpush2.msra.mxu1 %v468_v30  ;;  %v92_v41 = vld [vmem:[%s5676_s2] sm:$0xf]  ;;  %v323_v52 = vld [vmem:[%s5677_s3 + $0x1d8] sm:$0xff]  ;;  %v278_v30 = vld [vmem:[%s5677_s3 + $0x70] sm:$0xff] }
  0x58   :  { %583 = vmatpush2.msra.mxu0 %v372_v53  ;;  %671 = vmatprep.subr.mxu1 %v465_v31  ;;  %v97_v43 = vrot.slane %v92_v41, %v3421_v40  ;;  %v101_v44 = vrot.slane %v92_v41, %v3426_v42  ;;  %v322_v53 = vld [vmem:[%s5677_s3 + $0x1d0] sm:$0xff]  ;;  %v439_v29 = vld [vmem:[%s5677_s3 + $0x578] sm:$0xff] }
  0x59   :  { %584 = vmatprep.subr.mxu0 %v369_v54  ;;  %672 = vmatpush2.msra.mxu1 %v464_v32  ;;  %v319_v54 = vld [vmem:[%s5677_s3 + $0x1b8] sm:$0xff]  ;;  %v438_v31 = vld [vmem:[%s5677_s3 + $0x570] sm:$0xff] }
  0x5a   :  { %585 = vmatpush2.msra.mxu0 %v368_v55  ;;  %673 = vmatprep.subr.mxu1 %v461_v33  ;;  %v318_v55 = vld [vmem:[%s5677_s3 + $0x1b0] sm:$0xff]  ;;  %v275_v32 = vld [vmem:[%s5677_s3 + $0x58] sm:$0xff] }
  0x5b   :  { %586 = vmatprep.subr.mxu0 %v365_v56  ;;  %674 = vmatpush2.msra.mxu1 %v460_v34  ;;  %v3450_v56 = vsub.s32 2, %v95_v39  ;;  %v435_v33 = vld [vmem:[%s5677_s3 + $0x558] sm:$0xff]  ;;  %v274_v34 = vld [vmem:[%s5677_s3 + $0x50] sm:$0xff] }
  0x5c   :  { %587 = vmatpush2.msra.mxu0 %v364_v57  ;;  %675 = vmatprep.subr.mxu1 %v457_v35  ;;  %v315_v57 = vld [vmem:[%s5677_s3 + $0x198] sm:$0xff]  ;;  %v434_v35 = vld [vmem:[%s5677_s3 + $0x550] sm:$0xff] }
  0x5d   :  { %588 = vmatprep.subr.mxu0 %v361_v58  ;;  %676 = vmatpush2.msra.mxu1 %v456_v36  ;;  %v3455_v58 = vsub.s32 3, %v95_v39  ;;  %v271_v36 = vld [vmem:[%s5677_s3 + $0x38] sm:$0xff]  ;;  %v430_v39 = vld [vmem:[%s5677_s3 + $0x530] sm:$0xff] }
  0x5e   :  { %589 = vmatpush2.msra.mxu0 %v360_v59  ;;  %755 = vmatprep.subr.mxu1 %v455_v37  ;;  %v314_v59 = vld [vmem:[%s5677_s3 + $0x190] sm:$0xff]  ;;  %v431_v37 = vld [vmem:[%s5677_s3 + $0x538] sm:$0xff] }
  0x5f   :  { %590 = vmatprep.subr.mxu0 %v357_v60  ;;  %v311_v60 = vld [vmem:[%s5677_s3 + $0x178] sm:$0xff] }
  0x60   :  { %591 = vmatpush2.msra.mxu0 %v356_v61  ;;  %v105_v61 = vrot.slane %v92_v41, %v3450_v56 }
  0x61   :  { %592 = vmatprep.subr.mxu0 %v353_v62  ;;  %v310_v62 = vld [vmem:[%s5677_s3 + $0x170] sm:$0xff] }
  0x62   :  { %593 = vmatpush2.msra.mxu0 %v352_v1  ;;  %v109_v1 = vrot.slane %v92_v41, %v3455_v58  ;;  %v267_v41 = vld [vmem:[%s5677_s3 + $0x18] sm:$0xff] }
  0x63   :  { %594 = vmatprep.subr.mxu0 %v349_v3  ;;  %v306_v3 = vld [vmem:[%s5677_s3 + $0x150] sm:$0xff] }
  0x64   :  { %595 = vmatpush2.msra.mxu0 %v348_v5 }
  0x65   :  { %596 = vmatprep.subr.mxu0 %v345_v7  ;;  %v302_v7 = vld [vmem:[%s5677_s3 + $0x130] sm:$0xff] }
  0x66   :  { %597 = vmatpush2.msra.mxu0 %v344_v9  ;;  %v299_v9 = vld [vmem:[%s5677_s3 + $0x118] sm:$0xff] }
  0x67   :  { %598 = vmatprep.subr.mxu0 %v341_v11 }
  0x68   :  { %599 = vmatpush2.msra.mxu0 %v340_v13 }
  0x69   :  { %600 = vmatprep.subr.mxu0 %v337_v15  ;;  %v454_v15 = vld [vmem:[%s5677_s3 + $0x5f0] sm:$0xff] }
  0x6a   :  { %601 = vmatpush2.msra.mxu0 %v336_v17  ;;  %v451_v17 = vld [vmem:[%s5677_s3 + $0x5d8] sm:$0xff] }
  0x6b   :  { %602 = vmatprep.subr.mxu0 %v333_v18  ;;  %v290_v18 = vld [vmem:[%s5677_s3 + $0xd0] sm:$0xff] }
  0x6c   :  { %603 = vmatpush2.msra.mxu0 %v332_v20  ;;  %v287_v20 = vld [vmem:[%s5677_s3 + $0xb8] sm:$0xff] }
  0x6d   :  { %604 = vmatprep.subr.mxu0 %v329_v22  ;;  %v286_v22 = vld [vmem:[%s5677_s3 + $0xb0] sm:$0xff] }
  0x6e   :  { %605 = vmatpush2.msra.mxu0 %v328_v24  ;;  %v283_v24 = vld [vmem:[%s5677_s3 + $0x98] sm:$0xff] }
  0x6f   :  { %684 = vmatprep.subr.mxu0 %v327_v26  ;;  %v282_v26 = vld [vmem:[%s5677_s3 + $0x90] sm:$0xff] }
  0xdf   :  { %v184_v45 = vpop.f32.mrf.mxu0 }
  0xe0   :  { %v3430_v46 = vadd.f32 %v184_v45, %v97_v43  ;;  %v427_v43 = vld [vmem:[%s5677_s3 + $0x518] sm:$0xff]  ;;  %v426_v45 = vld [vmem:[%s5677_s3 + $0x510] sm:$0xff] }
  0xe1   :  { %v186_v47 = vpop.f32.mrf.mxu0 }
  0xe2   :  { %v187_v48 = vadd.f32 %v186_v47, %v101_v44  ;;  %v260_v50 = vmax.f32 %v3430_v46, 0.0  ;;  %v266_v44 = vld [vmem:[%s5677_s3 + $0x10] sm:$0xff]  ;;  %v391_v47 = vld [vmem:[%s5677_s3 + $0x3f8] sm:$0xff] }
  0xe3   :  { %v479_v46 = vld [vmem:[%s5677_s3 + $0x6b8] sm:$0xff] }
  0xe4   :  { %v261_v49 = vmax.f32 %v187_v48, 0.0  ;;  %v423_v48 = vld [vmem:[%s5677_s3 + $0x4f8] sm:$0xff] }
  0xe6   :  { %606 = vmatprep.mubr.f32.mxu0 %v261_v49 }
  0xe7   :  { %607 = vmatmul.mubr.f32.vlgmr.msra.gmra.mxu0 %v260_v50 }
  0xe8   :  { %685 = vmatpush1.msra.mxu0 %v326_v51  ;;  %748 = vmatprep.mubr.f32.mxu0 %v261_v49  ;;  %v390_v49 = vld [vmem:[%s5677_s3 + $0x3f0] sm:$0xff] }
  0xe9   :  { %686 = vmatprep.subr.mxu0 %v323_v52  ;;  %v422_v51 = vld [vmem:[%s5677_s3 + $0x4f0] sm:$0xff]  ;;  %v387_v52 = vld [vmem:[%s5677_s3 + $0x3d8] sm:$0xff] }
  0xea   :  { %687 = vmatpush1.msra.mxu0 %v322_v53  ;;  %v419_v53 = vld [vmem:[%s5677_s3 + $0x4d8] sm:$0xff] }
  0xeb   :  { %688 = vmatprep.subr.mxu0 %v319_v54  ;;  %v386_v54 = vld [vmem:[%s5677_s3 + $0x3d0] sm:$0xff] }
  0xec   :  { %689 = vmatpush1.msra.mxu0 %v318_v55  ;;  %v418_v55 = vld [vmem:[%s5677_s3 + $0x4d0] sm:$0xff] }
  0xed   :  { %690 = vmatprep.subr.mxu0 %v315_v57  ;;  %v383_v57 = vld [vmem:[%s5677_s3 + $0x3b8] sm:$0xff] }
  0xee   :  { %691 = vmatpush1.msra.mxu0 %v314_v59  ;;  %v415_v59 = vld [vmem:[%s5677_s3 + $0x4b8] sm:$0xff] }
  0xef   :  { %692 = vmatprep.subr.mxu0 %v311_v60  ;;  %v255_v2 = vpop.f32.mrf.mxu0  ;;  %v382_v60 = vld [vmem:[%s5677_s3 + $0x3b0] sm:$0xff] }
  0xf0   :  { %693 = vmatpush1.msra.mxu0 %v310_v62  ;;  %v3477_v5 = vadd.f32 %v255_v2, %v105_v61  ;;  %v414_v61 = vld [vmem:[%s5677_s3 + $0x4b0] sm:$0xff]  ;;  %v379_v62 = vld [vmem:[%s5677_s3 + $0x398] sm:$0xff] }
  0xf1   :  { %694 = vmatprep.subr.mxu0 %v307_v63  ;;  %v257_v6 = vpop.f32.mrf.mxu0  ;;  %v411_v63 = vld [vmem:[%s5677_s3 + $0x498] sm:$0xff]  ;;  %v410_v2 = vld [vmem:[%s5677_s3 + $0x490] sm:$0xff] }
  0xf2   :  { %v258_v8 = vadd.f32 %v257_v6, %v109_v1  ;;  %695 = vmatpush1.msra.mxu0 %v306_v3  ;;  %v262_v13 = vmax.f32 %v3477_v5, 0.0  ;;  %v378_v1 = vld [vmem:[%s5677_s3 + $0x390] sm:$0xff]  ;;  %v375_v3 = vld [vmem:[%s5677_s3 + $0x378] sm:$0xff]  ;;  %v847_v5 = vld [vmem:[%s5679_s5 + $0x88] sm:$0xff] }
  0xf3   :  { %696 = vmatprep.subr.mxu0 %v303_v4  ;;  %v407_v4 = vld [vmem:[%s5677_s3 + $0x478] sm:$0xff]  ;;  %v374_v6 = vld [vmem:[%s5677_s3 + $0x370] sm:$0xff] }
  0xf4   :  { %v263_v11 = vmax.f32 %v258_v8, 0.0  ;;  %697 = vmatpush1.msra.mxu0 %v302_v7  ;;  %v406_v7 = vld [vmem:[%s5677_s3 + $0x470] sm:$0xff]  ;;  %v371_v8 = vld [vmem:[%s5677_s3 + $0x358] sm:$0xff] }
  0xf5   :  { %698 = vmatprep.subr.mxu0 %v299_v9  ;;  %v403_v9 = vld [vmem:[%s5677_s3 + $0x458] sm:$0xff] }
  0xf6   :  { %699 = vmatpush1.msra.mxu0 %v298_v10  ;;  %677 = vmatprep.mubr.f32.mxu1 %v263_v11  ;;  %v370_v10 = vld [vmem:[%s5677_s3 + $0x350] sm:$0xff] }
  0xf7   :  { %700 = vmatprep.subr.mxu0 %v295_v12  ;;  %678 = vmatmul.mubr.f32.vlgmr.msra.gmra.mxu1 %v262_v13  ;;  %v367_v12 = vld [vmem:[%s5677_s3 + $0x338] sm:$0xff] }
  0xf8   :  { %701 = vmatpush1.msra.mxu0 %v294_v14  ;;  %756 = vmatpush1.msra.mxu1 %v454_v15  ;;  %v399_v14 = vld [vmem:[%s5677_s3 + $0x438] sm:$0xff]  ;;  %v366_v15 = vld [vmem:[%s5677_s3 + $0x330] sm:$0xff] }
  0xf9   :  { %702 = vmatprep.subr.mxu0 %v291_v16  ;;  %757 = vmatprep.subr.mxu1 %v451_v17  ;;  %v398_v16 = vld [vmem:[%s5677_s3 + $0x430] sm:$0xff]  ;;  %v363_v17 = vld [vmem:[%s5677_s3 + $0x318] sm:$0xff] }
  0xfa   :  { %819 = vmatprep.mubr.f32.mxu1 %v263_v11  ;;  %703 = vmatpush1.msra.mxu0 %v290_v18  ;;  %v402_v11 = vld [vmem:[%s5677_s3 + $0x450] sm:$0xff]  ;;  %v395_v18 = vld [vmem:[%s5677_s3 + $0x418] sm:$0xff] }
  0xfb   :  { %758 = vmatpush1.msra.mxu1 %v450_v19  ;;  %704 = vmatprep.subr.mxu0 %v287_v20  ;;  %v362_v19 = vld [vmem:[%s5677_s3 + $0x310] sm:$0xff] }
  0xfc   :  { %759 = vmatprep.subr.mxu1 %v447_v21  ;;  %705 = vmatpush1.msra.mxu0 %v286_v22  ;;  %v394_v20 = vld [vmem:[%s5677_s3 + $0x410] sm:$0xff]  ;;  %v359_v21 = vld [vmem:[%s5677_s3 + $0x2f8] sm:$0xff] }
  0xfd   :  { %760 = vmatpush1.msra.mxu1 %v446_v23  ;;  %706 = vmatprep.subr.mxu0 %v283_v24  ;;  %v519_v22 = vld [vmem:[%s5677_s3 + $0x7f8] sm:$0xff]  ;;  %v358_v23 = vld [vmem:[%s5677_s3 + $0x2f0] sm:$0xff] }
  0xfe   :  { %761 = vmatprep.subr.mxu1 %v443_v25  ;;  %707 = vmatpush1.msra.mxu0 %v282_v26  ;;  %v518_v24 = vld [vmem:[%s5677_s3 + $0x7f0] sm:$0xff]  ;;  %v355_v25 = vld [vmem:[%s5677_s3 + $0x2d8] sm:$0xff] }
  0xff   :  { %762 = vmatpush1.msra.mxu1 %v442_v27  ;;  %708 = vmatprep.subr.mxu0 %v279_v28  ;;  %v515_v26 = vld [vmem:[%s5677_s3 + $0x7d8] sm:$0xff]  ;;  %v354_v27 = vld [vmem:[%s5677_s3 + $0x2d0] sm:$0xff] }
 0x100   :  { %763 = vmatprep.subr.mxu1 %v439_v29  ;;  %709 = vmatpush1.msra.mxu0 %v278_v30  ;;  %v514_v28 = vld [vmem:[%s5677_s3 + $0x7d0] sm:$0xff]  ;;  %v351_v29 = vld [vmem:[%s5677_s3 + $0x2b8] sm:$0xff] }
 0x101   :  { %764 = vmatpush1.msra.mxu1 %v438_v31  ;;  %710 = vmatprep.subr.mxu0 %v275_v32  ;;  %v511_v30 = vld [vmem:[%s5677_s3 + $0x7b8] sm:$0xff]  ;;  %v350_v31 = vld [vmem:[%s5677_s3 + $0x2b0] sm:$0xff] }
 0x102   :  { %765 = vmatprep.subr.mxu1 %v435_v33  ;;  %711 = vmatpush1.msra.mxu0 %v274_v34  ;;  %v510_v32 = vld [vmem:[%s5677_s3 + $0x7b0] sm:$0xff]  ;;  %v347_v33 = vld [vmem:[%s5677_s3 + $0x298] sm:$0xff] }
 0x103   :  { %766 = vmatpush1.msra.mxu1 %v434_v35  ;;  %712 = vmatprep.subr.mxu0 %v271_v36  ;;  %v507_v34 = vld [vmem:[%s5677_s3 + $0x798] sm:$0xff]  ;;  %v346_v35 = vld [vmem:[%s5677_s3 + $0x290] sm:$0xff] }
 0x104   :  { %767 = vmatprep.subr.mxu1 %v431_v37  ;;  %713 = vmatpush1.msra.mxu0 %v270_v38  ;;  %v506_v36 = vld [vmem:[%s5677_s3 + $0x790] sm:$0xff]  ;;  %v343_v37 = vld [vmem:[%s5677_s3 + $0x278] sm:$0xff] }
 0x105   :  { %768 = vmatpush1.msra.mxu1 %v430_v39  ;;  %714 = vmatprep.subr.mxu0 %v267_v41  ;;  %v503_v38 = vld [vmem:[%s5677_s3 + $0x778] sm:$0xff]  ;;  %v342_v39 = vld [vmem:[%s5677_s3 + $0x270] sm:$0xff] }
 0x106   :  { %769 = vmatprep.subr.mxu1 %v427_v43  ;;  %715 = vmatpush1.msra.mxu0 %v266_v44  ;;  %v502_v41 = vld [vmem:[%s5677_s3 + $0x770] sm:$0xff]  ;;  %v339_v43 = vld [vmem:[%s5677_s3 + $0x258] sm:$0xff] }
 0x107   :  { %770 = vmatpush1.msra.mxu1 %v426_v45  ;;  %716 = vmatprep.subr.mxu0 %v391_v47  ;;  %v499_v44 = vld [vmem:[%s5677_s3 + $0x758] sm:$0xff]  ;;  %v338_v45 = vld [vmem:[%s5677_s3 + $0x250] sm:$0xff] }
 0x108   :  { %771 = vmatprep.subr.mxu1 %v423_v48  ;;  %717 = vmatpush2.msra.mxu0 %v390_v49  ;;  %v498_v47 = vld [vmem:[%s5677_s3 + $0x750] sm:$0xff]  ;;  %v335_v48 = vld [vmem:[%s5677_s3 + $0x238] sm:$0xff] }
 0x109   :  { %772 = vmatpush1.msra.mxu1 %v422_v51  ;;  %718 = vmatprep.subr.mxu0 %v387_v52  ;;  %v495_v49 = vld [vmem:[%s5677_s3 + $0x738] sm:$0xff]  ;;  %v334_v51 = vld [vmem:[%s5677_s3 + $0x230] sm:$0xff] }
 0x10a   :  { %773 = vmatprep.subr.mxu1 %v419_v53  ;;  %719 = vmatpush2.msra.mxu0 %v386_v54  ;;  %v494_v52 = vld [vmem:[%s5677_s3 + $0x730] sm:$0xff]  ;;  %v331_v53 = vld [vmem:[%s5677_s3 + $0x218] sm:$0xff] }
 0x10b   :  { %774 = vmatpush1.msra.mxu1 %v418_v55  ;;  %720 = vmatprep.subr.mxu0 %v383_v57  ;;  %v491_v54 = vld [vmem:[%s5677_s3 + $0x718] sm:$0xff]  ;;  %v330_v55 = vld [vmem:[%s5677_s3 + $0x210] sm:$0xff] }
 0x10c   :  { %775 = vmatprep.subr.mxu1 %v415_v59  ;;  %721 = vmatpush2.msra.mxu0 %v382_v60  ;;  %v490_v57 = vld [vmem:[%s5677_s3 + $0x710] sm:$0xff]  ;;  %v487_v59 = vld [vmem:[%s5677_s3 + $0x6f8] sm:$0xff]  ;;  %v891_v60 = vld [vmem:[%s5679_s5 + $0x1e8] sm:$0xff] }
 0x10d   :  { %776 = vmatpush1.msra.mxu1 %v414_v61  ;;  %722 = vmatprep.subr.mxu0 %v379_v62  ;;  %v486_v61 = vld [vmem:[%s5677_s3 + $0x6f0] sm:$0xff]  ;;  %v890_v62 = vld [vmem:[%s5679_s5 + $0x1e0] sm:$0xff] }
 0x10e   :  { %777 = vmatprep.subr.mxu1 %v411_v63  ;;  %723 = vmatpush2.msra.mxu0 %v378_v1  ;;  %v483_v63 = vld [vmem:[%s5677_s3 + $0x6d8] sm:$0xff]  ;;  %v887_v1 = vld [vmem:[%s5679_s5 + $0x1c8] sm:$0xff] }
 0x10f   :  { %778 = vmatpush1.msra.mxu1 %v410_v2  ;;  %724 = vmatprep.subr.mxu0 %v375_v3  ;;  %v482_v2 = vld [vmem:[%s5677_s3 + $0x6d0] sm:$0xff]  ;;  %v886_v3 = vld [vmem:[%s5679_s5 + $0x1c0] sm:$0xff] }
 0x110   :  { %779 = vmatprep.subr.mxu1 %v407_v4  ;;  %725 = vmatpush2.msra.mxu0 %v374_v6  ;;  %v478_v4 = vld [vmem:[%s5677_s3 + $0x6b0] sm:$0xff]  ;;  %v882_v6 = vld [vmem:[%s5679_s5 + $0x1a0] sm:$0xff] }
 0x111   :  { %780 = vmatpush1.msra.mxu1 %v406_v7  ;;  %726 = vmatprep.subr.mxu0 %v371_v8  ;;  %v475_v7 = vld [vmem:[%s5677_s3 + $0x698] sm:$0xff]  ;;  %v879_v8 = vld [vmem:[%s5679_s5 + $0x188] sm:$0xff] }
 0x112   :  { %781 = vmatprep.subr.mxu1 %v403_v9  ;;  %727 = vmatpush2.msra.mxu0 %v370_v10  ;;  %v474_v9 = vld [vmem:[%s5677_s3 + $0x690] sm:$0xff]  ;;  %v878_v10 = vld [vmem:[%s5679_s5 + $0x180] sm:$0xff] }
 0x113   :  { %782 = vmatpush1.msra.mxu1 %v402_v11  ;;  %728 = vmatprep.subr.mxu0 %v367_v12  ;;  %v471_v11 = vld [vmem:[%s5677_s3 + $0x678] sm:$0xff]  ;;  %v875_v12 = vld [vmem:[%s5679_s5 + $0x168] sm:$0xff] }
 0x114   :  { %783 = vmatprep.subr.mxu1 %v399_v14  ;;  %729 = vmatpush2.msra.mxu0 %v366_v15  ;;  %v470_v14 = vld [vmem:[%s5677_s3 + $0x670] sm:$0xff]  ;;  %v874_v15 = vld [vmem:[%s5679_s5 + $0x160] sm:$0xff] }
 0x115   :  { %784 = vmatpush1.msra.mxu1 %v398_v16  ;;  %730 = vmatprep.subr.mxu0 %v363_v17  ;;  %v467_v16 = vld [vmem:[%s5677_s3 + $0x658] sm:$0xff]  ;;  %v871_v17 = vld [vmem:[%s5679_s5 + $0x148] sm:$0xff] }
 0x116   :  { %785 = vmatprep.subr.mxu1 %v395_v18  ;;  %731 = vmatpush2.msra.mxu0 %v362_v19  ;;  %v466_v18 = vld [vmem:[%s5677_s3 + $0x650] sm:$0xff]  ;;  %v870_v19 = vld [vmem:[%s5679_s5 + $0x140] sm:$0xff] }
 0x117   :  { %786 = vmatpush1.msra.mxu1 %v394_v20  ;;  %732 = vmatprep.subr.mxu0 %v359_v21  ;;  %v463_v20 = vld [vmem:[%s5677_s3 + $0x638] sm:$0xff]  ;;  %v867_v21 = vld [vmem:[%s5679_s5 + $0x128] sm:$0xff] }
 0x118   :  { %787 = vmatprep.subr.mxu1 %v519_v22  ;;  %733 = vmatpush2.msra.mxu0 %v358_v23  ;;  %v462_v22 = vld [vmem:[%s5677_s3 + $0x630] sm:$0xff]  ;;  %v866_v23 = vld [vmem:[%s5679_s5 + $0x120] sm:$0xff] }
 0x119   :  { %788 = vmatpush2.msra.mxu1 %v518_v24  ;;  %734 = vmatprep.subr.mxu0 %v355_v25  ;;  %v459_v24 = vld [vmem:[%s5677_s3 + $0x618] sm:$0xff]  ;;  %v863_v25 = vld [vmem:[%s5679_s5 + $0x108] sm:$0xff] }
 0x11a   :  { %789 = vmatprep.subr.mxu1 %v515_v26  ;;  %735 = vmatpush2.msra.mxu0 %v354_v27  ;;  %v458_v26 = vld [vmem:[%s5677_s3 + $0x610] sm:$0xff]  ;;  %v862_v27 = vld [vmem:[%s5679_s5 + $0x100] sm:$0xff] }
 0x11b   :  { %790 = vmatpush2.msra.mxu1 %v514_v28  ;;  %736 = vmatprep.subr.mxu0 %v351_v29  ;;  %v859_v28 = vld [vmem:[%s5679_s5 + $0xe8] sm:$0xff]  ;;  %v858_v29 = vld [vmem:[%s5679_s5 + $0xe0] sm:$0xff] }
 0x11c   :  { %791 = vmatprep.subr.mxu1 %v511_v30  ;;  %737 = vmatpush2.msra.mxu0 %v350_v31  ;;  %v855_v30 = vld [vmem:[%s5679_s5 + $0xc8] sm:$0xff]  ;;  %v854_v31 = vld [vmem:[%s5679_s5 + $0xc0] sm:$0xff] }
 0x11d   :  { %792 = vmatpush2.msra.mxu1 %v510_v32  ;;  %738 = vmatprep.subr.mxu0 %v347_v33  ;;  %v851_v32 = vld [vmem:[%s5679_s5 + $0xa8] sm:$0xff]  ;;  %v850_v33 = vld [vmem:[%s5679_s5 + $0xa0] sm:$0xff] }
 0x11e   :  { %793 = vmatprep.subr.mxu1 %v507_v34  ;;  %739 = vmatpush2.msra.mxu0 %v346_v35  ;;  %v843_v34 = vld [vmem:[%s5679_s5 + $0x68] sm:$0xff] }
 0x11f   :  { %794 = vmatpush2.msra.mxu1 %v506_v36  ;;  %740 = vmatprep.subr.mxu0 %v343_v37  ;;  %v1019_v35 = vld [vmem:[%s5679_s5 + $0x5e8] sm:$0xff]  ;;  %v842_v36 = vld [vmem:[%s5679_s5 + $0x60] sm:$0xff] }
 0x120   :  { %795 = vmatprep.subr.mxu1 %v503_v38  ;;  %741 = vmatpush2.msra.mxu0 %v342_v39  ;;  %v1018_v37 = vld [vmem:[%s5679_s5 + $0x5e0] sm:$0xff]  ;;  %v839_v38 = vld [vmem:[%s5679_s5 + $0x48] sm:$0xff] }
 0x121   :  { %796 = vmatpush2.msra.mxu1 %v502_v41  ;;  %742 = vmatprep.subr.mxu0 %v339_v43  ;;  %v1015_v39 = vld [vmem:[%s5679_s5 + $0x5c8] sm:$0xff]  ;;  %v838_v41 = vld [vmem:[%s5679_s5 + $0x40] sm:$0xff] }
 0x122   :  { %797 = vmatprep.subr.mxu1 %v499_v44  ;;  %743 = vmatpush2.msra.mxu0 %v338_v45  ;;  %v1014_v43 = vld [vmem:[%s5679_s5 + $0x5c0] sm:$0xff]  ;;  %v835_v44 = vld [vmem:[%s5679_s5 + $0x28] sm:$0xff] }
 0x123   :  { %798 = vmatpush2.msra.mxu1 %v498_v47  ;;  %744 = vmatprep.subr.mxu0 %v335_v48  ;;  %v1011_v45 = vld [vmem:[%s5679_s5 + $0x5a8] sm:$0xff]  ;;  %v834_v47 = vld [vmem:[%s5679_s5 + $0x20] sm:$0xff] }
 0x124   :  { %799 = vmatprep.subr.mxu1 %v495_v49  ;;  %745 = vmatpush2.msra.mxu0 %v334_v51  ;;  %v1010_v48 = vld [vmem:[%s5679_s5 + $0x5a0] sm:$0xff]  ;;  %v831_v49 = vld [vmem:[%s5679_s5 + $0x8] sm:$0xff] }
 0x125   :  { %800 = vmatpush2.msra.mxu1 %v494_v52  ;;  %746 = vmatprep.subr.mxu0 %v331_v53  ;;  %v1007_v51 = vld [vmem:[%s5679_s5 + $0x588] sm:$0xff]  ;;  %v830_v52 = vld [vmem:[%s5679_s5] sm:$0xff] }
 0x126   :  { %801 = vmatprep.subr.mxu1 %v491_v54  ;;  %747 = vmatpush2.msra.mxu0 %v330_v55  ;;  %v1006_v53 = vld [vmem:[%s5679_s5 + $0x580] sm:$0xff]  ;;  %v955_v54 = vld [vmem:[%s5679_s5 + $0x3e8] sm:$0xff] }
 0x127   :  { %802 = vmatpush2.msra.mxu1 %v490_v57  ;;  %749 = vmatmul.mubr.f32.vlgmr.msra.gmra.mxu0 %v260_v50  ;;  %v883_v50 = vld [vmem:[%s5679_s5 + $0x1a8] sm:$0xff]  ;;  %v954_v57 = vld [vmem:[%s5679_s5 + $0x3e0] sm:$0xff] }
 0x128   :  { %803 = vmatprep.subr.mxu1 %v487_v59  ;;  %1108 = vmatprep.subr.mxu0 %v891_v60  ;;  %v1003_v55 = vld [vmem:[%s5679_s5 + $0x568] sm:$0xff]  ;;  %v1002_v59 = vld [vmem:[%s5679_s5 + $0x560] sm:$0xff] }
 0x129   :  { %804 = vmatpush2.msra.mxu1 %v486_v61  ;;  %1109 = vmatpush1.msra.mxu0 %v890_v62  ;;  %v951_v60 = vld [vmem:[%s5679_s5 + $0x3c8] sm:$0xff]  ;;  %v950_v62 = vld [vmem:[%s5679_s5 + $0x3c0] sm:$0xff] }
 0x12a   :  { %805 = vmatprep.subr.mxu1 %v483_v63  ;;  %1110 = vmatprep.subr.mxu0 %v887_v1  ;;  %v999_v61 = vld [vmem:[%s5679_s5 + $0x548] sm:$0xff]  ;;  %v998_v63 = vld [vmem:[%s5679_s5 + $0x540] sm:$0xff] }
 0x12b   :  { %806 = vmatpush2.msra.mxu1 %v482_v2  ;;  %1111 = vmatpush1.msra.mxu0 %v886_v3  ;;  %v947_v1 = vld [vmem:[%s5679_s5 + $0x3a8] sm:$0xff]  ;;  %v946_v3 = vld [vmem:[%s5679_s5 + $0x3a0] sm:$0xff] }
 0x12c   :  { %807 = vmatprep.subr.mxu1 %v479_v46  ;;  %1112 = vmatprep.subr.mxu0 %v883_v50  ;;  %v995_v2 = vld [vmem:[%s5679_s5 + $0x528] sm:$0xff]  ;;  %v994_v46 = vld [vmem:[%s5679_s5 + $0x520] sm:$0xff] }
 0x12d   :  { %808 = vmatpush2.msra.mxu1 %v478_v4  ;;  %1113 = vmatpush1.msra.mxu0 %v882_v6  ;;  %v943_v50 = vld [vmem:[%s5679_s5 + $0x388] sm:$0xff]  ;;  %v942_v6 = vld [vmem:[%s5679_s5 + $0x380] sm:$0xff] }
 0x12e   :  { %809 = vmatprep.subr.mxu1 %v475_v7  ;;  %1114 = vmatprep.subr.mxu0 %v879_v8  ;;  %v991_v4 = vld [vmem:[%s5679_s5 + $0x508] sm:$0xff]  ;;  %v990_v7 = vld [vmem:[%s5679_s5 + $0x500] sm:$0xff] }
 0x12f   :  { %810 = vmatpush2.msra.mxu1 %v474_v9  ;;  %1115 = vmatpush1.msra.mxu0 %v878_v10  ;;  %v939_v8 = vld [vmem:[%s5679_s5 + $0x368] sm:$0xff]  ;;  %v938_v10 = vld [vmem:[%s5679_s5 + $0x360] sm:$0xff] }
 0x130   :  { %811 = vmatprep.subr.mxu1 %v471_v11  ;;  %1116 = vmatprep.subr.mxu0 %v875_v12  ;;  %v987_v9 = vld [vmem:[%s5679_s5 + $0x4e8] sm:$0xff]  ;;  %v986_v11 = vld [vmem:[%s5679_s5 + $0x4e0] sm:$0xff] }
 0x131   :  { %812 = vmatpush2.msra.mxu1 %v470_v14  ;;  %1117 = vmatpush1.msra.mxu0 %v874_v15  ;;  %v935_v12 = vld [vmem:[%s5679_s5 + $0x348] sm:$0xff]  ;;  %v934_v15 = vld [vmem:[%s5679_s5 + $0x340] sm:$0xff] }
 0x132   :  { %813 = vmatprep.subr.mxu1 %v467_v16  ;;  %1118 = vmatprep.subr.mxu0 %v871_v17  ;;  %v983_v14 = vld [vmem:[%s5679_s5 + $0x4c8] sm:$0xff]  ;;  %v982_v16 = vld [vmem:[%s5679_s5 + $0x4c0] sm:$0xff] }
 0x133   :  { %814 = vmatpush2.msra.mxu1 %v466_v18  ;;  %1119 = vmatpush1.msra.mxu0 %v870_v19  ;;  %v931_v17 = vld [vmem:[%s5679_s5 + $0x328] sm:$0xff]  ;;  %v930_v19 = vld [vmem:[%s5679_s5 + $0x320] sm:$0xff] }
 0x134   :  { %815 = vmatprep.subr.mxu1 %v463_v20  ;;  %1120 = vmatprep.subr.mxu0 %v867_v21  ;;  %v979_v18 = vld [vmem:[%s5679_s5 + $0x4a8] sm:$0xff]  ;;  %v978_v20 = vld [vmem:[%s5679_s5 + $0x4a0] sm:$0xff] }
 0x135   :  { %816 = vmatpush2.msra.mxu1 %v462_v22  ;;  %1121 = vmatpush1.msra.mxu0 %v866_v23  ;;  %v927_v21 = vld [vmem:[%s5679_s5 + $0x308] sm:$0xff]  ;;  %v926_v23 = vld [vmem:[%s5679_s5 + $0x300] sm:$0xff] }
 0x136   :  { %817 = vmatprep.subr.mxu1 %v459_v24  ;;  %1122 = vmatprep.subr.mxu0 %v863_v25  ;;  %v975_v22 = vld [vmem:[%s5679_s5 + $0x488] sm:$0xff]  ;;  %v974_v24 = vld [vmem:[%s5679_s5 + $0x480] sm:$0xff] }
 0x137   :  { %818 = vmatpush2.msra.mxu1 %v458_v26  ;;  %1123 = vmatpush1.msra.mxu0 %v862_v27  ;;  %v923_v25 = vld [vmem:[%s5679_s5 + $0x2e8] sm:$0xff]  ;;  %v922_v27 = vld [vmem:[%s5679_s5 + $0x2e0] sm:$0xff] }
 0x138   :  { %820 = vmatmul.mubr.f32.vlgmr.msra.gmra.mxu1 %v262_v13  ;;  %1124 = vmatprep.subr.mxu0 %v859_v28  ;;  %v846_v13 = vld [vmem:[%s5679_s5 + $0x80] sm:$0xff]  ;;  %v971_v26 = vld [vmem:[%s5679_s5 + $0x468] sm:$0xff] }
 0x139   :  { %1125 = vmatpush1.msra.mxu0 %v858_v29  ;;  %1179 = vmatprep.subr.mxu1 %v1019_v35  ;;  %v970_v28 = vld [vmem:[%s5679_s5 + $0x460] sm:$0xff]  ;;  %v919_v29 = vld [vmem:[%s5679_s5 + $0x2c8] sm:$0xff] }
 0x13a   :  { %1126 = vmatprep.subr.mxu0 %v855_v30  ;;  %1180 = vmatpush1.msra.mxu1 %v1018_v37  ;;  %v967_v30 = vld [vmem:[%s5679_s5 + $0x448] sm:$0xff]  ;;  %v910_v37 = vld [vmem:[%s5679_s5 + $0x280] sm:$0xff] }
 0x13b   :  { %1127 = vmatpush1.msra.mxu0 %v854_v31  ;;  %1181 = vmatprep.subr.mxu1 %v1015_v39  ;;  %v918_v31 = vld [vmem:[%s5679_s5 + $0x2c0] sm:$0xff]  ;;  %v911_v35 = vld [vmem:[%s5679_s5 + $0x288] sm:$0xff] }
 0x13c   :  { %1128 = vmatprep.subr.mxu0 %v851_v32  ;;  %1182 = vmatpush1.msra.mxu1 %v1014_v43  ;;  %v966_v32 = vld [vmem:[%s5679_s5 + $0x440] sm:$0xff]  ;;  %v907_v39 = vld [vmem:[%s5679_s5 + $0x268] sm:$0xff] }
 0x13d   :  { %1129 = vmatpush1.msra.mxu0 %v850_v33  ;;  %1183 = vmatprep.subr.mxu1 %v1011_v45  ;;  %v915_v33 = vld [vmem:[%s5679_s5 + $0x2a8] sm:$0xff]  ;;  %v906_v43 = vld [vmem:[%s5679_s5 + $0x260] sm:$0xff] }
 0x13e   :  { %1130 = vmatprep.subr.mxu0 %v847_v5  ;;  %1184 = vmatpush1.msra.mxu1 %v1010_v48  ;;  %v963_v5 = vld [vmem:[%s5679_s5 + $0x428] sm:$0xff]  ;;  %v902_v48 = vld [vmem:[%s5679_s5 + $0x240] sm:$0xff] }
 0x13f   :  { %1131 = vmatpush1.msra.mxu0 %v846_v13  ;;  %1185 = vmatprep.subr.mxu1 %v1007_v51  ;;  %v914_v13 = vld [vmem:[%s5679_s5 + $0x2a0] sm:$0xff]  ;;  %v903_v45 = vld [vmem:[%s5679_s5 + $0x248] sm:$0xff] }
 0x140   :  { %1132 = vmatprep.subr.mxu0 %v843_v34  ;;  %1186 = vmatpush1.msra.mxu1 %v1006_v53  ;;  %v962_v34 = vld [vmem:[%s5679_s5 + $0x420] sm:$0xff]  ;;  %v899_v51 = vld [vmem:[%s5679_s5 + $0x228] sm:$0xff] }
 0x141   :  { %1133 = vmatpush1.msra.mxu0 %v842_v36  ;;  %1187 = vmatprep.subr.mxu1 %v1003_v55  ;;  %v959_v36 = vld [vmem:[%s5679_s5 + $0x408] sm:$0xff]  ;;  %v898_v53 = vld [vmem:[%s5679_s5 + $0x220] sm:$0xff] }
 0x142   :  { %1134 = vmatprep.subr.mxu0 %v839_v38  ;;  %1188 = vmatpush1.msra.mxu1 %v1002_v59  ;;  %v958_v38 = vld [vmem:[%s5679_s5 + $0x400] sm:$0xff]  ;;  %v895_v55 = vld [vmem:[%s5679_s5 + $0x208] sm:$0xff] }
 0x143   :  { %1135 = vmatpush1.msra.mxu0 %v838_v41  ;;  %1189 = vmatprep.subr.mxu1 %v999_v61  ;;  %v1083_v41 = vld [vmem:[%s5679_s5 + $0x7e8] sm:$0xff]  ;;  %v894_v59 = vld [vmem:[%s5679_s5 + $0x200] sm:$0xff]  ;;  %v893_v61 = vld [vmem:[%s5679_s5 + $0x1f8] sm:$0xff] }
 0x144   :  { %1136 = vmatprep.subr.mxu0 %v835_v44  ;;  %1190 = vmatpush1.msra.mxu1 %v998_v63  ;;  %v1082_v44 = vld [vmem:[%s5679_s5 + $0x7e0] sm:$0xff] }
 0x145   :  { %1137 = vmatpush1.msra.mxu0 %v834_v47  ;;  %1191 = vmatprep.subr.mxu1 %v995_v2  ;;  %v1079_v47 = vld [vmem:[%s5679_s5 + $0x7c8] sm:$0xff]  ;;  %v1066_v63 = vld [vmem:[%s5679_s5 + $0x760] sm:$0xff] }
 0x146   :  { %1138 = vmatprep.subr.mxu0 %v831_v49  ;;  %1192 = vmatpush1.msra.mxu1 %v994_v46  ;;  %v1078_v49 = vld [vmem:[%s5679_s5 + $0x7c0] sm:$0xff] }
 0x147   :  { %1139 = vmatpush1.msra.mxu0 %v830_v52  ;;  %1193 = vmatprep.subr.mxu1 %v991_v4  ;;  %v1075_v52 = vld [vmem:[%s5679_s5 + $0x7a8] sm:$0xff]  ;;  %v1062_v2 = vld [vmem:[%s5679_s5 + $0x740] sm:$0xff] }
 0x148   :  { %1140 = vmatprep.subr.mxu0 %v955_v54  ;;  %1194 = vmatpush1.msra.mxu1 %v990_v7  ;;  %v1074_v54 = vld [vmem:[%s5679_s5 + $0x7a0] sm:$0xff] }
 0x149   :  { %1141 = vmatpush2.msra.mxu0 %v954_v57  ;;  %1195 = vmatprep.subr.mxu1 %v987_v9  ;;  %v1071_v57 = vld [vmem:[%s5679_s5 + $0x788] sm:$0xff]  ;;  %v1058_v46 = vld [vmem:[%s5679_s5 + $0x720] sm:$0xff] }
 0x14a   :  { %1142 = vmatprep.subr.mxu0 %v951_v60  ;;  %1196 = vmatpush1.msra.mxu1 %v986_v11  ;;  %v1070_v60 = vld [vmem:[%s5679_s5 + $0x780] sm:$0xff] }
 0x14b   :  { %1143 = vmatpush2.msra.mxu0 %v950_v62  ;;  %1197 = vmatprep.subr.mxu1 %v983_v14  ;;  %v1067_v62 = vld [vmem:[%s5679_s5 + $0x768] sm:$0xff]  ;;  %v1054_v4 = vld [vmem:[%s5679_s5 + $0x700] sm:$0xff] }
 0x14c   :  { %1144 = vmatprep.subr.mxu0 %v947_v1  ;;  %1198 = vmatpush1.msra.mxu1 %v982_v16  ;;  %v1063_v1 = vld [vmem:[%s5679_s5 + $0x748] sm:$0xff]  ;;  %v1050_v7 = vld [vmem:[%s5679_s5 + $0x6e0] sm:$0xff] }
 0x14d   :  { %1145 = vmatpush2.msra.mxu0 %v946_v3  ;;  %1199 = vmatprep.subr.mxu1 %v979_v18  ;;  %v1059_v3 = vld [vmem:[%s5679_s5 + $0x728] sm:$0xff]  ;;  %v1046_v9 = vld [vmem:[%s5679_s5 + $0x6c0] sm:$0xff] }
 0x14e   :  { %1146 = vmatprep.subr.mxu0 %v943_v50  ;;  %1200 = vmatpush1.msra.mxu1 %v978_v20  ;;  %v1055_v50 = vld [vmem:[%s5679_s5 + $0x708] sm:$0xff]  ;;  %v1042_v11 = vld [vmem:[%s5679_s5 + $0x6a0] sm:$0xff] }
 0x14f   :  { %1147 = vmatpush2.msra.mxu0 %v942_v6  ;;  %1201 = vmatprep.subr.mxu1 %v975_v22  ;;  %v1051_v6 = vld [vmem:[%s5679_s5 + $0x6e8] sm:$0xff]  ;;  %v1038_v14 = vld [vmem:[%s5679_s5 + $0x680] sm:$0xff] }
 0x150   :  { %1148 = vmatprep.subr.mxu0 %v939_v8  ;;  %1202 = vmatpush1.msra.mxu1 %v974_v24  ;;  %v1047_v8 = vld [vmem:[%s5679_s5 + $0x6c8] sm:$0xff]  ;;  %v1034_v16 = vld [vmem:[%s5679_s5 + $0x660] sm:$0xff] }
 0x151   :  { %1149 = vmatpush2.msra.mxu0 %v938_v10  ;;  %1203 = vmatprep.subr.mxu1 %v971_v26  ;;  %v1043_v10 = vld [vmem:[%s5679_s5 + $0x6a8] sm:$0xff]  ;;  %v1030_v18 = vld [vmem:[%s5679_s5 + $0x640] sm:$0xff] }
 0x152   :  { %1150 = vmatprep.subr.mxu0 %v935_v12  ;;  %1204 = vmatpush1.msra.mxu1 %v970_v28  ;;  %v1039_v12 = vld [vmem:[%s5679_s5 + $0x688] sm:$0xff]  ;;  %v1026_v20 = vld [vmem:[%s5679_s5 + $0x620] sm:$0xff] }
 0x153   :  { %1151 = vmatpush2.msra.mxu0 %v934_v15  ;;  %1205 = vmatprep.subr.mxu1 %v967_v30  ;;  %v1035_v15 = vld [vmem:[%s5679_s5 + $0x668] sm:$0xff]  ;;  %v1022_v22 = vld [vmem:[%s5679_s5 + $0x600] sm:$0xff] }
 0x154   :  { %1152 = vmatprep.subr.mxu0 %v931_v17  ;;  %1206 = vmatpush1.msra.mxu1 %v966_v32  ;;  %v1031_v17 = vld [vmem:[%s5679_s5 + $0x648] sm:$0xff]  ;;  %v4221_v24 = vld [vmem:[%s5678_s4] sm:$0xf] }
 0x155   :  { %1153 = vmatpush2.msra.mxu0 %v930_v19  ;;  %1207 = vmatprep.subr.mxu1 %v963_v5  ;;  %v1027_v19 = vld [vmem:[%s5679_s5 + $0x628] sm:$0xff]  ;;  %v525_v26 = vrot.slane %v4221_v24, %v3421_v40 }
 0x156   :  { %1154 = vmatprep.subr.mxu0 %v927_v21  ;;  %1208 = vmatpush1.msra.mxu1 %v962_v34  ;;  %v1023_v21 = vld [vmem:[%s5679_s5 + $0x608] sm:$0xff] }
 0x157   :  { %1155 = vmatpush2.msra.mxu0 %v926_v23  ;;  %1209 = vmatprep.subr.mxu1 %v959_v36  ;;  %v1021_v23 = vld [vmem:[%s5679_s5 + $0x5f8] sm:$0xff] }
 0x158   :  { %1156 = vmatprep.subr.mxu0 %v923_v25  ;;  %1210 = vmatpush1.msra.mxu1 %v958_v38  ;;  %v889_v36 = vld [vmem:[%s5679_s5 + $0x1d8] sm:$0xff] }
 0x159   :  { %1157 = vmatpush2.msra.mxu0 %v922_v27  ;;  %1211 = vmatprep.subr.mxu1 %v1083_v41  ;;  %v529_v27 = vrot.slane %v4221_v24, %v3426_v42  ;;  %v885_v38 = vld [vmem:[%s5679_s5 + $0x1b8] sm:$0xff] }
 0x15a   :  { %1158 = vmatprep.subr.mxu0 %v919_v29  ;;  %1212 = vmatpush2.msra.mxu1 %v1082_v44  ;;  %v881_v41 = vld [vmem:[%s5679_s5 + $0x198] sm:$0xff] }
 0x15b   :  { %1159 = vmatpush2.msra.mxu0 %v918_v31  ;;  %1213 = vmatprep.subr.mxu1 %v1079_v47  ;;  %v877_v44 = vld [vmem:[%s5679_s5 + $0x178] sm:$0xff] }
 0x15c   :  { %1160 = vmatprep.subr.mxu0 %v915_v33  ;;  %1214 = vmatpush2.msra.mxu1 %v1078_v49  ;;  %v873_v47 = vld [vmem:[%s5679_s5 + $0x158] sm:$0xff] }
 0x15d   :  { %1161 = vmatpush2.msra.mxu0 %v914_v13  ;;  %1215 = vmatprep.subr.mxu1 %v1075_v52  ;;  %v869_v49 = vld [vmem:[%s5679_s5 + $0x138] sm:$0xff] }
 0x15e   :  { %1162 = vmatprep.subr.mxu0 %v911_v35  ;;  %1216 = vmatpush2.msra.mxu1 %v1074_v54  ;;  %v892_v35 = vld [vmem:[%s5679_s5 + $0x1f0] sm:$0xff]  ;;  %v865_v52 = vld [vmem:[%s5679_s5 + $0x118] sm:$0xff] }
 0x15f   :  { %1163 = vmatpush2.msra.mxu0 %v910_v37  ;;  %1217 = vmatprep.subr.mxu1 %v1071_v57  ;;  %v888_v37 = vld [vmem:[%s5679_s5 + $0x1d0] sm:$0xff]  ;;  %v861_v54 = vld [vmem:[%s5679_s5 + $0xf8] sm:$0xff] }
 0x160   :  { %1164 = vmatprep.subr.mxu0 %v907_v39  ;;  %1218 = vmatpush2.msra.mxu1 %v1070_v60  ;;  %v884_v39 = vld [vmem:[%s5679_s5 + $0x1b0] sm:$0xff]  ;;  %v857_v57 = vld [vmem:[%s5679_s5 + $0xd8] sm:$0xff] }
 0x161   :  { %1165 = vmatpush2.msra.mxu0 %v906_v43  ;;  %1219 = vmatprep.subr.mxu1 %v1067_v62  ;;  %v880_v43 = vld [vmem:[%s5679_s5 + $0x190] sm:$0xff]  ;;  %v853_v60 = vld [vmem:[%s5679_s5 + $0xb8] sm:$0xff] }
 0x162   :  { %1166 = vmatprep.subr.mxu0 %v903_v45  ;;  %1220 = vmatpush2.msra.mxu1 %v1066_v63  ;;  %v876_v45 = vld [vmem:[%s5679_s5 + $0x170] sm:$0xff]  ;;  %v849_v62 = vld [vmem:[%s5679_s5 + $0x98] sm:$0xff] }
 0x163   :  { %1167 = vmatpush2.msra.mxu0 %v902_v48  ;;  %1221 = vmatprep.subr.mxu1 %v1063_v1  ;;  %v872_v48 = vld [vmem:[%s5679_s5 + $0x150] sm:$0xff]  ;;  %v845_v1 = vld [vmem:[%s5679_s5 + $0x78] sm:$0xff] }
 0x164   :  { %1168 = vmatprep.subr.mxu0 %v899_v51  ;;  %1222 = vmatpush2.msra.mxu1 %v1062_v2  ;;  %v868_v51 = vld [vmem:[%s5679_s5 + $0x130] sm:$0xff] }
 0x165   :  { %1169 = vmatpush2.msra.mxu0 %v898_v53  ;;  %1223 = vmatprep.subr.mxu1 %v1059_v3  ;;  %v864_v53 = vld [vmem:[%s5679_s5 + $0x110] sm:$0xff]  ;;  %v841_v3 = vld [vmem:[%s5679_s5 + $0x58] sm:$0xff] }
 0x166   :  { %1170 = vmatprep.subr.mxu0 %v895_v55  ;;  %1224 = vmatpush2.msra.mxu1 %v1058_v46  ;;  %v860_v55 = vld [vmem:[%s5679_s5 + $0xf0] sm:$0xff] }
 0x167   :  { %1171 = vmatpush2.msra.mxu0 %v894_v59  ;;  %1225 = vmatprep.subr.mxu1 %v1055_v50  ;;  %v856_v59 = vld [vmem:[%s5679_s5 + $0xd0] sm:$0xff]  ;;  %v837_v50 = vld [vmem:[%s5679_s5 + $0x38] sm:$0xff] }
 0x168   :  { %1250 = vmatprep.subr.mxu0 %v893_v61  ;;  %1226 = vmatpush2.msra.mxu1 %v1054_v4  ;;  %v852_v61 = vld [vmem:[%s5679_s5 + $0xb0] sm:$0xff] }
 0x169   :  { %1227 = vmatprep.subr.mxu1 %v1051_v6  ;;  %v848_v63 = vld [vmem:[%s5679_s5 + $0x90] sm:$0xff]  ;;  %v833_v6 = vld [vmem:[%s5679_s5 + $0x18] sm:$0xff] }
 0x16a   :  { %1228 = vmatpush2.msra.mxu1 %v1050_v7  ;;  %v844_v2 = vld [vmem:[%s5679_s5 + $0x70] sm:$0xff] }
 0x16b   :  { %1229 = vmatprep.subr.mxu1 %v1047_v8  ;;  %v840_v46 = vld [vmem:[%s5679_s5 + $0x50] sm:$0xff]  ;;  %v957_v8 = vld [vmem:[%s5679_s5 + $0x3f8] sm:$0xff] }
 0x16c   :  { %1230 = vmatpush2.msra.mxu1 %v1046_v9  ;;  %v836_v4 = vld [vmem:[%s5679_s5 + $0x30] sm:$0xff] }
 0x16d   :  { %1231 = vmatprep.subr.mxu1 %v1043_v10  ;;  %v832_v7 = vld [vmem:[%s5679_s5 + $0x10] sm:$0xff]  ;;  %v953_v10 = vld [vmem:[%s5679_s5 + $0x3d8] sm:$0xff] }
 0x16e   :  { %1232 = vmatpush2.msra.mxu1 %v1042_v11  ;;  %v956_v9 = vld [vmem:[%s5679_s5 + $0x3f0] sm:$0xff] }
 0x16f   :  { %1233 = vmatprep.subr.mxu1 %v1039_v12  ;;  %v952_v11 = vld [vmem:[%s5679_s5 + $0x3d0] sm:$0xff]  ;;  %v949_v12 = vld [vmem:[%s5679_s5 + $0x3b8] sm:$0xff] }
 0x170   :  { %1234 = vmatpush2.msra.mxu1 %v1038_v14  ;;  %v948_v14 = vld [vmem:[%s5679_s5 + $0x3b0] sm:$0xff] }
 0x171   :  { %1235 = vmatprep.subr.mxu1 %v1035_v15  ;;  %v945_v15 = vld [vmem:[%s5679_s5 + $0x398] sm:$0xff] }
 0x172   :  { %1236 = vmatpush2.msra.mxu1 %v1034_v16  ;;  %v944_v16 = vld [vmem:[%s5679_s5 + $0x390] sm:$0xff] }
 0x173   :  { %1237 = vmatprep.subr.mxu1 %v1031_v17  ;;  %v941_v17 = vld [vmem:[%s5679_s5 + $0x378] sm:$0xff] }
 0x174   :  { %1238 = vmatpush2.msra.mxu1 %v1030_v18  ;;  %v940_v18 = vld [vmem:[%s5679_s5 + $0x370] sm:$0xff] }
 0x175   :  { %1239 = vmatprep.subr.mxu1 %v1027_v19  ;;  %v937_v19 = vld [vmem:[%s5679_s5 + $0x358] sm:$0xff] }
 0x176   :  { %1240 = vmatpush2.msra.mxu1 %v1026_v20  ;;  %v936_v20 = vld [vmem:[%s5679_s5 + $0x350] sm:$0xff] }
 0x177   :  { %1241 = vmatprep.subr.mxu1 %v1023_v21  ;;  %v933_v21 = vld [vmem:[%s5679_s5 + $0x338] sm:$0xff] }
 0x178   :  { %1242 = vmatpush2.msra.mxu1 %v1022_v22  ;;  %v932_v22 = vld [vmem:[%s5679_s5 + $0x330] sm:$0xff] }
 0x179   :  { %1321 = vmatprep.subr.mxu1 %v1021_v23  ;;  %v929_v23 = vld [vmem:[%s5679_s5 + $0x318] sm:$0xff] }
 0x1a7   :  { %v608_v25 = vpop.f32.mrf.mxu0 }
 0x1a8   :  { %v609_v29 = vadd.f32 %v608_v25, %v525_v26  ;;  %v928_v25 = vld [vmem:[%s5679_s5 + $0x310] sm:$0xff]  ;;  %v925_v26 = vld [vmem:[%s5679_s5 + $0x2f8] sm:$0xff] }
 0x1a9   :  { %v610_v28 = vpop.f32.mrf.mxu0 }
 0x1aa   :  { %v611_v31 = vadd.f32 %v610_v28, %v529_v27  ;;  %v924_v27 = vld [vmem:[%s5679_s5 + $0x2f0] sm:$0xff]  ;;  %v921_v28 = vld [vmem:[%s5679_s5 + $0x2d8] sm:$0xff] }
 0x1b7   :  { %v679_v30 = vpop.f32.mrf.mxu1 }
 0x1b8   :  { %v4227_v32 = vadd.f32 %v679_v30, %v609_v29  ;;  %v920_v29 = vld [vmem:[%s5679_s5 + $0x2d0] sm:$0xff]  ;;  %v917_v30 = vld [vmem:[%s5679_s5 + $0x2b8] sm:$0xff] }
 0x1b9   :  { %v681_v33 = vpop.f32.mrf.mxu1 }
 0x1ba   :  { %v682_v5 = vadd.f32 %v681_v33, %v611_v31  ;;  %v826_v34 = vmax.f32 %v4227_v32, 0.0  ;;  %v916_v31 = vld [vmem:[%s5679_s5 + $0x2b0] sm:$0xff] }
 0x1bb   :  { %v1012_v32 = vld [vmem:[%s5679_s5 + $0x5b0] sm:$0xff] }
 0x1bc   :  { %v827_v13 = vmax.f32 %v682_v5, 0.0  ;;  %v913_v5 = vld [vmem:[%s5679_s5 + $0x298] sm:$0xff] }
 0x1be   :  { %1172 = vmatprep.mubr.f32.mxu0 %v827_v13 }
 0x1bf   :  { %1173 = vmatmul.mubr.f32.vlgmr.msra.gmra.mxu0 %v826_v34 }
 0x1c0   :  { %1251 = vmatpush1.msra.mxu0 %v892_v35  ;;  %1314 = vmatprep.mubr.f32.mxu0 %v827_v13  ;;  %v912_v13 = vld [vmem:[%s5679_s5 + $0x290] sm:$0xff]  ;;  %v533_v35 = vrot.slane %v4221_v24, %v3450_v56 }
 0x1c1   :  { %1252 = vmatprep.subr.mxu0 %v889_v36  ;;  %v909_v36 = vld [vmem:[%s5679_s5 + $0x278] sm:$0xff] }
 0x1c2   :  { %1253 = vmatpush1.msra.mxu0 %v888_v37  ;;  %v537_v37 = vrot.slane %v4221_v24, %v3455_v58  ;;  %v901_v24 = vld [vmem:[%s5679_s5 + $0x238] sm:$0xff] }
 0x1c3   :  { %1254 = vmatprep.subr.mxu0 %v885_v38  ;;  %v908_v38 = vld [vmem:[%s5679_s5 + $0x270] sm:$0xff] }
 0x1c4   :  { %1255 = vmatpush1.msra.mxu0 %v884_v39 }
 0x1c5   :  { %1256 = vmatprep.subr.mxu0 %v881_v41  ;;  %v905_v41 = vld [vmem:[%s5679_s5 + $0x258] sm:$0xff] }
 0x1c6   :  { %1257 = vmatpush1.msra.mxu0 %v880_v43  ;;  %v904_v43 = vld [vmem:[%s5679_s5 + $0x250] sm:$0xff] }
 0x1c7   :  { %1258 = vmatprep.subr.mxu0 %v877_v44 }
 0x1c8   :  { %1259 = vmatpush1.msra.mxu0 %v876_v45 }
 0x1c9   :  { %1260 = vmatprep.subr.mxu0 %v873_v47 }
 0x1ca   :  { %1261 = vmatpush1.msra.mxu0 %v872_v48  ;;  %v900_v48 = vld [vmem:[%s5679_s5 + $0x230] sm:$0xff] }
 0x1cb   :  { %1262 = vmatprep.subr.mxu0 %v869_v49 }
 0x1cc   :  { %1263 = vmatpush1.msra.mxu0 %v868_v51 }
 0x1cd   :  { %1264 = vmatprep.subr.mxu0 %v865_v52  ;;  %v897_v52 = vld [vmem:[%s5679_s5 + $0x218] sm:$0xff] }
 0x1ce   :  { %1265 = vmatpush1.msra.mxu0 %v864_v53 }
 0x1cf   :  { %1266 = vmatprep.subr.mxu0 %v861_v54  ;;  %v896_v54 = vld [vmem:[%s5679_s5 + $0x210] sm:$0xff] }
 0x1d0   :  { %1267 = vmatpush1.msra.mxu0 %v860_v55 }
 0x1d1   :  { %1268 = vmatprep.subr.mxu0 %v857_v57 }
 0x1d2   :  { %1269 = vmatpush1.msra.mxu0 %v856_v59  ;;  %v1020_v59 = vld [vmem:[%s5679_s5 + $0x5f0] sm:$0xff] }
 0x1d3   :  { %1270 = vmatprep.subr.mxu0 %v853_v60  ;;  %v1017_v60 = vld [vmem:[%s5679_s5 + $0x5d8] sm:$0xff] }
 0x1d4   :  { %1271 = vmatpush1.msra.mxu0 %v852_v61  ;;  %v1016_v61 = vld [vmem:[%s5679_s5 + $0x5d0] sm:$0xff] }
 0x1d5   :  { %1272 = vmatprep.subr.mxu0 %v849_v62  ;;  %v1013_v62 = vld [vmem:[%s5679_s5 + $0x5b8] sm:$0xff] }
 0x1d6   :  { %1273 = vmatpush1.msra.mxu0 %v848_v63  ;;  %v1456_v63 = vld [vmem:[#allocation2 + $0x1e0] sm:$0xff] }
 0x1d7   :  { %1274 = vmatprep.subr.mxu0 %v845_v1  ;;  %v1453_v1 = vld [vmem:[#allocation2 + $0x1c8] sm:$0xff] }
 0x1d8   :  { %1275 = vmatpush1.msra.mxu0 %v844_v2  ;;  %v1009_v2 = vld [vmem:[%s5679_s5 + $0x598] sm:$0xff] }
 0x1d9   :  { %1276 = vmatprep.subr.mxu0 %v841_v3  ;;  %v1452_v3 = vld [vmem:[#allocation2 + $0x1c0] sm:$0xff] }
 0x1da   :  { %1277 = vmatpush1.msra.mxu0 %v840_v46  ;;  %v1008_v46 = vld [vmem:[%s5679_s5 + $0x590] sm:$0xff] }
 0x1db   :  { %1278 = vmatprep.subr.mxu0 %v837_v50  ;;  %v1449_v50 = vld [vmem:[#allocation2 + $0x1a8] sm:$0xff] }
 0x1dc   :  { %1279 = vmatpush1.msra.mxu0 %v836_v4  ;;  %v1005_v4 = vld [vmem:[%s5679_s5 + $0x578] sm:$0xff] }
 0x1dd   :  { %1280 = vmatprep.subr.mxu0 %v833_v6  ;;  %v1448_v6 = vld [vmem:[#allocation2 + $0x1a0] sm:$0xff] }
 0x1de   :  { %1281 = vmatpush1.msra.mxu0 %v832_v7  ;;  %v1004_v7 = vld [vmem:[%s5679_s5 + $0x570] sm:$0xff] }
 0x1df   :  { %1282 = vmatprep.subr.mxu0 %v957_v8  ;;  %v1445_v8 = vld [vmem:[#allocation2 + $0x188] sm:$0xff] }
 0x1e0   :  { %1283 = vmatpush2.msra.mxu0 %v956_v9  ;;  %v1001_v9 = vld [vmem:[%s5679_s5 + $0x558] sm:$0xff] }
 0x1e1   :  { %1284 = vmatprep.subr.mxu0 %v953_v10  ;;  %v1444_v10 = vld [vmem:[#allocation2 + $0x180] sm:$0xff] }
 0x1e2   :  { %1285 = vmatpush2.msra.mxu0 %v952_v11  ;;  %v1000_v11 = vld [vmem:[%s5679_s5 + $0x550] sm:$0xff] }
 0x1e3   :  { %1286 = vmatprep.subr.mxu0 %v949_v12  ;;  %v1441_v12 = vld [vmem:[#allocation2 + $0x168] sm:$0xff] }
 0x1e4   :  { %1287 = vmatpush2.msra.mxu0 %v948_v14  ;;  %v997_v14 = vld [vmem:[%s5679_s5 + $0x538] sm:$0xff] }
 0x1e5   :  { %1288 = vmatprep.subr.mxu0 %v945_v15  ;;  %v1440_v15 = vld [vmem:[#allocation2 + $0x160] sm:$0xff] }
 0x1e6   :  { %1289 = vmatpush2.msra.mxu0 %v944_v16  ;;  %v996_v16 = vld [vmem:[%s5679_s5 + $0x530] sm:$0xff] }
 0x1e7   :  { %1290 = vmatprep.subr.mxu0 %v941_v17  ;;  %v750_v33 = vpop.f32.mrf.mxu0  ;;  %v1437_v17 = vld [vmem:[#allocation2 + $0x148] sm:$0xff] }
 0x1e8   :  { %1291 = vmatpush2.msra.mxu0 %v940_v18  ;;  %v751_v44 = vadd.f32 %v750_v33, %v533_v35  ;;  %v993_v18 = vld [vmem:[%s5679_s5 + $0x518] sm:$0xff]  ;;  %v1424_v33 = vld [vmem:[#allocation2 + $0xe0] sm:$0xff] }
 0x1e9   :  { %1292 = vmatprep.subr.mxu0 %v937_v19  ;;  %v752_v39 = vpop.f32.mrf.mxu0  ;;  %v1436_v19 = vld [vmem:[#allocation2 + $0x140] sm:$0xff]  ;;  %v977_v35 = vld [vmem:[%s5679_s5 + $0x498] sm:$0xff] }
 0x1ea   :  { %1293 = vmatpush2.msra.mxu0 %v936_v20  ;;  %v753_v47 = vadd.f32 %v752_v39, %v537_v37  ;;  %v992_v20 = vld [vmem:[%s5679_s5 + $0x510] sm:$0xff]  ;;  %v973_v39 = vld [vmem:[%s5679_s5 + $0x478] sm:$0xff] }
 0x1eb   :  { %1294 = vmatprep.subr.mxu0 %v933_v21  ;;  %v1433_v21 = vld [vmem:[#allocation2 + $0x128] sm:$0xff]  ;;  %v976_v37 = vld [vmem:[%s5679_s5 + $0x490] sm:$0xff] }
 0x1ec   :  { %1295 = vmatpush2.msra.mxu0 %v932_v22  ;;  %v989_v22 = vld [vmem:[%s5679_s5 + $0x4f8] sm:$0xff] }
 0x1ed   :  { %1296 = vmatprep.subr.mxu0 %v929_v23  ;;  %v1432_v23 = vld [vmem:[#allocation2 + $0x120] sm:$0xff] }
 0x1ee   :  { %1297 = vmatpush2.msra.mxu0 %v928_v25  ;;  %v988_v25 = vld [vmem:[%s5679_s5 + $0x4f0] sm:$0xff] }
 0x1ef   :  { %1298 = vmatprep.subr.mxu0 %v925_v26  ;;  %v1429_v26 = vld [vmem:[#allocation2 + $0x108] sm:$0xff] }
 0x1f0   :  { %1299 = vmatpush2.msra.mxu0 %v924_v27  ;;  %v985_v27 = vld [vmem:[%s5679_s5 + $0x4d8] sm:$0xff] }
 0x1f1   :  { %1300 = vmatprep.subr.mxu0 %v921_v28  ;;  %v1428_v28 = vld [vmem:[#allocation2 + $0x100] sm:$0xff] }
 0x1f2   :  { %1301 = vmatpush2.msra.mxu0 %v920_v29  ;;  %v984_v29 = vld [vmem:[%s5679_s5 + $0x4d0] sm:$0xff] }
 0x1f3   :  { %1302 = vmatprep.subr.mxu0 %v917_v30  ;;  %v1425_v30 = vld [vmem:[#allocation2 + $0xe8] sm:$0xff] }
 0x1f4   :  { %1303 = vmatpush2.msra.mxu0 %v916_v31  ;;  %v981_v31 = vld [vmem:[%s5679_s5 + $0x4b8] sm:$0xff] }
 0x1f5   :  { %1304 = vmatprep.subr.mxu0 %v913_v5  ;;  %v980_v5 = vld [vmem:[%s5679_s5 + $0x4b0] sm:$0xff] }
 0x1f6   :  { %1305 = vmatpush2.msra.mxu0 %v912_v13  ;;  %v1421_v13 = vld [vmem:[#allocation2 + $0xc8] sm:$0xff] }
 0x1f7   :  { %1306 = vmatprep.subr.mxu0 %v909_v36  ;;  %v1420_v36 = vld [vmem:[#allocation2 + $0xc0] sm:$0xff] }
 0x1f8   :  { %v821_v45 = vpop.f32.mrf.mxu1  ;;  %1307 = vmatpush2.msra.mxu0 %v908_v38  ;;  %v1417_v38 = vld [vmem:[#allocation2 + $0xa8] sm:$0xff] }
 0x1f9   :  { %1308 = vmatprep.subr.mxu0 %v905_v41  ;;  %v4419_v49 = vadd.f32 %v821_v45, %v751_v44  ;;  %v1416_v41 = vld [vmem:[#allocation2 + $0xa0] sm:$0xff]  ;;  %v1413_v44 = vld [vmem:[#allocation2 + $0x88] sm:$0xff]  ;;  %v969_v45 = vld [vmem:[%s5679_s5 + $0x458] sm:$0xff] }
 0x1fa   :  { %v823_v51 = vpop.f32.mrf.mxu1  ;;  %1309 = vmatpush2.msra.mxu0 %v904_v43  ;;  %v972_v43 = vld [vmem:[%s5679_s5 + $0x470] sm:$0xff] }
 0x1fb   :  { %v824_v53 = vadd.f32 %v823_v51, %v753_v47  ;;  %1310 = vmatprep.subr.mxu0 %v901_v24  ;;  %v828_v57 = vmax.f32 %v4419_v49, 0.0  ;;  %v1412_v24 = vld [vmem:[#allocation2 + $0x80] sm:$0xff]  ;;  %v968_v47 = vld [vmem:[%s5679_s5 + $0x450] sm:$0xff]  ;;  %v965_v51 = vld [vmem:[%s5679_s5 + $0x438] sm:$0xff] }
 0x1fc   :  { %1311 = vmatpush2.msra.mxu0 %v900_v48  ;;  %v1409_v48 = vld [vmem:[#allocation2 + $0x68] sm:$0xff] }
 0x1fd   :  { %v829_v55 = vmax.f32 %v824_v53, 0.0  ;;  %1312 = vmatprep.subr.mxu0 %v897_v52  ;;  %v1408_v52 = vld [vmem:[#allocation2 + $0x60] sm:$0xff]  ;;  %v964_v53 = vld [vmem:[%s5679_s5 + $0x430] sm:$0xff]  ;;  %v1581_v49 = vld [vmem:[#allocation2 + $0x5c8] sm:$0xff] }
 0x1fe   :  { %1313 = vmatpush2.msra.mxu0 %v896_v54  ;;  %v1405_v54 = vld [vmem:[#allocation2 + $0x48] sm:$0xff] }
 0x1ff   :  { %1243 = vmatprep.mubr.f32.mxu1 %v829_v55  ;;  %1315 = vmatmul.mubr.f32.vlgmr.msra.gmra.mxu0 %v826_v34  ;;  %v1457_v34 = vld [vmem:[#allocation2 + $0x1e8] sm:$0xff] }
 0x200   :  { %1244 = vmatmul.mubr.f32.vlgmr.msra.gmra.mxu1 %v828_v57  ;;  %1674 = vmatprep.subr.mxu0 %v1457_v34  ;;  %v1084_v34 = vld [vmem:[%s5679_s5 + $0x7f0] sm:$0xff] }
 0x201   :  { %1322 = vmatpush1.msra.mxu1 %v1020_v59  ;;  %1385 = vmatprep.mubr.f32.mxu1 %v829_v55  ;;  %v961_v55 = vld [vmem:[%s5679_s5 + $0x418] sm:$0xff]  ;;  %v1404_v59 = vld [vmem:[#allocation2 + $0x40] sm:$0xff] }
 0x202   :  { %1323 = vmatprep.subr.mxu1 %v1017_v60  ;;  %1675 = vmatpush1.msra.mxu0 %v1456_v63  ;;  %v960_v60 = vld [vmem:[%s5679_s5 + $0x410] sm:$0xff]  ;;  %v1397_v63 = vld [vmem:[#allocation2 + $0x8] sm:$0xff] }
 0x203   :  { %1324 = vmatpush1.msra.mxu1 %v1016_v61  ;;  %1676 = vmatprep.subr.mxu0 %v1453_v1  ;;  %v1401_v61 = vld [vmem:[#allocation2 + $0x28] sm:$0xff]  ;;  %v1081_v1 = vld [vmem:[%s5679_s5 + $0x7d8] sm:$0xff] }
 0x204   :  { %1325 = vmatprep.subr.mxu1 %v1013_v62  ;;  %1677 = vmatpush1.msra.mxu0 %v1452_v3  ;;  %v1085_v62 = vld [vmem:[%s5679_s5 + $0x7f8] sm:$0xff]  ;;  %v1080_v3 = vld [vmem:[%s5679_s5 + $0x7d0] sm:$0xff] }
 0x205   :  { %1326 = vmatpush1.msra.mxu1 %v1012_v32  ;;  %1678 = vmatprep.subr.mxu0 %v1449_v50  ;;  %v1400_v32 = vld [vmem:[#allocation2 + $0x20] sm:$0xff]  ;;  %v1077_v50 = vld [vmem:[%s5679_s5 + $0x7b8] sm:$0xff] }
 0x206   :  { %1327 = vmatprep.subr.mxu1 %v1009_v2  ;;  %1679 = vmatpush1.msra.mxu0 %v1448_v6  ;;  %v1396_v2 = vld [vmem:[#allocation2] sm:$0xff]  ;;  %v1076_v6 = vld [vmem:[%s5679_s5 + $0x7b0] sm:$0xff] }
 0x207   :  { %1328 = vmatpush1.msra.mxu1 %v1008_v46  ;;  %1680 = vmatprep.subr.mxu0 %v1445_v8  ;;  %v1521_v46 = vld [vmem:[#allocation2 + $0x3e8] sm:$0xff]  ;;  %v1073_v8 = vld [vmem:[%s5679_s5 + $0x798] sm:$0xff] }
 0x208   :  { %1329 = vmatprep.subr.mxu1 %v1005_v4  ;;  %1681 = vmatpush1.msra.mxu0 %v1444_v10  ;;  %v1520_v4 = vld [vmem:[#allocation2 + $0x3e0] sm:$0xff]  ;;  %v1072_v10 = vld [vmem:[%s5679_s5 + $0x790] sm:$0xff] }
 0x209   :  { %1330 = vmatpush1.msra.mxu1 %v1004_v7  ;;  %1682 = vmatprep.subr.mxu0 %v1441_v12  ;;  %v1517_v7 = vld [vmem:[#allocation2 + $0x3c8] sm:$0xff]  ;;  %v1069_v12 = vld [vmem:[%s5679_s5 + $0x778] sm:$0xff] }
 0x20a   :  { %1331 = vmatprep.subr.mxu1 %v1001_v9  ;;  %1683 = vmatpush1.msra.mxu0 %v1440_v15  ;;  %v1516_v9 = vld [vmem:[#allocation2 + $0x3c0] sm:$0xff]  ;;  %v1068_v15 = vld [vmem:[%s5679_s5 + $0x770] sm:$0xff] }
 0x20b   :  { %1332 = vmatpush1.msra.mxu1 %v1000_v11  ;;  %1684 = vmatprep.subr.mxu0 %v1437_v17  ;;  %v1513_v11 = vld [vmem:[#allocation2 + $0x3a8] sm:$0xff]  ;;  %v1065_v17 = vld [vmem:[%s5679_s5 + $0x758] sm:$0xff] }
 0x20c   :  { %1333 = vmatprep.subr.mxu1 %v997_v14  ;;  %1685 = vmatpush1.msra.mxu0 %v1436_v19  ;;  %v1512_v14 = vld [vmem:[#allocation2 + $0x3a0] sm:$0xff]  ;;  %v1064_v19 = vld [vmem:[%s5679_s5 + $0x750] sm:$0xff] }
 0x20d   :  { %1334 = vmatpush1.msra.mxu1 %v996_v16  ;;  %1686 = vmatprep.subr.mxu0 %v1433_v21  ;;  %v1509_v16 = vld [vmem:[#allocation2 + $0x388] sm:$0xff]  ;;  %v1061_v21 = vld [vmem:[%s5679_s5 + $0x738] sm:$0xff] }
 0x20e   :  { %1335 = vmatprep.subr.mxu1 %v993_v18  ;;  %1687 = vmatpush1.msra.mxu0 %v1432_v23  ;;  %v1508_v18 = vld [vmem:[#allocation2 + $0x380] sm:$0xff]  ;;  %v1060_v23 = vld [vmem:[%s5679_s5 + $0x730] sm:$0xff] }
 0x20f   :  { %1336 = vmatpush1.msra.mxu1 %v992_v20  ;;  %1688 = vmatprep.subr.mxu0 %v1429_v26  ;;  %v1505_v20 = vld [vmem:[#allocation2 + $0x368] sm:$0xff]  ;;  %v1057_v26 = vld [vmem:[%s5679_s5 + $0x718] sm:$0xff] }
 0x210   :  { %1337 = vmatprep.subr.mxu1 %v989_v22  ;;  %1689 = vmatpush1.msra.mxu0 %v1428_v28  ;;  %v1504_v22 = vld [vmem:[#allocation2 + $0x360] sm:$0xff]  ;;  %v1056_v28 = vld [vmem:[%s5679_s5 + $0x710] sm:$0xff] }
 0x211   :  { %1338 = vmatpush1.msra.mxu1 %v988_v25  ;;  %1690 = vmatprep.subr.mxu0 %v1425_v30  ;;  %v1501_v25 = vld [vmem:[#allocation2 + $0x348] sm:$0xff]  ;;  %v1053_v30 = vld [vmem:[%s5679_s5 + $0x6f8] sm:$0xff] }
 0x212   :  { %1339 = vmatprep.subr.mxu1 %v985_v27  ;;  %1691 = vmatpush1.msra.mxu0 %v1424_v33  ;;  %v1500_v27 = vld [vmem:[#allocation2 + $0x340] sm:$0xff]  ;;  %v1052_v33 = vld [vmem:[%s5679_s5 + $0x6f0] sm:$0xff] }
 0x213   :  { %1340 = vmatpush1.msra.mxu1 %v984_v29  ;;  %1692 = vmatprep.subr.mxu0 %v1421_v13  ;;  %v1497_v29 = vld [vmem:[#allocation2 + $0x328] sm:$0xff]  ;;  %v1049_v13 = vld [vmem:[%s5679_s5 + $0x6d8] sm:$0xff] }
 0x214   :  { %1341 = vmatprep.subr.mxu1 %v981_v31  ;;  %1693 = vmatpush1.msra.mxu0 %v1420_v36  ;;  %v1496_v31 = vld [vmem:[#allocation2 + $0x320] sm:$0xff]  ;;  %v1048_v36 = vld [vmem:[%s5679_s5 + $0x6d0] sm:$0xff] }
 0x215   :  { %1342 = vmatpush1.msra.mxu1 %v980_v5  ;;  %1694 = vmatprep.subr.mxu0 %v1417_v38  ;;  %v1493_v5 = vld [vmem:[#allocation2 + $0x308] sm:$0xff]  ;;  %v1045_v38 = vld [vmem:[%s5679_s5 + $0x6b8] sm:$0xff] }
 0x216   :  { %1343 = vmatprep.subr.mxu1 %v977_v35  ;;  %1695 = vmatpush1.msra.mxu0 %v1416_v41  ;;  %v1492_v35 = vld [vmem:[#allocation2 + $0x300] sm:$0xff]  ;;  %v1044_v41 = vld [vmem:[%s5679_s5 + $0x6b0] sm:$0xff] }
 0x217   :  { %1344 = vmatpush1.msra.mxu1 %v976_v37  ;;  %1696 = vmatprep.subr.mxu0 %v1413_v44  ;;  %v1489_v37 = vld [vmem:[#allocation2 + $0x2e8] sm:$0xff]  ;;  %v1041_v44 = vld [vmem:[%s5679_s5 + $0x698] sm:$0xff] }
 0x218   :  { %1345 = vmatprep.subr.mxu1 %v973_v39  ;;  %1697 = vmatpush1.msra.mxu0 %v1412_v24  ;;  %v1488_v39 = vld [vmem:[#allocation2 + $0x2e0] sm:$0xff]  ;;  %v1040_v24 = vld [vmem:[%s5679_s5 + $0x690] sm:$0xff] }
 0x219   :  { %1346 = vmatpush1.msra.mxu1 %v972_v43  ;;  %1698 = vmatprep.subr.mxu0 %v1409_v48  ;;  %v1485_v43 = vld [vmem:[#allocation2 + $0x2c8] sm:$0xff]  ;;  %v1037_v48 = vld [vmem:[%s5679_s5 + $0x678] sm:$0xff] }
 0x21a   :  { %1347 = vmatprep.subr.mxu1 %v969_v45  ;;  %1699 = vmatpush1.msra.mxu0 %v1408_v52  ;;  %v1484_v45 = vld [vmem:[#allocation2 + $0x2c0] sm:$0xff]  ;;  %v1036_v52 = vld [vmem:[%s5679_s5 + $0x670] sm:$0xff] }
 0x21b   :  { %1348 = vmatpush1.msra.mxu1 %v968_v47  ;;  %1700 = vmatprep.subr.mxu0 %v1405_v54  ;;  %v1481_v47 = vld [vmem:[#allocation2 + $0x2a8] sm:$0xff]  ;;  %v1033_v54 = vld [vmem:[%s5679_s5 + $0x658] sm:$0xff] }
 0x21c   :  { %1349 = vmatprep.subr.mxu1 %v965_v51  ;;  %1701 = vmatpush1.msra.mxu0 %v1404_v59  ;;  %v1480_v51 = vld [vmem:[#allocation2 + $0x2a0] sm:$0xff]  ;;  %v1032_v59 = vld [vmem:[%s5679_s5 + $0x650] sm:$0xff] }
 0x21d   :  { %1350 = vmatpush1.msra.mxu1 %v964_v53  ;;  %1702 = vmatprep.subr.mxu0 %v1401_v61  ;;  %v1477_v53 = vld [vmem:[#allocation2 + $0x288] sm:$0xff]  ;;  %v1029_v61 = vld [vmem:[%s5679_s5 + $0x638] sm:$0xff] }
 0x21e   :  { %1351 = vmatprep.subr.mxu1 %v961_v55  ;;  %1703 = vmatpush1.msra.mxu0 %v1400_v32  ;;  %v1476_v55 = vld [vmem:[#allocation2 + $0x280] sm:$0xff]  ;;  %v1025_v32 = vld [vmem:[%s5679_s5 + $0x618] sm:$0xff] }
 0x21f   :  { %1352 = vmatpush1.msra.mxu1 %v960_v60  ;;  %1704 = vmatprep.subr.mxu0 %v1397_v63  ;;  %v1473_v60 = vld [vmem:[#allocation2 + $0x268] sm:$0xff]  ;;  %v1472_v63 = vld [vmem:[#allocation2 + $0x260] sm:$0xff] }
 0x220   :  { %1353 = vmatprep.subr.mxu1 %v1085_v62  ;;  %1705 = vmatpush1.msra.mxu0 %v1396_v2  ;;  %v1028_v62 = vld [vmem:[%s5679_s5 + $0x630] sm:$0xff]  ;;  %v1468_v2 = vld [vmem:[#allocation2 + $0x240] sm:$0xff] }
 0x221   :  { %1354 = vmatpush2.msra.mxu1 %v1084_v34  ;;  %1706 = vmatprep.subr.mxu0 %v1521_v46  ;;  %v1024_v34 = vld [vmem:[%s5679_s5 + $0x610] sm:$0xff]  ;;  %v1464_v46 = vld [vmem:[#allocation2 + $0x220] sm:$0xff]  ;;  %s2749_s5 = sshll.u32 %s2850_s24, 4  ;;  %s2750_s5 = int_to_ptr.vmem [resolvable:$true] %s2749_s5 }
 0x222   :  { %1355 = vmatprep.subr.mxu1 %v1081_v1  ;;  %1707 = vmatpush2.msra.mxu0 %v1520_v4  ;;  %v1469_v1 = vld [vmem:[#allocation2 + $0x248] sm:$0xff]  ;;  %v1460_v4 = vld [vmem:[#allocation2 + $0x200] sm:$0xff]  ;;  %s2822_s25 = scalar_lea.vmem %s2750_s5, 32  ;;  %p2827_p6 = scmp.lt.s32.totalorder %s2750_s5, %s2750_s5 }
 0x223   :  { %1356 = vmatpush2.msra.mxu1 %v1080_v3  ;;  %1708 = vmatprep.subr.mxu0 %v1517_v7  ;;  %v1465_v3 = vld [vmem:[#allocation2 + $0x228] sm:$0xff]  ;;  %v1584_v7 = vld [vmem:[#allocation2 + $0x5e0] sm:$0xff]  ;;  %p2823_p5 = scmp.ne.s32.totalorder %s2750_s5, %s2822_s25  ;;  %p2828_p7 = scmp.lt.s32.totalorder %s2822_s25, %s2822_s25 }
 0x224   :  { %1357 = vmatprep.subr.mxu1 %v1077_v50  ;;  %1709 = vmatpush2.msra.mxu0 %v1516_v9  ;;  %v1461_v50 = vld [vmem:[#allocation2 + $0x208] sm:$0xff] }
 0x225   :  { %1358 = vmatpush2.msra.mxu1 %v1076_v6  ;;  %1710 = vmatprep.subr.mxu0 %v1513_v11  ;;  %v1585_v6 = vld [vmem:[#allocation2 + $0x5e8] sm:$0xff]  ;;  %p2829_p8 = por %p2828_p7, %p2827_p6 }
 0x226   :  { %1359 = vmatprep.subr.mxu1 %v1073_v8  ;;  %1711 = vmatpush2.msra.mxu0 %v1512_v14  ;;  %v1459_v8 = vld [vmem:[#allocation2 + $0x1f8] sm:$0xff]  ;;  %v1577_v9 = vld [vmem:[#allocation2 + $0x5a8] sm:$0xff] }
 0x227   :  { %1360 = vmatpush2.msra.mxu1 %v1072_v10  ;;  %1712 = vmatprep.subr.mxu0 %v1509_v16  ;;  %v1576_v10 = vld [vmem:[#allocation2 + $0x5a0] sm:$0xff]  ;;  %v1573_v11 = vld [vmem:[#allocation2 + $0x588] sm:$0xff]  ;;  %p2830_p9 = pnand %p2829_p8, %p2823_p5 }
 0x228   :  { %1361 = vmatprep.subr.mxu1 %v1069_v12  ;;  %1713 = vmatpush2.msra.mxu0 %v1508_v18  ;;  %v1572_v12 = vld [vmem:[#allocation2 + $0x580] sm:$0xff]  ;;  %v1569_v14 = vld [vmem:[#allocation2 + $0x568] sm:$0xff] }
 0x229   :  { %1362 = vmatpush2.msra.mxu1 %v1068_v15  ;;  %1714 = vmatprep.subr.mxu0 %v1505_v20  ;;  %v1568_v15 = vld [vmem:[#allocation2 + $0x560] sm:$0xff]  ;;  %v1565_v16 = vld [vmem:[#allocation2 + $0x548] sm:$0xff] }
 0x22a   :  { %1363 = vmatprep.subr.mxu1 %v1065_v17  ;;  %1715 = vmatpush2.msra.mxu0 %v1504_v22  ;;  %v1564_v17 = vld [vmem:[#allocation2 + $0x540] sm:$0xff]  ;;  %v1561_v18 = vld [vmem:[#allocation2 + $0x528] sm:$0xff] }
 0x22b   :  { %1364 = vmatpush2.msra.mxu1 %v1064_v19  ;;  %1716 = vmatprep.subr.mxu0 %v1501_v25  ;;  %v1560_v19 = vld [vmem:[#allocation2 + $0x520] sm:$0xff]  ;;  %v1557_v20 = vld [vmem:[#allocation2 + $0x508] sm:$0xff] }
 0x22c   :  { %1365 = vmatprep.subr.mxu1 %v1061_v21  ;;  %1717 = vmatpush2.msra.mxu0 %v1500_v27  ;;  %v1556_v21 = vld [vmem:[#allocation2 + $0x500] sm:$0xff]  ;;  %v1553_v22 = vld [vmem:[#allocation2 + $0x4e8] sm:$0xff] }
 0x22d   :  { %1366 = vmatpush2.msra.mxu1 %v1060_v23  ;;  %1718 = vmatprep.subr.mxu0 %v1497_v29  ;;  %v1552_v23 = vld [vmem:[#allocation2 + $0x4e0] sm:$0xff]  ;;  %v1549_v25 = vld [vmem:[#allocation2 + $0x4c8] sm:$0xff] }
 0x22e   :  { %1367 = vmatprep.subr.mxu1 %v1057_v26  ;;  %1719 = vmatpush2.msra.mxu0 %v1496_v31  ;;  %v1548_v26 = vld [vmem:[#allocation2 + $0x4c0] sm:$0xff]  ;;  %v1545_v27 = vld [vmem:[#allocation2 + $0x4a8] sm:$0xff] }
 0x22f   :  { %1368 = vmatpush2.msra.mxu1 %v1056_v28  ;;  %1720 = vmatprep.subr.mxu0 %v1493_v5  ;;  %v1544_v28 = vld [vmem:[#allocation2 + $0x4a0] sm:$0xff]  ;;  %v1541_v29 = vld [vmem:[#allocation2 + $0x488] sm:$0xff] }
 0x230   :  { %1369 = vmatprep.subr.mxu1 %v1053_v30  ;;  %1721 = vmatpush2.msra.mxu0 %v1492_v35  ;;  %v1540_v30 = vld [vmem:[#allocation2 + $0x480] sm:$0xff]  ;;  %v1537_v31 = vld [vmem:[#allocation2 + $0x468] sm:$0xff] }
 0x231   :  { %1370 = vmatpush2.msra.mxu1 %v1052_v33  ;;  %1722 = vmatprep.subr.mxu0 %v1489_v37  ;;  %v1536_v33 = vld [vmem:[#allocation2 + $0x460] sm:$0xff]  ;;  %v1533_v5 = vld [vmem:[#allocation2 + $0x448] sm:$0xff] }
 0x232   :  { %1371 = vmatprep.subr.mxu1 %v1049_v13  ;;  %1723 = vmatpush2.msra.mxu0 %v1488_v39  ;;  %v1532_v13 = vld [vmem:[#allocation2 + $0x440] sm:$0xff]  ;;  %v1529_v35 = vld [vmem:[#allocation2 + $0x428] sm:$0xff] }
 0x233   :  { %1372 = vmatpush2.msra.mxu1 %v1048_v36  ;;  %1724 = vmatprep.subr.mxu0 %v1485_v43  ;;  %v1528_v36 = vld [vmem:[#allocation2 + $0x420] sm:$0xff]  ;;  %v1525_v37 = vld [vmem:[#allocation2 + $0x408] sm:$0xff] }
 0x234   :  { %1373 = vmatprep.subr.mxu1 %v1045_v38  ;;  %1725 = vmatpush2.msra.mxu0 %v1484_v45  ;;  %v1524_v38 = vld [vmem:[#allocation2 + $0x400] sm:$0xff]  ;;  %v1649_v39 = vld [vmem:[#allocation2 + $0x7e8] sm:$0xff] }
 0x235   :  { %1374 = vmatpush2.msra.mxu1 %v1044_v41  ;;  %1726 = vmatprep.subr.mxu0 %v1481_v47  ;;  %v1648_v41 = vld [vmem:[#allocation2 + $0x7e0] sm:$0xff]  ;;  %v1645_v43 = vld [vmem:[#allocation2 + $0x7c8] sm:$0xff] }
 0x236   :  { %1375 = vmatprep.subr.mxu1 %v1041_v44  ;;  %1727 = vmatpush2.msra.mxu0 %v1480_v51  ;;  %v1644_v44 = vld [vmem:[#allocation2 + $0x7c0] sm:$0xff]  ;;  %v1641_v45 = vld [vmem:[#allocation2 + $0x7a8] sm:$0xff] }
 0x237   :  { %1376 = vmatpush2.msra.mxu1 %v1040_v24  ;;  %1728 = vmatprep.subr.mxu0 %v1477_v53  ;;  %v1640_v24 = vld [vmem:[#allocation2 + $0x7a0] sm:$0xff]  ;;  %v1637_v47 = vld [vmem:[#allocation2 + $0x788] sm:$0xff] }
 0x238   :  { %1377 = vmatprep.subr.mxu1 %v1037_v48  ;;  %1729 = vmatpush2.msra.mxu0 %v1476_v55  ;;  %v1636_v48 = vld [vmem:[#allocation2 + $0x780] sm:$0xff]  ;;  %v1633_v51 = vld [vmem:[#allocation2 + $0x768] sm:$0xff] }
 0x239   :  { %1378 = vmatpush2.msra.mxu1 %v1036_v52  ;;  %1730 = vmatprep.subr.mxu0 %v1473_v60  ;;  %v1632_v52 = vld [vmem:[#allocation2 + $0x760] sm:$0xff]  ;;  %v1629_v53 = vld [vmem:[#allocation2 + $0x748] sm:$0xff] }
 0x23a   :  { %1379 = vmatprep.subr.mxu1 %v1033_v54  ;;  %1731 = vmatpush2.msra.mxu0 %v1472_v63  ;;  %v1628_v54 = vld [vmem:[#allocation2 + $0x740] sm:$0xff]  ;;  %v1625_v55 = vld [vmem:[#allocation2 + $0x728] sm:$0xff] }
 0x23b   :  { %1380 = vmatpush2.msra.mxu1 %v1032_v59  ;;  %1732 = vmatprep.subr.mxu0 %v1469_v1  ;;  %v1624_v59 = vld [vmem:[#allocation2 + $0x720] sm:$0xff]  ;;  %v1621_v60 = vld [vmem:[#allocation2 + $0x708] sm:$0xff] }
 0x23c   :  { %1381 = vmatprep.subr.mxu1 %v1029_v61  ;;  %1733 = vmatpush2.msra.mxu0 %v1468_v2  ;;  %v1620_v61 = vld [vmem:[#allocation2 + $0x700] sm:$0xff]  ;;  %v1609_v1 = vld [vmem:[#allocation2 + $0x6a8] sm:$0xff] }
 0x23d   :  { %1382 = vmatpush2.msra.mxu1 %v1028_v62  ;;  %1734 = vmatprep.subr.mxu0 %v1465_v3  ;;  %v1617_v62 = vld [vmem:[#allocation2 + $0x6e8] sm:$0xff]  ;;  %v1612_v63 = vld [vmem:[#allocation2 + $0x6c0] sm:$0xff] }
 0x23e   :  { %1383 = vmatprep.subr.mxu1 %v1025_v32  ;;  %1735 = vmatpush2.msra.mxu0 %v1464_v46  ;;  %v1616_v32 = vld [vmem:[#allocation2 + $0x6e0] sm:$0xff]  ;;  %v1605_v3 = vld [vmem:[#allocation2 + $0x688] sm:$0xff] }
 0x23f   :  { %1384 = vmatpush2.msra.mxu1 %v1024_v34  ;;  %1736 = vmatprep.subr.mxu0 %v1461_v50  ;;  %v1613_v34 = vld [vmem:[#allocation2 + $0x6c8] sm:$0xff]  ;;  %v1608_v2 = vld [vmem:[#allocation2 + $0x6a0] sm:$0xff] }
 0x240   :  { %1386 = vmatmul.mubr.f32.vlgmr.msra.gmra.mxu1 %v828_v57  ;;  %1745 = vmatprep.subr.mxu1 %v1585_v6  ;;  %v1580_v57 = vld [vmem:[#allocation2 + $0x5c0] sm:$0xff]  ;;  %v1601_v50 = vld [vmem:[#allocation2 + $0x668] sm:$0xff] }
 0x241   :  { %1737 = vmatpush2.msra.mxu0 %v1460_v4  ;;  %1746 = vmatpush1.msra.mxu1 %v1584_v7  ;;  %v1604_v46 = vld [vmem:[#allocation2 + $0x680] sm:$0xff]  ;;  %v1597_v6 = vld [vmem:[#allocation2 + $0x648] sm:$0xff] }
 0x242   :  { %1816 = vmatprep.subr.mxu0 %v1459_v8  ;;  %1747 = vmatprep.subr.mxu1 %v1581_v49  ;;  %v1600_v4 = vld [vmem:[#allocation2 + $0x660] sm:$0xff]  ;;  %v1593_v8 = vld [vmem:[#allocation2 + $0x628] sm:$0xff] }
 0x243   :  { %1748 = vmatpush1.msra.mxu1 %v1580_v57  ;;  %v1596_v7 = vld [vmem:[#allocation2 + $0x640] sm:$0xff]  ;;  %v1589_v57 = vld [vmem:[#allocation2 + $0x608] sm:$0xff] }
 0x244   :  { %1749 = vmatprep.subr.mxu1 %v1577_v9  ;;  %v1592_v49 = vld [vmem:[#allocation2 + $0x620] sm:$0xff] }
 0x245   :  { %1750 = vmatpush1.msra.mxu1 %v1576_v10  ;;  %v1588_v9 = vld [vmem:[#allocation2 + $0x600] sm:$0xff]  ;;  %v1587_v10 = vld [vmem:[#allocation2 + $0x5f8] sm:$0xff] }
 0x246   :  { %1751 = vmatprep.subr.mxu1 %v1573_v11  ;;  %v4626_v11 = vld [vmem:[%s5680_s6] sm:$0xf] }
 0x247   :  { %1752 = vmatpush1.msra.mxu1 %v1572_v12 }
 0x248   :  { %1753 = vmatprep.subr.mxu1 %v1569_v14  ;;  %v1091_v14 = vrot.slane %v4626_v11, %v3421_v40 }
 0x249   :  { %1754 = vmatpush1.msra.mxu1 %v1568_v15  ;;  %v1095_v15 = vrot.slane %v4626_v11, %v3426_v42 }
 0x24a   :  { %1755 = vmatprep.subr.mxu1 %v1565_v16 }
 0x24b   :  { %1756 = vmatpush1.msra.mxu1 %v1564_v17 }
 0x24c   :  { %1757 = vmatprep.subr.mxu1 %v1561_v18 }
 0x24d   :  { %1758 = vmatpush1.msra.mxu1 %v1560_v19 }
 0x24e   :  { %1759 = vmatprep.subr.mxu1 %v1557_v20 }
 0x24f   :  { %1760 = vmatpush1.msra.mxu1 %v1556_v21 }
 0x250   :  { %1761 = vmatprep.subr.mxu1 %v1553_v22 }
 0x251   :  { %1762 = vmatpush1.msra.mxu1 %v1552_v23 }
 0x252   :  { %1763 = vmatprep.subr.mxu1 %v1549_v25 }
 0x253   :  { %1764 = vmatpush1.msra.mxu1 %v1548_v26  ;;  %v1458_v26 = vld [vmem:[#allocation2 + $0x1f0] sm:$0xff] }
 0x254   :  { %1765 = vmatprep.subr.mxu1 %v1545_v27  ;;  %v1455_v27 = vld [vmem:[#allocation2 + $0x1d8] sm:$0xff] }
 0x255   :  { %1766 = vmatpush1.msra.mxu1 %v1544_v28  ;;  %v1454_v28 = vld [vmem:[#allocation2 + $0x1d0] sm:$0xff] }
 0x256   :  { %1767 = vmatprep.subr.mxu1 %v1541_v29  ;;  %v1451_v29 = vld [vmem:[#allocation2 + $0x1b8] sm:$0xff] }
 0x257   :  { %1768 = vmatpush1.msra.mxu1 %v1540_v30  ;;  %v1450_v30 = vld [vmem:[#allocation2 + $0x1b0] sm:$0xff] }
 0x258   :  { %1769 = vmatprep.subr.mxu1 %v1537_v31  ;;  %v1447_v31 = vld [vmem:[#allocation2 + $0x198] sm:$0xff] }
 0x259   :  { %1770 = vmatpush1.msra.mxu1 %v1536_v33  ;;  %v1446_v33 = vld [vmem:[#allocation2 + $0x190] sm:$0xff] }
 0x25a   :  { %1771 = vmatprep.subr.mxu1 %v1533_v5  ;;  %v1443_v5 = vld [vmem:[#allocation2 + $0x178] sm:$0xff] }
 0x25b   :  { %1772 = vmatpush1.msra.mxu1 %v1532_v13  ;;  %v1442_v13 = vld [vmem:[#allocation2 + $0x170] sm:$0xff] }
 0x25c   :  { %1773 = vmatprep.subr.mxu1 %v1529_v35  ;;  %v1439_v35 = vld [vmem:[#allocation2 + $0x158] sm:$0xff] }
 0x25d   :  { %1774 = vmatpush1.msra.mxu1 %v1528_v36  ;;  %v1438_v36 = vld [vmem:[#allocation2 + $0x150] sm:$0xff] }
 0x25e   :  { %1775 = vmatprep.subr.mxu1 %v1525_v37  ;;  %v1435_v37 = vld [vmem:[#allocation2 + $0x138] sm:$0xff] }
 0x25f   :  { %1776 = vmatpush1.msra.mxu1 %v1524_v38  ;;  %v1434_v38 = vld [vmem:[#allocation2 + $0x130] sm:$0xff] }
 0x260   :  { %1777 = vmatprep.subr.mxu1 %v1649_v39  ;;  %v1431_v39 = vld [vmem:[#allocation2 + $0x118] sm:$0xff] }
 0x261   :  { %1778 = vmatpush2.msra.mxu1 %v1648_v41  ;;  %v1430_v41 = vld [vmem:[#allocation2 + $0x110] sm:$0xff] }
 0x262   :  { %1779 = vmatprep.subr.mxu1 %v1645_v43  ;;  %v1427_v43 = vld [vmem:[#allocation2 + $0xf8] sm:$0xff] }
 0x263   :  { %1780 = vmatpush2.msra.mxu1 %v1644_v44  ;;  %v1426_v44 = vld [vmem:[#allocation2 + $0xf0] sm:$0xff] }
 0x264   :  { %1781 = vmatprep.subr.mxu1 %v1641_v45  ;;  %v1423_v45 = vld [vmem:[#allocation2 + $0xd8] sm:$0xff] }
 0x265   :  { %1782 = vmatpush2.msra.mxu1 %v1640_v24  ;;  %v1422_v24 = vld [vmem:[#allocation2 + $0xd0] sm:$0xff] }
 0x266   :  { %1783 = vmatprep.subr.mxu1 %v1637_v47  ;;  %v1419_v47 = vld [vmem:[#allocation2 + $0xb8] sm:$0xff] }
 0x267   :  { %1784 = vmatpush2.msra.mxu1 %v1636_v48  ;;  %v1418_v48 = vld [vmem:[#allocation2 + $0xb0] sm:$0xff] }
 0x268   :  { %1785 = vmatprep.subr.mxu1 %v1633_v51  ;;  %v1415_v51 = vld [vmem:[#allocation2 + $0x98] sm:$0xff] }
 0x269   :  { %1786 = vmatpush2.msra.mxu1 %v1632_v52  ;;  %v1414_v52 = vld [vmem:[#allocation2 + $0x90] sm:$0xff] }
 0x26a   :  { %1787 = vmatprep.subr.mxu1 %v1629_v53  ;;  %v1411_v53 = vld [vmem:[#allocation2 + $0x78] sm:$0xff] }
 0x26b   :  { %1788 = vmatpush2.msra.mxu1 %v1628_v54  ;;  %v1410_v54 = vld [vmem:[#allocation2 + $0x70] sm:$0xff] }
 0x26c   :  { %1789 = vmatprep.subr.mxu1 %v1625_v55  ;;  %v1407_v55 = vld [vmem:[#allocation2 + $0x58] sm:$0xff] }
 0x26d   :  { %1790 = vmatpush2.msra.mxu1 %v1624_v59  ;;  %v1406_v59 = vld [vmem:[#allocation2 + $0x50] sm:$0xff] }
 0x26e   :  { %1791 = vmatprep.subr.mxu1 %v1621_v60  ;;  %v1403_v60 = vld [vmem:[#allocation2 + $0x38] sm:$0xff] }
 0x26f   :  { %1792 = vmatpush2.msra.mxu1 %v1620_v61  ;;  %v1402_v61 = vld [vmem:[#allocation2 + $0x30] sm:$0xff] }
 0x270   :  { %1793 = vmatprep.subr.mxu1 %v1617_v62  ;;  %v1399_v62 = vld [vmem:[#allocation2 + $0x18] sm:$0xff] }
 0x271   :  { %1794 = vmatpush2.msra.mxu1 %v1616_v32  ;;  %v1398_v32 = vld [vmem:[#allocation2 + $0x10] sm:$0xff] }
 0x272   :  { %1795 = vmatprep.subr.mxu1 %v1613_v34  ;;  %v1523_v34 = vld [vmem:[#allocation2 + $0x3f8] sm:$0xff] }
 0x273   :  { %1796 = vmatpush2.msra.mxu1 %v1612_v63  ;;  %v1522_v63 = vld [vmem:[#allocation2 + $0x3f0] sm:$0xff] }
 0x274   :  { %1797 = vmatprep.subr.mxu1 %v1609_v1  ;;  %v1519_v1 = vld [vmem:[#allocation2 + $0x3d8] sm:$0xff] }
 0x275   :  { %1798 = vmatpush2.msra.mxu1 %v1608_v2  ;;  %v1518_v2 = vld [vmem:[#allocation2 + $0x3d0] sm:$0xff] }
 0x276   :  { %1799 = vmatprep.subr.mxu1 %v1605_v3  ;;  %v1515_v3 = vld [vmem:[#allocation2 + $0x3b8] sm:$0xff] }
 0x277   :  { %1800 = vmatpush2.msra.mxu1 %v1604_v46  ;;  %v1514_v46 = vld [vmem:[#allocation2 + $0x3b0] sm:$0xff] }
 0x278   :  { %1801 = vmatprep.subr.mxu1 %v1601_v50  ;;  %v1511_v50 = vld [vmem:[#allocation2 + $0x398] sm:$0xff] }
 0x279   :  { %1802 = vmatpush2.msra.mxu1 %v1600_v4  ;;  %v1510_v4 = vld [vmem:[#allocation2 + $0x390] sm:$0xff] }
 0x27a   :  { %1803 = vmatprep.subr.mxu1 %v1597_v6  ;;  %v1507_v6 = vld [vmem:[#allocation2 + $0x378] sm:$0xff] }
 0x27b   :  { %1804 = vmatpush2.msra.mxu1 %v1596_v7  ;;  %v1506_v7 = vld [vmem:[#allocation2 + $0x370] sm:$0xff] }
 0x27c   :  { %1805 = vmatprep.subr.mxu1 %v1593_v8  ;;  %v1503_v8 = vld [vmem:[#allocation2 + $0x358] sm:$0xff] }
 0x27d   :  { %1806 = vmatpush2.msra.mxu1 %v1592_v49  ;;  %v1502_v49 = vld [vmem:[#allocation2 + $0x350] sm:$0xff] }
 0x27e   :  { %1807 = vmatprep.subr.mxu1 %v1589_v57  ;;  %v1499_v57 = vld [vmem:[#allocation2 + $0x338] sm:$0xff] }
 0x27f   :  { %1808 = vmatpush2.msra.mxu1 %v1588_v9  ;;  %v1174_v12 = vpop.f32.mrf.mxu0  ;;  %v1498_v9 = vld [vmem:[#allocation2 + $0x330] sm:$0xff] }
 0x280   :  { %1887 = vmatprep.subr.mxu1 %v1587_v10  ;;  %v1175_v17 = vadd.f32 %v1174_v12, %v1091_v14  ;;  %v1495_v10 = vld [vmem:[#allocation2 + $0x318] sm:$0xff]  ;;  %v1494_v12 = vld [vmem:[#allocation2 + $0x310] sm:$0xff] }
 0x281   :  { %v1176_v16 = vpop.f32.mrf.mxu0  ;;  %v1491_v14 = vld [vmem:[#allocation2 + $0x2f8] sm:$0xff] }
 0x282   :  { %v1177_v19 = vadd.f32 %v1176_v16, %v1095_v15  ;;  %v1490_v15 = vld [vmem:[#allocation2 + $0x2f0] sm:$0xff]  ;;  %v1487_v16 = vld [vmem:[#allocation2 + $0x2d8] sm:$0xff] }
 0x2c0   :  { %v1245_v18 = vpop.f32.mrf.mxu1 }
 0x2c1   :  { %v4632_v20 = vadd.f32 %v1245_v18, %v1175_v17  ;;  %v1486_v17 = vld [vmem:[#allocation2 + $0x2d0] sm:$0xff]  ;;  %v1483_v18 = vld [vmem:[#allocation2 + $0x2b8] sm:$0xff] }
 0x2c2   :  { %v1247_v21 = vpop.f32.mrf.mxu1 }
 0x2c3   :  { %v1248_v22 = vadd.f32 %v1247_v21, %v1177_v19  ;;  %v1392_v25 = vmax.f32 %v4632_v20, 0.0  ;;  %v1316_v19 = vpop.f32.mrf.mxu0  ;;  %v1482_v21 = vld [vmem:[#allocation2 + $0x2b0] sm:$0xff]  ;;  %v2019_v20 = vld [vmem:[%s5683_s9 + $0x1c8] sm:$0xff] }
 0x2c5   :  { %v1393_v23 = vmax.f32 %v1248_v22, 0.0  ;;  %v1479_v22 = vld [vmem:[#allocation2 + $0x298] sm:$0xff] }
 0x2c7   :  { %1738 = vmatprep.mubr.f32.mxu0 %v1393_v23 }
 0x2c8   :  { %1739 = vmatmul.mubr.f32.vlgmr.msra.gmra.mxu0 %v1392_v25 }
 0x2c9   :  { %1817 = vmatpush1.msra.mxu0 %v1458_v26  ;;  %1880 = vmatprep.mubr.f32.mxu0 %v1393_v23  ;;  %v1099_v23 = vrot.slane %v4626_v11, %v3450_v56  ;;  %v1478_v26 = vld [vmem:[#allocation2 + $0x290] sm:$0xff] }
 0x2ca   :  { %1818 = vmatprep.subr.mxu0 %v1455_v27  ;;  %v1103_v27 = vrot.slane %v4626_v11, %v3455_v58 }
 0x2cb   :  { %1819 = vmatpush1.msra.mxu0 %v1454_v28  ;;  %v1475_v28 = vld [vmem:[#allocation2 + $0x278] sm:$0xff] }
 0x2cc   :  { %1820 = vmatprep.subr.mxu0 %v1451_v29  ;;  %v1318_v29 = vpop.f32.mrf.mxu0 }
 0x2cd   :  { %1821 = vmatpush1.msra.mxu0 %v1450_v30  ;;  %v1474_v30 = vld [vmem:[#allocation2 + $0x270] sm:$0xff] }
 0x2ce   :  { %1822 = vmatprep.subr.mxu0 %v1447_v31  ;;  %v1471_v31 = vld [vmem:[#allocation2 + $0x258] sm:$0xff] }
 0x2cf   :  { %1823 = vmatpush1.msra.mxu0 %v1446_v33  ;;  %v1317_v33 = vadd.f32 %v1316_v19, %v1099_v23  ;;  %v1991_v19 = vld [vmem:[%s5683_s9 + $0xe8] sm:$0xff]  ;;  %v1543_v23 = vld [vmem:[#allocation2 + $0x498] sm:$0xff] }
 0x2d0   :  { %1824 = vmatprep.subr.mxu0 %v1443_v5 }
 0x2d1   :  { %1825 = vmatpush1.msra.mxu0 %v1442_v13  ;;  %v1470_v13 = vld [vmem:[#allocation2 + $0x250] sm:$0xff] }
 0x2d2   :  { %1826 = vmatprep.subr.mxu0 %v1439_v35  ;;  %v1319_v35 = vadd.f32 %v1318_v29, %v1103_v27  ;;  %v1542_v27 = vld [vmem:[#allocation2 + $0x490] sm:$0xff]  ;;  %v1539_v29 = vld [vmem:[#allocation2 + $0x478] sm:$0xff] }
 0x2d3   :  { %1827 = vmatpush1.msra.mxu0 %v1438_v36  ;;  %v1467_v36 = vld [vmem:[#allocation2 + $0x238] sm:$0xff] }
 0x2d4   :  { %1828 = vmatprep.subr.mxu0 %v1435_v37 }
 0x2d5   :  { %1829 = vmatpush1.msra.mxu0 %v1434_v38 }
 0x2d6   :  { %1830 = vmatprep.subr.mxu0 %v1431_v39  ;;  %v1466_v39 = vld [vmem:[#allocation2 + $0x230] sm:$0xff] }
 0x2d7   :  { %1831 = vmatpush1.msra.mxu0 %v1430_v41  ;;  %v1463_v41 = vld [vmem:[#allocation2 + $0x218] sm:$0xff] }
 0x2d8   :  { %1832 = vmatprep.subr.mxu0 %v1427_v43  ;;  %v1462_v43 = vld [vmem:[#allocation2 + $0x210] sm:$0xff] }
 0x2d9   :  { %1833 = vmatpush1.msra.mxu0 %v1426_v44 }
 0x2da   :  { %1834 = vmatprep.subr.mxu0 %v1423_v45 }
 0x2db   :  { %1835 = vmatpush1.msra.mxu0 %v1422_v24  ;;  %v1586_v24 = vld [vmem:[#allocation2 + $0x5f0] sm:$0xff] }
 0x2dc   :  { %1836 = vmatprep.subr.mxu0 %v1419_v47  ;;  %v1583_v47 = vld [vmem:[#allocation2 + $0x5d8] sm:$0xff] }
 0x2dd   :  { %1837 = vmatpush1.msra.mxu0 %v1418_v48  ;;  %v1582_v48 = vld [vmem:[#allocation2 + $0x5d0] sm:$0xff] }
 0x2de   :  { %1838 = vmatprep.subr.mxu0 %v1415_v51  ;;  %v1579_v51 = vld [vmem:[#allocation2 + $0x5b8] sm:$0xff] }
 0x2df   :  { %1839 = vmatpush1.msra.mxu0 %v1414_v52  ;;  %v1578_v52 = vld [vmem:[#allocation2 + $0x5b0] sm:$0xff] }
 0x2e0   :  { %1840 = vmatprep.subr.mxu0 %v1411_v53  ;;  %v1575_v53 = vld [vmem:[#allocation2 + $0x598] sm:$0xff] }
 0x2e1   :  { %1841 = vmatpush1.msra.mxu0 %v1410_v54  ;;  %v2023_v54 = vld [vmem:[%s5683_s9 + $0x1e8] sm:$0xff] }
 0x2e2   :  { %1842 = vmatprep.subr.mxu0 %v1407_v55  ;;  %v2022_v55 = vld [vmem:[%s5683_s9 + $0x1e0] sm:$0xff] }
 0x2e3   :  { %1843 = vmatpush1.msra.mxu0 %v1406_v59  ;;  %v2018_v59 = vld [vmem:[%s5683_s9 + $0x1c0] sm:$0xff] }
 0x2e4   :  { %1844 = vmatprep.subr.mxu0 %v1403_v60  ;;  %v1571_v60 = vld [vmem:[#allocation2 + $0x578] sm:$0xff] }
 0x2e5   :  { %1845 = vmatpush1.msra.mxu0 %v1402_v61  ;;  %v2015_v61 = vld [vmem:[%s5683_s9 + $0x1a8] sm:$0xff] }
 0x2e6   :  { %1846 = vmatprep.subr.mxu0 %v1399_v62  ;;  %v1570_v62 = vld [vmem:[#allocation2 + $0x570] sm:$0xff] }
 0x2e7   :  { %1847 = vmatpush1.msra.mxu0 %v1398_v32  ;;  %v2014_v32 = vld [vmem:[%s5683_s9 + $0x1a0] sm:$0xff] }
 0x2e8   :  { %1848 = vmatprep.subr.mxu0 %v1523_v34  ;;  %v1567_v34 = vld [vmem:[#allocation2 + $0x558] sm:$0xff] }
 0x2e9   :  { %1849 = vmatpush2.msra.mxu0 %v1522_v63  ;;  %v2011_v63 = vld [vmem:[%s5683_s9 + $0x188] sm:$0xff] }
 0x2ea   :  { %1850 = vmatprep.subr.mxu0 %v1519_v1  ;;  %v1566_v1 = vld [vmem:[#allocation2 + $0x550] sm:$0xff] }
 0x2eb   :  { %1851 = vmatpush2.msra.mxu0 %v1518_v2  ;;  %v2010_v2 = vld [vmem:[%s5683_s9 + $0x180] sm:$0xff] }
 0x2ec   :  { %1852 = vmatprep.subr.mxu0 %v1515_v3  ;;  %v1563_v3 = vld [vmem:[#allocation2 + $0x538] sm:$0xff] }
 0x2ed   :  { %1853 = vmatpush2.msra.mxu0 %v1514_v46  ;;  %v2007_v46 = vld [vmem:[%s5683_s9 + $0x168] sm:$0xff] }
 0x2ee   :  { %1854 = vmatprep.subr.mxu0 %v1511_v50  ;;  %v1562_v50 = vld [vmem:[#allocation2 + $0x530] sm:$0xff] }
 0x2ef   :  { %1855 = vmatpush2.msra.mxu0 %v1510_v4  ;;  %v2006_v4 = vld [vmem:[%s5683_s9 + $0x160] sm:$0xff] }
 0x2f0   :  { %1856 = vmatprep.subr.mxu0 %v1507_v6  ;;  %v1559_v6 = vld [vmem:[#allocation2 + $0x518] sm:$0xff] }
 0x2f1   :  { %1857 = vmatpush2.msra.mxu0 %v1506_v7  ;;  %v2003_v7 = vld [vmem:[%s5683_s9 + $0x148] sm:$0xff] }
 0x2f2   :  { %1858 = vmatprep.subr.mxu0 %v1503_v8  ;;  %v1558_v8 = vld [vmem:[#allocation2 + $0x510] sm:$0xff] }
 0x2f3   :  { %1859 = vmatpush2.msra.mxu0 %v1502_v49  ;;  %v2002_v49 = vld [vmem:[%s5683_s9 + $0x140] sm:$0xff] }
 0x2f4   :  { %1860 = vmatprep.subr.mxu0 %v1499_v57  ;;  %v1555_v57 = vld [vmem:[#allocation2 + $0x4f8] sm:$0xff] }
 0x2f5   :  { %1861 = vmatpush2.msra.mxu0 %v1498_v9  ;;  %v1999_v9 = vld [vmem:[%s5683_s9 + $0x128] sm:$0xff] }
 0x2f6   :  { %1862 = vmatprep.subr.mxu0 %v1495_v10  ;;  %v1554_v10 = vld [vmem:[#allocation2 + $0x4f0] sm:$0xff] }
 0x2f7   :  { %1863 = vmatpush2.msra.mxu0 %v1494_v12  ;;  %v1998_v12 = vld [vmem:[%s5683_s9 + $0x120] sm:$0xff] }
 0x2f8   :  { %1864 = vmatprep.subr.mxu0 %v1491_v14  ;;  %v1551_v14 = vld [vmem:[#allocation2 + $0x4d8] sm:$0xff] }
 0x2f9   :  { %1865 = vmatpush2.msra.mxu0 %v1490_v15  ;;  %v1995_v15 = vld [vmem:[%s5683_s9 + $0x108] sm:$0xff] }
 0x2fa   :  { %1866 = vmatprep.subr.mxu0 %v1487_v16  ;;  %v1550_v16 = vld [vmem:[#allocation2 + $0x4d0] sm:$0xff] }
 0x2fb   :  { %1867 = vmatpush2.msra.mxu0 %v1486_v17  ;;  %v1994_v17 = vld [vmem:[%s5683_s9 + $0x100] sm:$0xff] }
 0x2fc   :  { %1868 = vmatprep.subr.mxu0 %v1483_v18  ;;  %v1547_v18 = vld [vmem:[#allocation2 + $0x4b8] sm:$0xff] }
 0x2fd   :  { %1869 = vmatpush2.msra.mxu0 %v1482_v21  ;;  %v1546_v21 = vld [vmem:[#allocation2 + $0x4b0] sm:$0xff] }
 0x2fe   :  { %1870 = vmatprep.subr.mxu0 %v1479_v22  ;;  %v1990_v22 = vld [vmem:[%s5683_s9 + $0xe0] sm:$0xff] }
 0x2ff   :  { %1871 = vmatpush2.msra.mxu0 %v1478_v26  ;;  %v1987_v26 = vld [vmem:[%s5683_s9 + $0xc8] sm:$0xff] }
 0x300   :  { %v1387_v5 = vpop.f32.mrf.mxu1  ;;  %1872 = vmatprep.subr.mxu0 %v1475_v28  ;;  %v1986_v28 = vld [vmem:[%s5683_s9 + $0xc0] sm:$0xff] }
 0x301   :  { %1873 = vmatpush2.msra.mxu0 %v1474_v30  ;;  %v4641_v37 = vadd.f32 %v1387_v5, %v1317_v33  ;;  %v1983_v30 = vld [vmem:[%s5683_s9 + $0xa8] sm:$0xff]  ;;  %v1982_v33 = vld [vmem:[%s5683_s9 + $0xa0] sm:$0xff]  ;;  %v1535_v5 = vld [vmem:[#allocation2 + $0x458] sm:$0xff] }
 0x302   :  { %v1389_v38 = vpop.f32.mrf.mxu1  ;;  %1874 = vmatprep.subr.mxu0 %v1471_v31  ;;  %v1538_v31 = vld [vmem:[#allocation2 + $0x470] sm:$0xff] }
 0x303   :  { %v1390_v11 = vadd.f32 %v1389_v38, %v1319_v35  ;;  %1875 = vmatpush2.msra.mxu0 %v1470_v13  ;;  %v1394_v45 = vmax.f32 %v4641_v37, 0.0  ;;  %v1979_v13 = vld [vmem:[%s5683_s9 + $0x88] sm:$0xff]  ;;  %v1534_v35 = vld [vmem:[#allocation2 + $0x450] sm:$0xff]  ;;  %v1531_v38 = vld [vmem:[#allocation2 + $0x438] sm:$0xff] }
 0x304   :  { %1876 = vmatprep.subr.mxu0 %v1467_v36  ;;  %v1978_v36 = vld [vmem:[%s5683_s9 + $0x80] sm:$0xff]  ;;  %v2031_v37 = vld [vmem:[%s5683_s9 + $0x228] sm:$0xff] }
 0x305   :  { %v1395_v44 = vmax.f32 %v1390_v11, 0.0  ;;  %1877 = vmatpush2.msra.mxu0 %v1466_v39  ;;  %v1975_v39 = vld [vmem:[%s5683_s9 + $0x68] sm:$0xff]  ;;  %v1530_v11 = vld [vmem:[#allocation2 + $0x430] sm:$0xff] }
 0x306   :  { %1878 = vmatprep.subr.mxu0 %v1463_v41  ;;  %v1974_v41 = vld [vmem:[%s5683_s9 + $0x60] sm:$0xff] }
 0x307   :  { %1809 = vmatprep.mubr.f32.mxu1 %v1395_v44  ;;  %1879 = vmatpush2.msra.mxu0 %v1462_v43  ;;  %v1527_v43 = vld [vmem:[#allocation2 + $0x418] sm:$0xff] }
 0x308   :  { %1810 = vmatmul.mubr.f32.vlgmr.msra.gmra.mxu1 %v1394_v45  ;;  %1881 = vmatmul.mubr.f32.vlgmr.msra.gmra.mxu0 %v1392_v25  ;;  %v1574_v25 = vld [vmem:[#allocation2 + $0x590] sm:$0xff] }
 0x309   :  { %1888 = vmatpush1.msra.mxu1 %v1586_v24  ;;  %1951 = vmatprep.mubr.f32.mxu1 %v1395_v44  ;;  %v1971_v44 = vld [vmem:[%s5683_s9 + $0x48] sm:$0xff]  ;;  %v1526_v24 = vld [vmem:[#allocation2 + $0x410] sm:$0xff] }
 0x30a   :  { %1889 = vmatprep.subr.mxu1 %v1583_v47  ;;  %2240 = vmatprep.subr.mxu0 %v2023_v54  ;;  %v1970_v47 = vld [vmem:[%s5683_s9 + $0x40] sm:$0xff]  ;;  %v1647_v54 = vld [vmem:[#allocation2 + $0x7d8] sm:$0xff] }
 0x30b   :  { %1890 = vmatpush1.msra.mxu1 %v1582_v48  ;;  %2241 = vmatpush1.msra.mxu0 %v2022_v55  ;;  %v1651_v48 = vld [vmem:[#allocation2 + $0x7f8] sm:$0xff]  ;;  %v1963_v55 = vld [vmem:[%s5683_s9 + $0x8] sm:$0xff] }
 0x30c   :  { %1891 = vmatprep.subr.mxu1 %v1579_v51  ;;  %2242 = vmatprep.subr.mxu0 %v2019_v20  ;;  %v1967_v51 = vld [vmem:[%s5683_s9 + $0x28] sm:$0xff]  ;;  %v1646_v20 = vld [vmem:[#allocation2 + $0x7d0] sm:$0xff] }
 0x30d   :  { %1892 = vmatpush1.msra.mxu1 %v1578_v52  ;;  %2243 = vmatpush1.msra.mxu0 %v2018_v59  ;;  %v1650_v52 = vld [vmem:[#allocation2 + $0x7f0] sm:$0xff]  ;;  %v1643_v59 = vld [vmem:[#allocation2 + $0x7b8] sm:$0xff] }
 0x30e   :  { %1893 = vmatprep.subr.mxu1 %v1575_v53  ;;  %2244 = vmatprep.subr.mxu0 %v2015_v61  ;;  %v1966_v53 = vld [vmem:[%s5683_s9 + $0x20] sm:$0xff]  ;;  %v1642_v61 = vld [vmem:[#allocation2 + $0x7b0] sm:$0xff] }
 0x30f   :  { %1894 = vmatpush1.msra.mxu1 %v1574_v25  ;;  %2245 = vmatpush1.msra.mxu0 %v2014_v32  ;;  %v1962_v25 = vld [vmem:[%s5683_s9] sm:$0xff]  ;;  %v1639_v32 = vld [vmem:[#allocation2 + $0x798] sm:$0xff] }
 0x310   :  { %1895 = vmatprep.subr.mxu1 %v1571_v60  ;;  %2246 = vmatprep.subr.mxu0 %v2011_v63  ;;  %v2087_v60 = vld [vmem:[%s5683_s9 + $0x3e8] sm:$0xff]  ;;  %v1638_v63 = vld [vmem:[#allocation2 + $0x790] sm:$0xff] }
 0x311   :  { %1896 = vmatpush1.msra.mxu1 %v1570_v62  ;;  %2247 = vmatpush1.msra.mxu0 %v2010_v2  ;;  %v2086_v62 = vld [vmem:[%s5683_s9 + $0x3e0] sm:$0xff]  ;;  %v1635_v2 = vld [vmem:[#allocation2 + $0x778] sm:$0xff] }
 0x312   :  { %1897 = vmatprep.subr.mxu1 %v1567_v34  ;;  %2248 = vmatprep.subr.mxu0 %v2007_v46  ;;  %v2083_v34 = vld [vmem:[%s5683_s9 + $0x3c8] sm:$0xff]  ;;  %v1634_v46 = vld [vmem:[#allocation2 + $0x770] sm:$0xff] }
 0x313   :  { %1898 = vmatpush1.msra.mxu1 %v1566_v1  ;;  %2249 = vmatpush1.msra.mxu0 %v2006_v4  ;;  %v2082_v1 = vld [vmem:[%s5683_s9 + $0x3c0] sm:$0xff]  ;;  %v1631_v4 = vld [vmem:[#allocation2 + $0x758] sm:$0xff] }
 0x314   :  { %1899 = vmatprep.subr.mxu1 %v1563_v3  ;;  %2250 = vmatprep.subr.mxu0 %v2003_v7  ;;  %v2079_v3 = vld [vmem:[%s5683_s9 + $0x3a8] sm:$0xff]  ;;  %v1630_v7 = vld [vmem:[#allocation2 + $0x750] sm:$0xff] }
 0x315   :  { %1900 = vmatpush1.msra.mxu1 %v1562_v50  ;;  %2251 = vmatpush1.msra.mxu0 %v2002_v49  ;;  %v2078_v50 = vld [vmem:[%s5683_s9 + $0x3a0] sm:$0xff]  ;;  %v1627_v49 = vld [vmem:[#allocation2 + $0x738] sm:$0xff] }
 0x316   :  { %1901 = vmatprep.subr.mxu1 %v1559_v6  ;;  %2252 = vmatprep.subr.mxu0 %v1999_v9  ;;  %v2075_v6 = vld [vmem:[%s5683_s9 + $0x388] sm:$0xff]  ;;  %v1626_v9 = vld [vmem:[#allocation2 + $0x730] sm:$0xff] }
 0x317   :  { %1902 = vmatpush1.msra.mxu1 %v1558_v8  ;;  %2253 = vmatpush1.msra.mxu0 %v1998_v12  ;;  %v2074_v8 = vld [vmem:[%s5683_s9 + $0x380] sm:$0xff]  ;;  %v1623_v12 = vld [vmem:[#allocation2 + $0x718] sm:$0xff] }
 0x318   :  { %1903 = vmatprep.subr.mxu1 %v1555_v57  ;;  %2254 = vmatprep.subr.mxu0 %v1995_v15  ;;  %v2071_v57 = vld [vmem:[%s5683_s9 + $0x368] sm:$0xff]  ;;  %v1622_v15 = vld [vmem:[#allocation2 + $0x710] sm:$0xff] }
 0x319   :  { %1904 = vmatpush1.msra.mxu1 %v1554_v10  ;;  %2255 = vmatpush1.msra.mxu0 %v1994_v17  ;;  %v2070_v10 = vld [vmem:[%s5683_s9 + $0x360] sm:$0xff]  ;;  %v1619_v17 = vld [vmem:[#allocation2 + $0x6f8] sm:$0xff] }
 0x31a   :  { %1905 = vmatprep.subr.mxu1 %v1551_v14  ;;  %2256 = vmatprep.subr.mxu0 %v1991_v19  ;;  %v2067_v14 = vld [vmem:[%s5683_s9 + $0x348] sm:$0xff]  ;;  %v1618_v19 = vld [vmem:[#allocation2 + $0x6f0] sm:$0xff] }
 0x31b   :  { %1906 = vmatpush1.msra.mxu1 %v1550_v16  ;;  %2257 = vmatpush1.msra.mxu0 %v1990_v22  ;;  %v2066_v16 = vld [vmem:[%s5683_s9 + $0x340] sm:$0xff]  ;;  %v1615_v22 = vld [vmem:[#allocation2 + $0x6d8] sm:$0xff] }
 0x31c   :  { %1907 = vmatprep.subr.mxu1 %v1547_v18  ;;  %2258 = vmatprep.subr.mxu0 %v1987_v26  ;;  %v2063_v18 = vld [vmem:[%s5683_s9 + $0x328] sm:$0xff]  ;;  %v1614_v26 = vld [vmem:[#allocation2 + $0x6d0] sm:$0xff] }
 0x31d   :  { %1908 = vmatpush1.msra.mxu1 %v1546_v21  ;;  %2259 = vmatpush1.msra.mxu0 %v1986_v28  ;;  %v2062_v21 = vld [vmem:[%s5683_s9 + $0x320] sm:$0xff]  ;;  %v1611_v28 = vld [vmem:[#allocation2 + $0x6b8] sm:$0xff] }
 0x31e   :  { %1909 = vmatprep.subr.mxu1 %v1543_v23  ;;  %2260 = vmatprep.subr.mxu0 %v1983_v30  ;;  %v2059_v23 = vld [vmem:[%s5683_s9 + $0x308] sm:$0xff]  ;;  %v1610_v30 = vld [vmem:[#allocation2 + $0x6b0] sm:$0xff] }
 0x31f   :  { %1910 = vmatpush1.msra.mxu1 %v1542_v27  ;;  %2261 = vmatpush1.msra.mxu0 %v1982_v33  ;;  %v2058_v27 = vld [vmem:[%s5683_s9 + $0x300] sm:$0xff]  ;;  %v1607_v33 = vld [vmem:[#allocation2 + $0x698] sm:$0xff] }
 0x320   :  { %1911 = vmatprep.subr.mxu1 %v1539_v29  ;;  %2262 = vmatprep.subr.mxu0 %v1979_v13  ;;  %v2055_v29 = vld [vmem:[%s5683_s9 + $0x2e8] sm:$0xff]  ;;  %v1606_v13 = vld [vmem:[#allocation2 + $0x690] sm:$0xff] }
 0x321   :  { %1912 = vmatpush1.msra.mxu1 %v1538_v31  ;;  %2263 = vmatpush1.msra.mxu0 %v1978_v36  ;;  %v2054_v31 = vld [vmem:[%s5683_s9 + $0x2e0] sm:$0xff]  ;;  %v1603_v36 = vld [vmem:[#allocation2 + $0x678] sm:$0xff] }
 0x322   :  { %1913 = vmatprep.subr.mxu1 %v1535_v5  ;;  %2264 = vmatprep.subr.mxu0 %v1975_v39  ;;  %v2051_v5 = vld [vmem:[%s5683_s9 + $0x2c8] sm:$0xff]  ;;  %v1602_v39 = vld [vmem:[#allocation2 + $0x670] sm:$0xff] }
 0x323   :  { %1914 = vmatpush1.msra.mxu1 %v1534_v35  ;;  %2265 = vmatpush1.msra.mxu0 %v1974_v41  ;;  %v2050_v35 = vld [vmem:[%s5683_s9 + $0x2c0] sm:$0xff]  ;;  %v1599_v41 = vld [vmem:[#allocation2 + $0x658] sm:$0xff] }
 0x324   :  { %1915 = vmatprep.subr.mxu1 %v1531_v38  ;;  %2266 = vmatprep.subr.mxu0 %v1971_v44  ;;  %v2047_v38 = vld [vmem:[%s5683_s9 + $0x2a8] sm:$0xff]  ;;  %v1598_v44 = vld [vmem:[#allocation2 + $0x650] sm:$0xff] }
 0x325   :  { %1916 = vmatpush1.msra.mxu1 %v1530_v11  ;;  %2267 = vmatpush1.msra.mxu0 %v1970_v47  ;;  %v2046_v11 = vld [vmem:[%s5683_s9 + $0x2a0] sm:$0xff]  ;;  %v1595_v47 = vld [vmem:[#allocation2 + $0x638] sm:$0xff] }
 0x326   :  { %1917 = vmatprep.subr.mxu1 %v1527_v43  ;;  %2268 = vmatprep.subr.mxu0 %v1967_v51  ;;  %v2043_v43 = vld [vmem:[%s5683_s9 + $0x288] sm:$0xff]  ;;  %v1594_v51 = vld [vmem:[#allocation2 + $0x630] sm:$0xff] }
 0x327   :  { %1918 = vmatpush1.msra.mxu1 %v1526_v24  ;;  %2269 = vmatpush1.msra.mxu0 %v1966_v53  ;;  %v2042_v24 = vld [vmem:[%s5683_s9 + $0x280] sm:$0xff]  ;;  %v1590_v53 = vld [vmem:[#allocation2 + $0x610] sm:$0xff] }
 0x328   :  { %1919 = vmatprep.subr.mxu1 %v1651_v48  ;;  %2270 = vmatprep.subr.mxu0 %v1963_v55  ;;  %v2039_v48 = vld [vmem:[%s5683_s9 + $0x268] sm:$0xff] }
 0x329   :  { %1920 = vmatpush2.msra.mxu1 %v1650_v52  ;;  %2271 = vmatpush1.msra.mxu0 %v1962_v25  ;;  %v1591_v52 = vld [vmem:[#allocation2 + $0x618] sm:$0xff]  ;;  %v2035_v55 = vld [vmem:[%s5683_s9 + $0x248] sm:$0xff] }
 0x32a   :  { %1921 = vmatprep.subr.mxu1 %v1647_v54  ;;  %2272 = vmatprep.subr.mxu0 %v2087_v60  ;;  %v2038_v54 = vld [vmem:[%s5683_s9 + $0x260] sm:$0xff]  ;;  %v2027_v25 = vld [vmem:[%s5683_s9 + $0x208] sm:$0xff] }
 0x32b   :  { %1922 = vmatpush2.msra.mxu1 %v1646_v20  ;;  %2273 = vmatpush2.msra.mxu0 %v2086_v62  ;;  %v2034_v20 = vld [vmem:[%s5683_s9 + $0x240] sm:$0xff]  ;;  %v2151_v60 = vld [vmem:[%s5683_s9 + $0x5e8] sm:$0xff]  ;;  %v2025_v62 = vld [vmem:[%s5683_s9 + $0x1f8] sm:$0xff] }
 0x32c   :  { %1923 = vmatprep.subr.mxu1 %v1643_v59  ;;  %2274 = vmatprep.subr.mxu0 %v2083_v34  ;;  %v2026_v59 = vld [vmem:[%s5683_s9 + $0x200] sm:$0xff] }
 0x32d   :  { %1924 = vmatpush2.msra.mxu1 %v1642_v61  ;;  %2275 = vmatpush2.msra.mxu0 %v2082_v1  ;;  %v2150_v61 = vld [vmem:[%s5683_s9 + $0x5e0] sm:$0xff] }
 0x32e   :  { %1925 = vmatprep.subr.mxu1 %v1639_v32  ;;  %2276 = vmatprep.subr.mxu0 %v2079_v3  ;;  %v2147_v32 = vld [vmem:[%s5683_s9 + $0x5c8] sm:$0xff]  ;;  %v2146_v34 = vld [vmem:[%s5683_s9 + $0x5c0] sm:$0xff] }
 0x32f   :  { %1926 = vmatpush2.msra.mxu1 %v1638_v63  ;;  %2277 = vmatpush2.msra.mxu0 %v2078_v50  ;;  %v2143_v63 = vld [vmem:[%s5683_s9 + $0x5a8] sm:$0xff]  ;;  %v2142_v1 = vld [vmem:[%s5683_s9 + $0x5a0] sm:$0xff] }
 0x330   :  { %1927 = vmatprep.subr.mxu1 %v1635_v2  ;;  %2278 = vmatprep.subr.mxu0 %v2075_v6  ;;  %v2139_v2 = vld [vmem:[%s5683_s9 + $0x588] sm:$0xff]  ;;  %v2138_v3 = vld [vmem:[%s5683_s9 + $0x580] sm:$0xff] }
 0x331   :  { %1928 = vmatpush2.msra.mxu1 %v1634_v46  ;;  %2279 = vmatpush2.msra.mxu0 %v2074_v8  ;;  %v2135_v46 = vld [vmem:[%s5683_s9 + $0x568] sm:$0xff]  ;;  %v2134_v50 = vld [vmem:[%s5683_s9 + $0x560] sm:$0xff] }
 0x332   :  { %1929 = vmatprep.subr.mxu1 %v1631_v4  ;;  %2280 = vmatprep.subr.mxu0 %v2071_v57  ;;  %v2131_v4 = vld [vmem:[%s5683_s9 + $0x548] sm:$0xff]  ;;  %v2130_v6 = vld [vmem:[%s5683_s9 + $0x540] sm:$0xff] }
 0x333   :  { %1930 = vmatpush2.msra.mxu1 %v1630_v7  ;;  %2281 = vmatpush2.msra.mxu0 %v2070_v10  ;;  %v2127_v7 = vld [vmem:[%s5683_s9 + $0x528] sm:$0xff]  ;;  %v2126_v8 = vld [vmem:[%s5683_s9 + $0x520] sm:$0xff] }
 0x334   :  { %1931 = vmatprep.subr.mxu1 %v1627_v49  ;;  %2282 = vmatprep.subr.mxu0 %v2067_v14  ;;  %v2123_v49 = vld [vmem:[%s5683_s9 + $0x508] sm:$0xff]  ;;  %v2122_v57 = vld [vmem:[%s5683_s9 + $0x500] sm:$0xff] }
 0x335   :  { %1932 = vmatpush2.msra.mxu1 %v1626_v9  ;;  %2283 = vmatpush2.msra.mxu0 %v2066_v16  ;;  %v2119_v9 = vld [vmem:[%s5683_s9 + $0x4e8] sm:$0xff]  ;;  %v2118_v10 = vld [vmem:[%s5683_s9 + $0x4e0] sm:$0xff] }
 0x336   :  { %1933 = vmatprep.subr.mxu1 %v1623_v12  ;;  %2284 = vmatprep.subr.mxu0 %v2063_v18  ;;  %v2115_v12 = vld [vmem:[%s5683_s9 + $0x4c8] sm:$0xff]  ;;  %v2114_v14 = vld [vmem:[%s5683_s9 + $0x4c0] sm:$0xff] }
 0x337   :  { %1934 = vmatpush2.msra.mxu1 %v1622_v15  ;;  %2285 = vmatpush2.msra.mxu0 %v2062_v21  ;;  %v2111_v15 = vld [vmem:[%s5683_s9 + $0x4a8] sm:$0xff]  ;;  %v2110_v16 = vld [vmem:[%s5683_s9 + $0x4a0] sm:$0xff] }
 0x338   :  { %1935 = vmatprep.subr.mxu1 %v1619_v17  ;;  %2286 = vmatprep.subr.mxu0 %v2059_v23  ;;  %v2107_v17 = vld [vmem:[%s5683_s9 + $0x488] sm:$0xff]  ;;  %v2106_v18 = vld [vmem:[%s5683_s9 + $0x480] sm:$0xff] }
 0x339   :  { %1936 = vmatpush2.msra.mxu1 %v1618_v19  ;;  %2287 = vmatpush2.msra.mxu0 %v2058_v27  ;;  %v2103_v19 = vld [vmem:[%s5683_s9 + $0x468] sm:$0xff]  ;;  %v2102_v21 = vld [vmem:[%s5683_s9 + $0x460] sm:$0xff] }
 0x33a   :  { %1937 = vmatprep.subr.mxu1 %v1615_v22  ;;  %2288 = vmatprep.subr.mxu0 %v2055_v29  ;;  %v2099_v22 = vld [vmem:[%s5683_s9 + $0x448] sm:$0xff]  ;;  %v2098_v23 = vld [vmem:[%s5683_s9 + $0x440] sm:$0xff] }
 0x33b   :  { %1938 = vmatpush2.msra.mxu1 %v1614_v26  ;;  %2289 = vmatpush2.msra.mxu0 %v2054_v31  ;;  %v2095_v26 = vld [vmem:[%s5683_s9 + $0x428] sm:$0xff]  ;;  %v2094_v27 = vld [vmem:[%s5683_s9 + $0x420] sm:$0xff] }
 0x33c   :  { %1939 = vmatprep.subr.mxu1 %v1611_v28  ;;  %2290 = vmatprep.subr.mxu0 %v2051_v5  ;;  %v2091_v28 = vld [vmem:[%s5683_s9 + $0x408] sm:$0xff]  ;;  %v2090_v29 = vld [vmem:[%s5683_s9 + $0x400] sm:$0xff] }
 0x33d   :  { %1940 = vmatpush2.msra.mxu1 %v1610_v30  ;;  %2291 = vmatpush2.msra.mxu0 %v2050_v35  ;;  %v2215_v30 = vld [vmem:[%s5683_s9 + $0x7e8] sm:$0xff]  ;;  %v2214_v31 = vld [vmem:[%s5683_s9 + $0x7e0] sm:$0xff] }
 0x33e   :  { %1941 = vmatprep.subr.mxu1 %v1607_v33  ;;  %2292 = vmatprep.subr.mxu0 %v2047_v38  ;;  %v2211_v33 = vld [vmem:[%s5683_s9 + $0x7c8] sm:$0xff]  ;;  %v2210_v5 = vld [vmem:[%s5683_s9 + $0x7c0] sm:$0xff] }
 0x33f   :  { %1942 = vmatpush2.msra.mxu1 %v1606_v13  ;;  %2293 = vmatpush2.msra.mxu0 %v2046_v11  ;;  %v2207_v13 = vld [vmem:[%s5683_s9 + $0x7a8] sm:$0xff]  ;;  %v2206_v35 = vld [vmem:[%s5683_s9 + $0x7a0] sm:$0xff] }
 0x340   :  { %1943 = vmatprep.subr.mxu1 %v1603_v36  ;;  %2294 = vmatprep.subr.mxu0 %v2043_v43  ;;  %v2203_v36 = vld [vmem:[%s5683_s9 + $0x788] sm:$0xff]  ;;  %v2202_v38 = vld [vmem:[%s5683_s9 + $0x780] sm:$0xff] }
 0x341   :  { %1944 = vmatpush2.msra.mxu1 %v1602_v39  ;;  %2295 = vmatpush2.msra.mxu0 %v2042_v24  ;;  %v2199_v39 = vld [vmem:[%s5683_s9 + $0x768] sm:$0xff]  ;;  %v2198_v11 = vld [vmem:[%s5683_s9 + $0x760] sm:$0xff] }
 0x342   :  { %1945 = vmatprep.subr.mxu1 %v1599_v41  ;;  %2296 = vmatprep.subr.mxu0 %v2039_v48  ;;  %v2195_v41 = vld [vmem:[%s5683_s9 + $0x748] sm:$0xff]  ;;  %v2194_v43 = vld [vmem:[%s5683_s9 + $0x740] sm:$0xff] }
 0x343   :  { %1946 = vmatpush2.msra.mxu1 %v1598_v44  ;;  %2297 = vmatpush2.msra.mxu0 %v2038_v54  ;;  %v2191_v44 = vld [vmem:[%s5683_s9 + $0x728] sm:$0xff]  ;;  %v2190_v24 = vld [vmem:[%s5683_s9 + $0x720] sm:$0xff] }
 0x344   :  { %1947 = vmatprep.subr.mxu1 %v1595_v47  ;;  %2298 = vmatprep.subr.mxu0 %v2035_v55  ;;  %v2187_v47 = vld [vmem:[%s5683_s9 + $0x708] sm:$0xff]  ;;  %v2186_v48 = vld [vmem:[%s5683_s9 + $0x700] sm:$0xff] }
 0x345   :  { %1948 = vmatpush2.msra.mxu1 %v1594_v51  ;;  %2299 = vmatpush2.msra.mxu0 %v2034_v20  ;;  %v2183_v51 = vld [vmem:[%s5683_s9 + $0x6e8] sm:$0xff]  ;;  %v2178_v54 = vld [vmem:[%s5683_s9 + $0x6c0] sm:$0xff] }
 0x346   :  { %1949 = vmatprep.subr.mxu1 %v1591_v52  ;;  %2300 = vmatprep.subr.mxu0 %v2031_v37  ;;  %v2182_v52 = vld [vmem:[%s5683_s9 + $0x6e0] sm:$0xff]  ;;  %v2175_v55 = vld [vmem:[%s5683_s9 + $0x6a8] sm:$0xff] }
 0x347   :  { %1950 = vmatpush2.msra.mxu1 %v1590_v53  ;;  %v2179_v53 = vld [vmem:[%s5683_s9 + $0x6c8] sm:$0xff]  ;;  %v2174_v20 = vld [vmem:[%s5683_s9 + $0x6a0] sm:$0xff] }
 0x348   :  { %1952 = vmatmul.mubr.f32.vlgmr.msra.gmra.mxu1 %v1394_v45  ;;  %v2030_v45 = vld [vmem:[%s5683_s9 + $0x220] sm:$0xff]  ;;  %2311 = vmatprep.subr.mxu1 %v2151_v60  ;;  %v2171_v37 = vld [vmem:[%s5683_s9 + $0x688] sm:$0xff] }
 0x349   :  { %2301 = vmatpush2.msra.mxu0 %v2030_v45  ;;  %2312 = vmatpush1.msra.mxu1 %v2150_v61  ;;  %v2170_v45 = vld [vmem:[%s5683_s9 + $0x680] sm:$0xff]  ;;  %v2163_v60 = vld [vmem:[%s5683_s9 + $0x648] sm:$0xff] }
 0x34a   :  { %2302 = vmatprep.subr.mxu0 %v2027_v25  ;;  %2313 = vmatprep.subr.mxu1 %v2147_v32  ;;  %v2167_v25 = vld [vmem:[%s5683_s9 + $0x668] sm:$0xff]  ;;  %v2162_v61 = vld [vmem:[%s5683_s9 + $0x640] sm:$0xff] }
 0x34b   :  { %2303 = vmatpush2.msra.mxu0 %v2026_v59  ;;  %2314 = vmatpush1.msra.mxu1 %v2146_v34  ;;  %v2166_v59 = vld [vmem:[%s5683_s9 + $0x660] sm:$0xff]  ;;  %v2155_v34 = vld [vmem:[%s5683_s9 + $0x608] sm:$0xff] }
 0x34c   :  { %2382 = vmatprep.subr.mxu0 %v2025_v62  ;;  %2315 = vmatprep.subr.mxu1 %v2143_v63  ;;  %v2159_v62 = vld [vmem:[%s5683_s9 + $0x628] sm:$0xff]  ;;  %v2158_v32 = vld [vmem:[%s5683_s9 + $0x620] sm:$0xff] }
 0x34d   :  { %2316 = vmatpush1.msra.mxu1 %v2142_v1  ;;  %v2154_v63 = vld [vmem:[%s5683_s9 + $0x600] sm:$0xff]  ;;  %v2153_v1 = vld [vmem:[%s5683_s9 + $0x5f8] sm:$0xff] }
 0x34e   :  { %2317 = vmatprep.subr.mxu1 %v2139_v2  ;;  %v5043_v2 = vld [vmem:[%s5682_s8] sm:$0xf] }
 0x34f   :  { %2318 = vmatpush1.msra.mxu1 %v2138_v3 }
 0x350   :  { %2319 = vmatprep.subr.mxu1 %v2135_v46  ;;  %v1657_v46 = vrot.slane %v5043_v2, %v3421_v40 }
 0x351   :  { %2320 = vmatpush1.msra.mxu1 %v2134_v50  ;;  %v1661_v50 = vrot.slane %v5043_v2, %v3426_v42 }
 0x352   :  { %2321 = vmatprep.subr.mxu1 %v2131_v4 }
 0x353   :  { %2322 = vmatpush1.msra.mxu1 %v2130_v6 }
 0x354   :  { %2323 = vmatprep.subr.mxu1 %v2127_v7 }
 0x355   :  { %2324 = vmatpush1.msra.mxu1 %v2126_v8 }
 0x356   :  { %2325 = vmatprep.subr.mxu1 %v2123_v49 }
 0x357   :  { %2326 = vmatpush1.msra.mxu1 %v2122_v57 }
 0x358   :  { %2327 = vmatprep.subr.mxu1 %v2119_v9 }
 0x359   :  { %2328 = vmatpush1.msra.mxu1 %v2118_v10 }
 0x35a   :  { %2329 = vmatprep.subr.mxu1 %v2115_v12 }
 0x35b   :  { %2330 = vmatpush1.msra.mxu1 %v2114_v14  ;;  %v2024_v14 = vld [vmem:[%s5683_s9 + $0x1f0] sm:$0xff] }
 0x35c   :  { %2331 = vmatprep.subr.mxu1 %v2111_v15  ;;  %v2021_v15 = vld [vmem:[%s5683_s9 + $0x1d8] sm:$0xff] }
 0x35d   :  { %2332 = vmatpush1.msra.mxu1 %v2110_v16  ;;  %v2020_v16 = vld [vmem:[%s5683_s9 + $0x1d0] sm:$0xff] }
 0x35e   :  { %2333 = vmatprep.subr.mxu1 %v2107_v17  ;;  %v2017_v17 = vld [vmem:[%s5683_s9 + $0x1b8] sm:$0xff] }
 0x35f   :  { %2334 = vmatpush1.msra.mxu1 %v2106_v18  ;;  %v2016_v18 = vld [vmem:[%s5683_s9 + $0x1b0] sm:$0xff] }
 0x360   :  { %2335 = vmatprep.subr.mxu1 %v2103_v19  ;;  %v2013_v19 = vld [vmem:[%s5683_s9 + $0x198] sm:$0xff] }
 0x361   :  { %2336 = vmatpush1.msra.mxu1 %v2102_v21  ;;  %v2012_v21 = vld [vmem:[%s5683_s9 + $0x190] sm:$0xff] }
 0x362   :  { %2337 = vmatprep.subr.mxu1 %v2099_v22  ;;  %v2009_v22 = vld [vmem:[%s5683_s9 + $0x178] sm:$0xff] }
 0x363   :  { %2338 = vmatpush1.msra.mxu1 %v2098_v23  ;;  %v2008_v23 = vld [vmem:[%s5683_s9 + $0x170] sm:$0xff] }
 0x364   :  { %2339 = vmatprep.subr.mxu1 %v2095_v26  ;;  %v2005_v26 = vld [vmem:[%s5683_s9 + $0x158] sm:$0xff] }
 0x365   :  { %2340 = vmatpush1.msra.mxu1 %v2094_v27  ;;  %v2004_v27 = vld [vmem:[%s5683_s9 + $0x150] sm:$0xff] }
 0x366   :  { %2341 = vmatprep.subr.mxu1 %v2091_v28  ;;  %v2001_v28 = vld [vmem:[%s5683_s9 + $0x138] sm:$0xff] }
 0x367   :  { %2342 = vmatpush1.msra.mxu1 %v2090_v29  ;;  %v2000_v29 = vld [vmem:[%s5683_s9 + $0x130] sm:$0xff] }
 0x368   :  { %2343 = vmatprep.subr.mxu1 %v2215_v30  ;;  %v1997_v30 = vld [vmem:[%s5683_s9 + $0x118] sm:$0xff] }
 0x369   :  { %2344 = vmatpush2.msra.mxu1 %v2214_v31  ;;  %v1996_v31 = vld [vmem:[%s5683_s9 + $0x110] sm:$0xff] }
 0x36a   :  { %2345 = vmatprep.subr.mxu1 %v2211_v33  ;;  %v1993_v33 = vld [vmem:[%s5683_s9 + $0xf8] sm:$0xff] }
 0x36b   :  { %2346 = vmatpush2.msra.mxu1 %v2210_v5  ;;  %v1992_v5 = vld [vmem:[%s5683_s9 + $0xf0] sm:$0xff] }
 0x36c   :  { %2347 = vmatprep.subr.mxu1 %v2207_v13  ;;  %v1989_v13 = vld [vmem:[%s5683_s9 + $0xd8] sm:$0xff] }
 0x36d   :  { %2348 = vmatpush2.msra.mxu1 %v2206_v35  ;;  %v1988_v35 = vld [vmem:[%s5683_s9 + $0xd0] sm:$0xff] }
 0x36e   :  { %2349 = vmatprep.subr.mxu1 %v2203_v36  ;;  %v1985_v36 = vld [vmem:[%s5683_s9 + $0xb8] sm:$0xff] }
 0x36f   :  { %2350 = vmatpush2.msra.mxu1 %v2202_v38  ;;  %v1984_v38 = vld [vmem:[%s5683_s9 + $0xb0] sm:$0xff] }
 0x370   :  { %2351 = vmatprep.subr.mxu1 %v2199_v39  ;;  %v1981_v39 = vld [vmem:[%s5683_s9 + $0x98] sm:$0xff] }
 0x371   :  { %2352 = vmatpush2.msra.mxu1 %v2198_v11  ;;  %v1980_v11 = vld [vmem:[%s5683_s9 + $0x90] sm:$0xff] }
 0x372   :  { %2353 = vmatprep.subr.mxu1 %v2195_v41  ;;  %v1977_v41 = vld [vmem:[%s5683_s9 + $0x78] sm:$0xff] }
 0x373   :  { %2354 = vmatpush2.msra.mxu1 %v2194_v43  ;;  %v1976_v43 = vld [vmem:[%s5683_s9 + $0x70] sm:$0xff] }
 0x374   :  { %2355 = vmatprep.subr.mxu1 %v2191_v44  ;;  %v1973_v44 = vld [vmem:[%s5683_s9 + $0x58] sm:$0xff] }
 0x375   :  { %2356 = vmatpush2.msra.mxu1 %v2190_v24  ;;  %v1972_v24 = vld [vmem:[%s5683_s9 + $0x50] sm:$0xff] }
 0x376   :  { %2357 = vmatprep.subr.mxu1 %v2187_v47  ;;  %v1969_v47 = vld [vmem:[%s5683_s9 + $0x38] sm:$0xff] }
 0x377   :  { %2358 = vmatpush2.msra.mxu1 %v2186_v48  ;;  %v1968_v48 = vld [vmem:[%s5683_s9 + $0x30] sm:$0xff] }
 0x378   :  { %2359 = vmatprep.subr.mxu1 %v2183_v51  ;;  %v1965_v51 = vld [vmem:[%s5683_s9 + $0x18] sm:$0xff] }
 0x379   :  { %2360 = vmatpush2.msra.mxu1 %v2182_v52  ;;  %v1964_v52 = vld [vmem:[%s5683_s9 + $0x10] sm:$0xff] }
 0x37a   :  { %2361 = vmatprep.subr.mxu1 %v2179_v53  ;;  %v2089_v53 = vld [vmem:[%s5683_s9 + $0x3f8] sm:$0xff] }
 0x37b   :  { %2362 = vmatpush2.msra.mxu1 %v2178_v54  ;;  %v2088_v54 = vld [vmem:[%s5683_s9 + $0x3f0] sm:$0xff] }
 0x37c   :  { %2363 = vmatprep.subr.mxu1 %v2175_v55  ;;  %v2085_v55 = vld [vmem:[%s5683_s9 + $0x3d8] sm:$0xff] }
 0x37d   :  { %2364 = vmatpush2.msra.mxu1 %v2174_v20  ;;  %v2084_v20 = vld [vmem:[%s5683_s9 + $0x3d0] sm:$0xff] }
 0x37e   :  { %2365 = vmatprep.subr.mxu1 %v2171_v37  ;;  %v2081_v37 = vld [vmem:[%s5683_s9 + $0x3b8] sm:$0xff] }
 0x37f   :  { %2366 = vmatpush2.msra.mxu1 %v2170_v45  ;;  %v2080_v45 = vld [vmem:[%s5683_s9 + $0x3b0] sm:$0xff] }
 0x380   :  { %2367 = vmatprep.subr.mxu1 %v2167_v25  ;;  %v2077_v25 = vld [vmem:[%s5683_s9 + $0x398] sm:$0xff] }
 0x381   :  { %2368 = vmatpush2.msra.mxu1 %v2166_v59  ;;  %v2076_v59 = vld [vmem:[%s5683_s9 + $0x390] sm:$0xff] }
 0x382   :  { %2369 = vmatprep.subr.mxu1 %v2163_v60  ;;  %v2073_v60 = vld [vmem:[%s5683_s9 + $0x378] sm:$0xff] }
 0x383   :  { %2370 = vmatpush2.msra.mxu1 %v2162_v61  ;;  %v2072_v61 = vld [vmem:[%s5683_s9 + $0x370] sm:$0xff] }
 0x384   :  { %2371 = vmatprep.subr.mxu1 %v2159_v62  ;;  %v2069_v62 = vld [vmem:[%s5683_s9 + $0x358] sm:$0xff] }
 0x385   :  { %2372 = vmatpush2.msra.mxu1 %v2158_v32  ;;  %v2068_v32 = vld [vmem:[%s5683_s9 + $0x350] sm:$0xff] }
 0x386   :  { %2373 = vmatprep.subr.mxu1 %v2155_v34  ;;  %v2065_v34 = vld [vmem:[%s5683_s9 + $0x338] sm:$0xff] }
 0x387   :  { %2374 = vmatpush2.msra.mxu1 %v2154_v63  ;;  %v2064_v63 = vld [vmem:[%s5683_s9 + $0x330] sm:$0xff] }
 0x388   :  { %2453 = vmatprep.subr.mxu1 %v2153_v1  ;;  %v1740_v3 = vpop.f32.mrf.mxu0  ;;  %v2061_v1 = vld [vmem:[%s5683_s9 + $0x318] sm:$0xff] }
 0x389   :  { %v1741_v6 = vadd.f32 %v1740_v3, %v1657_v46  ;;  %v2060_v3 = vld [vmem:[%s5683_s9 + $0x310] sm:$0xff]  ;;  %v2057_v46 = vld [vmem:[%s5683_s9 + $0x2f8] sm:$0xff] }
 0x38a   :  { %v1742_v4 = vpop.f32.mrf.mxu0 }
 0x38b   :  { %v1743_v8 = vadd.f32 %v1742_v4, %v1661_v50  ;;  %v2056_v50 = vld [vmem:[%s5683_s9 + $0x2f0] sm:$0xff]  ;;  %v2053_v4 = vld [vmem:[%s5683_s9 + $0x2d8] sm:$0xff] }
 0x3c8   :  { %v1811_v7 = vpop.f32.mrf.mxu1 }
 0x3c9   :  { %v5049_v49 = vadd.f32 %v1811_v7, %v1741_v6  ;;  %v2052_v6 = vld [vmem:[%s5683_s9 + $0x2d0] sm:$0xff]  ;;  %v2049_v7 = vld [vmem:[%s5683_s9 + $0x2b8] sm:$0xff] }
 0x3ca   :  { %v1813_v57 = vpop.f32.mrf.mxu1 }
 0x3cb   :  { %v1814_v9 = vadd.f32 %v1813_v57, %v1743_v8  ;;  %v1958_v12 = vmax.f32 %v5049_v49, 0.0  ;;  %v1882_v8 = vpop.f32.mrf.mxu0  ;;  %v2048_v57 = vld [vmem:[%s5683_s9 + $0x2b0] sm:$0xff]  ;;  %v2141_v49 = vld [vmem:[%s5683_s9 + $0x598] sm:$0xff] }
 0x3cd   :  { %v1959_v10 = vmax.f32 %v1814_v9, 0.0  ;;  %v2045_v9 = vld [vmem:[%s5683_s9 + $0x298] sm:$0xff] }
 0x3cf   :  { %2304 = vmatprep.mubr.f32.mxu0 %v1959_v10 }
 0x3d0   :  { %2305 = vmatmul.mubr.f32.vlgmr.msra.gmra.mxu0 %v1958_v12 }
 0x3d1   :  { %2383 = vmatpush1.msra.mxu0 %v2024_v14  ;;  %2446 = vmatprep.mubr.f32.mxu0 %v1959_v10  ;;  %v1665_v10 = vrot.slane %v5043_v2, %v3450_v56  ;;  %v2044_v14 = vld [vmem:[%s5683_s9 + $0x290] sm:$0xff] }
 0x3d2   :  { %2384 = vmatprep.subr.mxu0 %v2021_v15  ;;  %v1669_v15 = vrot.slane %v5043_v2, %v3455_v58  ;;  %v2036_v2 = vld [vmem:[%s5683_s9 + $0x250] sm:$0xff] }
 0x3d3   :  { %2385 = vmatpush1.msra.mxu0 %v2020_v16  ;;  %v2041_v16 = vld [vmem:[%s5683_s9 + $0x278] sm:$0xff] }
 0x3d4   :  { %2386 = vmatprep.subr.mxu0 %v2017_v17  ;;  %v1884_v17 = vpop.f32.mrf.mxu0 }
 0x3d5   :  { %2387 = vmatpush1.msra.mxu0 %v2016_v18  ;;  %v2040_v18 = vld [vmem:[%s5683_s9 + $0x270] sm:$0xff] }
 0x3d6   :  { %2388 = vmatprep.subr.mxu0 %v2013_v19  ;;  %v2037_v19 = vld [vmem:[%s5683_s9 + $0x258] sm:$0xff] }
 0x3d7   :  { %2389 = vmatpush1.msra.mxu0 %v2012_v21  ;;  %v1883_v21 = vadd.f32 %v1882_v8, %v1665_v10  ;;  %v2551_v8 = vld [vmem:[%s5685_s11 + $0xb8] sm:$0xff] }
 0x3d8   :  { %2390 = vmatprep.subr.mxu0 %v2009_v22  ;;  %v2109_v10 = vld [vmem:[%s5683_s9 + $0x498] sm:$0xff] }
 0x3d9   :  { %2391 = vmatpush1.msra.mxu0 %v2008_v23  ;;  %v1885_v23 = vadd.f32 %v1884_v17, %v1669_v15  ;;  %v2108_v15 = vld [vmem:[%s5683_s9 + $0x490] sm:$0xff]  ;;  %v2105_v17 = vld [vmem:[%s5683_s9 + $0x478] sm:$0xff] }
 0x3da   :  { %2392 = vmatprep.subr.mxu0 %v2005_v26  ;;  %v2033_v26 = vld [vmem:[%s5683_s9 + $0x238] sm:$0xff] }
 0x3db   :  { %2393 = vmatpush1.msra.mxu0 %v2004_v27 }
 0x3dc   :  { %2394 = vmatprep.subr.mxu0 %v2001_v28 }
 0x3dd   :  { %2395 = vmatpush1.msra.mxu0 %v2000_v29  ;;  %v2032_v29 = vld [vmem:[%s5683_s9 + $0x230] sm:$0xff] }
 0x3de   :  { %2396 = vmatprep.subr.mxu0 %v1997_v30 }
 0x3df   :  { %2397 = vmatpush1.msra.mxu0 %v1996_v31  ;;  %v2029_v31 = vld [vmem:[%s5683_s9 + $0x218] sm:$0xff] }
 0x3e0   :  { %2398 = vmatprep.subr.mxu0 %v1993_v33  ;;  %v2028_v33 = vld [vmem:[%s5683_s9 + $0x210] sm:$0xff] }
 0x3e1   :  { %2399 = vmatpush1.msra.mxu0 %v1992_v5 }
 0x3e2   :  { %2400 = vmatprep.subr.mxu0 %v1989_v13 }
 0x3e3   :  { %2401 = vmatpush1.msra.mxu0 %v1988_v35  ;;  %v2152_v35 = vld [vmem:[%s5683_s9 + $0x5f0] sm:$0xff] }
 0x3e4   :  { %2402 = vmatprep.subr.mxu0 %v1985_v36  ;;  %v2149_v36 = vld [vmem:[%s5683_s9 + $0x5d8] sm:$0xff] }
 0x3e5   :  { %2403 = vmatpush1.msra.mxu0 %v1984_v38  ;;  %v2148_v38 = vld [vmem:[%s5683_s9 + $0x5d0] sm:$0xff] }
 0x3e6   :  { %2404 = vmatprep.subr.mxu0 %v1981_v39  ;;  %v2145_v39 = vld [vmem:[%s5683_s9 + $0x5b8] sm:$0xff] }
 0x3e7   :  { %2405 = vmatpush1.msra.mxu0 %v1980_v11  ;;  %v2144_v11 = vld [vmem:[%s5683_s9 + $0x5b0] sm:$0xff] }
 0x3e8   :  { %2406 = vmatprep.subr.mxu0 %v1977_v41  ;;  %v2543_v41 = vld [vmem:[%s5685_s11 + $0x78] sm:$0xff] }
 0x3e9   :  { %2407 = vmatpush1.msra.mxu0 %v1976_v43  ;;  %v2558_v43 = vld [vmem:[%s5685_s11 + $0xf0] sm:$0xff] }
 0x3ea   :  { %2408 = vmatprep.subr.mxu0 %v1973_v44  ;;  %v2140_v44 = vld [vmem:[%s5683_s9 + $0x590] sm:$0xff] }
 0x3eb   :  { %2409 = vmatpush1.msra.mxu0 %v1972_v24  ;;  %v2542_v24 = vld [vmem:[%s5685_s11 + $0x70] sm:$0xff] }
 0x3ec   :  { %2410 = vmatprep.subr.mxu0 %v1969_v47  ;;  %v2137_v47 = vld [vmem:[%s5683_s9 + $0x578] sm:$0xff] }
 0x3ed   :  { %2411 = vmatpush1.msra.mxu0 %v1968_v48  ;;  %v2557_v48 = vld [vmem:[%s5685_s11 + $0xe8] sm:$0xff] }
 0x3ee   :  { %2412 = vmatprep.subr.mxu0 %v1965_v51  ;;  %v2136_v51 = vld [vmem:[%s5683_s9 + $0x570] sm:$0xff] }
 0x3ef   :  { %2413 = vmatpush1.msra.mxu0 %v1964_v52  ;;  %v2541_v52 = vld [vmem:[%s5685_s11 + $0x68] sm:$0xff] }
 0x3f0   :  { %2414 = vmatprep.subr.mxu0 %v2089_v53  ;;  %v2133_v53 = vld [vmem:[%s5683_s9 + $0x558] sm:$0xff] }
 0x3f1   :  { %2415 = vmatpush2.msra.mxu0 %v2088_v54  ;;  %v2556_v54 = vld [vmem:[%s5685_s11 + $0xe0] sm:$0xff] }
 0x3f2   :  { %2416 = vmatprep.subr.mxu0 %v2085_v55  ;;  %v2132_v55 = vld [vmem:[%s5683_s9 + $0x550] sm:$0xff] }
 0x3f3   :  { %2417 = vmatpush2.msra.mxu0 %v2084_v20  ;;  %v2540_v20 = vld [vmem:[%s5685_s11 + $0x60] sm:$0xff] }
 0x3f4   :  { %2418 = vmatprep.subr.mxu0 %v2081_v37  ;;  %v2129_v37 = vld [vmem:[%s5683_s9 + $0x538] sm:$0xff] }
 0x3f5   :  { %2419 = vmatpush2.msra.mxu0 %v2080_v45  ;;  %v2555_v45 = vld [vmem:[%s5685_s11 + $0xd8] sm:$0xff] }
 0x3f6   :  { %2420 = vmatprep.subr.mxu0 %v2077_v25  ;;  %v2128_v25 = vld [vmem:[%s5683_s9 + $0x530] sm:$0xff] }
 0x3f7   :  { %2421 = vmatpush2.msra.mxu0 %v2076_v59  ;;  %v2539_v59 = vld [vmem:[%s5685_s11 + $0x58] sm:$0xff] }
 0x3f8   :  { %2422 = vmatprep.subr.mxu0 %v2073_v60  ;;  %v2125_v60 = vld [vmem:[%s5683_s9 + $0x518] sm:$0xff] }
 0x3f9   :  { %2423 = vmatpush2.msra.mxu0 %v2072_v61  ;;  %v2554_v61 = vld [vmem:[%s5685_s11 + $0xd0] sm:$0xff] }
 0x3fa   :  { %2424 = vmatprep.subr.mxu0 %v2069_v62  ;;  %v2124_v62 = vld [vmem:[%s5683_s9 + $0x510] sm:$0xff] }
 0x3fb   :  { %2425 = vmatpush2.msra.mxu0 %v2068_v32  ;;  %v2538_v32 = vld [vmem:[%s5685_s11 + $0x50] sm:$0xff] }
 0x3fc   :  { %2426 = vmatprep.subr.mxu0 %v2065_v34  ;;  %v2121_v34 = vld [vmem:[%s5683_s9 + $0x4f8] sm:$0xff] }
 0x3fd   :  { %2427 = vmatpush2.msra.mxu0 %v2064_v63  ;;  %v2553_v63 = vld [vmem:[%s5685_s11 + $0xc8] sm:$0xff] }
 0x3fe   :  { %2428 = vmatprep.subr.mxu0 %v2061_v1  ;;  %v2120_v1 = vld [vmem:[%s5683_s9 + $0x4f0] sm:$0xff] }
 0x3ff   :  { %2429 = vmatpush2.msra.mxu0 %v2060_v3  ;;  %v2537_v3 = vld [vmem:[%s5685_s11 + $0x48] sm:$0xff] }
 0x400   :  { %2430 = vmatprep.subr.mxu0 %v2057_v46  ;;  %v2117_v46 = vld [vmem:[%s5683_s9 + $0x4d8] sm:$0xff] }
 0x401   :  { %2431 = vmatpush2.msra.mxu0 %v2056_v50  ;;  %v2552_v50 = vld [vmem:[%s5685_s11 + $0xc0] sm:$0xff] }
 0x402   :  { %2432 = vmatprep.subr.mxu0 %v2053_v4  ;;  %v2116_v4 = vld [vmem:[%s5683_s9 + $0x4d0] sm:$0xff] }
 0x403   :  { %2433 = vmatpush2.msra.mxu0 %v2052_v6  ;;  %v2536_v6 = vld [vmem:[%s5685_s11 + $0x40] sm:$0xff] }
 0x404   :  { %2434 = vmatprep.subr.mxu0 %v2049_v7  ;;  %v2113_v7 = vld [vmem:[%s5683_s9 + $0x4b8] sm:$0xff] }
 0x405   :  { %2435 = vmatpush2.msra.mxu0 %v2048_v57  ;;  %v2112_v57 = vld [vmem:[%s5683_s9 + $0x4b0] sm:$0xff] }
 0x406   :  { %2436 = vmatprep.subr.mxu0 %v2045_v9  ;;  %v2535_v9 = vld [vmem:[%s5685_s11 + $0x38] sm:$0xff] }
 0x407   :  { %2437 = vmatpush2.msra.mxu0 %v2044_v14  ;;  %v2550_v14 = vld [vmem:[%s5685_s11 + $0xb0] sm:$0xff] }
 0x408   :  { %v1953_v22 = vpop.f32.mrf.mxu1  ;;  %2438 = vmatprep.subr.mxu0 %v2041_v16  ;;  %v2534_v16 = vld [vmem:[%s5685_s11 + $0x30] sm:$0xff] }
 0x409   :  { %2439 = vmatpush2.msra.mxu0 %v2040_v18  ;;  %v5238_v27 = vadd.f32 %v1953_v22, %v1883_v21  ;;  %v2549_v18 = vld [vmem:[%s5685_s11 + $0xa8] sm:$0xff]  ;;  %v2101_v22 = vld [vmem:[%s5683_s9 + $0x458] sm:$0xff] }
 0x40a   :  { %v1955_v28 = vpop.f32.mrf.mxu1  ;;  %2440 = vmatprep.subr.mxu0 %v2037_v19  ;;  %v2104_v19 = vld [vmem:[%s5683_s9 + $0x470] sm:$0xff]  ;;  %v2533_v21 = vld [vmem:[%s5685_s11 + $0x28] sm:$0xff] }
 0x40b   :  { %v1956_v30 = vadd.f32 %v1955_v28, %v1885_v23  ;;  %2441 = vmatpush2.msra.mxu0 %v2036_v2  ;;  %v1960_v13 = vmax.f32 %v5238_v27, 0.0  ;;  %v2548_v2 = vld [vmem:[%s5685_s11 + $0xa0] sm:$0xff]  ;;  %v2100_v23 = vld [vmem:[%s5683_s9 + $0x450] sm:$0xff]  ;;  %v2097_v28 = vld [vmem:[%s5683_s9 + $0x438] sm:$0xff] }
 0x40c   :  { %2442 = vmatprep.subr.mxu0 %v2033_v26  ;;  %v2532_v26 = vld [vmem:[%s5685_s11 + $0x20] sm:$0xff]  ;;  %v2530_v27 = vld [vmem:[%s5685_s11 + $0x10] sm:$0xff] }
 0x40d   :  { %v1961_v5 = vmax.f32 %v1956_v30, 0.0  ;;  %2443 = vmatpush2.msra.mxu0 %v2032_v29  ;;  %v2096_v29 = vld [vmem:[%s5683_s9 + $0x430] sm:$0xff]  ;;  %v2093_v30 = vld [vmem:[%s5683_s9 + $0x418] sm:$0xff] }
 0x40e   :  { %2444 = vmatprep.subr.mxu0 %v2029_v31  ;;  %v2092_v31 = vld [vmem:[%s5683_s9 + $0x410] sm:$0xff] }
 0x40f   :  { %2375 = vmatprep.mubr.f32.mxu1 %v1961_v5  ;;  %2445 = vmatpush2.msra.mxu0 %v2028_v33  ;;  %v2217_v33 = vld [vmem:[%s5683_s9 + $0x7f8] sm:$0xff] }
 0x410   :  { %2376 = vmatmul.mubr.f32.vlgmr.msra.gmra.mxu1 %v1960_v13  ;;  %2447 = vmatmul.mubr.f32.vlgmr.msra.gmra.mxu0 %v1958_v12  ;;  %v2559_v12 = vld [vmem:[%s5685_s11 + $0xf8] sm:$0xff] }
 0x411   :  { %2454 = vmatpush1.msra.mxu1 %v2152_v35  ;;  %2517 = vmatprep.mubr.f32.mxu1 %v1961_v5  ;;  %v2216_v5 = vld [vmem:[%s5683_s9 + $0x7f0] sm:$0xff]  ;;  %v2213_v35 = vld [vmem:[%s5683_s9 + $0x7d8] sm:$0xff] }
 0x412   :  { %2455 = vmatprep.subr.mxu1 %v2149_v36  ;;  %2762 = vmatprep.subr.mxu0 %v2559_v12  ;;  %v2212_v36 = vld [vmem:[%s5683_s9 + $0x7d0] sm:$0xff]  ;;  %v2201_v12 = vld [vmem:[%s5683_s9 + $0x778] sm:$0xff] }
 0x413   :  { %2456 = vmatpush1.msra.mxu1 %v2148_v38  ;;  %2763 = vmatpush3.msra.mxu0 %v2543_v41  ;;  %v2209_v38 = vld [vmem:[%s5683_s9 + $0x7b8] sm:$0xff]  ;;  %v2200_v41 = vld [vmem:[%s5683_s9 + $0x770] sm:$0xff] }
 0x414   :  { %2457 = vmatprep.subr.mxu1 %v2145_v39  ;;  %2764 = vmatprep.subr.mxu0 %v2558_v43  ;;  %v2208_v39 = vld [vmem:[%s5683_s9 + $0x7b0] sm:$0xff]  ;;  %v2197_v43 = vld [vmem:[%s5683_s9 + $0x758] sm:$0xff] }
 0x415   :  { %2458 = vmatpush1.msra.mxu1 %v2144_v11  ;;  %2765 = vmatpush3.msra.mxu0 %v2542_v24  ;;  %v2205_v11 = vld [vmem:[%s5683_s9 + $0x798] sm:$0xff] }
 0x416   :  { %2459 = vmatprep.subr.mxu1 %v2141_v49  ;;  %2766 = vmatprep.subr.mxu0 %v2557_v48  ;;  %v2204_v49 = vld [vmem:[%s5683_s9 + $0x790] sm:$0xff]  ;;  %v2193_v24 = vld [vmem:[%s5683_s9 + $0x738] sm:$0xff] }
 0x417   :  { %2460 = vmatpush1.msra.mxu1 %v2140_v44  ;;  %2767 = vmatpush3.msra.mxu0 %v2541_v52  ;;  %v2196_v44 = vld [vmem:[%s5683_s9 + $0x750] sm:$0xff]  ;;  %v2189_v48 = vld [vmem:[%s5683_s9 + $0x718] sm:$0xff] }
 0x418   :  { %2461 = vmatprep.subr.mxu1 %v2137_v47  ;;  %2768 = vmatprep.subr.mxu0 %v2556_v54  ;;  %v2192_v47 = vld [vmem:[%s5683_s9 + $0x730] sm:$0xff]  ;;  %v2185_v52 = vld [vmem:[%s5683_s9 + $0x6f8] sm:$0xff] }
 0x419   :  { %2462 = vmatpush1.msra.mxu1 %v2136_v51  ;;  %2769 = vmatpush3.msra.mxu0 %v2540_v20  ;;  %v2188_v51 = vld [vmem:[%s5683_s9 + $0x710] sm:$0xff]  ;;  %v2181_v54 = vld [vmem:[%s5683_s9 + $0x6d8] sm:$0xff] }
 0x41a   :  { %2463 = vmatprep.subr.mxu1 %v2133_v53  ;;  %2770 = vmatprep.subr.mxu0 %v2555_v45  ;;  %v2184_v53 = vld [vmem:[%s5683_s9 + $0x6f0] sm:$0xff]  ;;  %v2177_v20 = vld [vmem:[%s5683_s9 + $0x6b8] sm:$0xff] }
 0x41b   :  { %2464 = vmatpush1.msra.mxu1 %v2132_v55  ;;  %2771 = vmatpush3.msra.mxu0 %v2539_v59  ;;  %v2180_v55 = vld [vmem:[%s5683_s9 + $0x6d0] sm:$0xff]  ;;  %v2173_v45 = vld [vmem:[%s5683_s9 + $0x698] sm:$0xff] }
 0x41c   :  { %2465 = vmatprep.subr.mxu1 %v2129_v37  ;;  %2772 = vmatprep.subr.mxu0 %v2554_v61  ;;  %v2176_v37 = vld [vmem:[%s5683_s9 + $0x6b0] sm:$0xff]  ;;  %v2169_v59 = vld [vmem:[%s5683_s9 + $0x678] sm:$0xff] }
 0x41d   :  { %2466 = vmatpush1.msra.mxu1 %v2128_v25  ;;  %2773 = vmatpush3.msra.mxu0 %v2538_v32  ;;  %v2172_v25 = vld [vmem:[%s5683_s9 + $0x690] sm:$0xff]  ;;  %v2165_v61 = vld [vmem:[%s5683_s9 + $0x658] sm:$0xff] }
 0x41e   :  { %2467 = vmatprep.subr.mxu1 %v2125_v60  ;;  %2774 = vmatprep.subr.mxu0 %v2553_v63  ;;  %v2168_v60 = vld [vmem:[%s5683_s9 + $0x670] sm:$0xff]  ;;  %v2161_v32 = vld [vmem:[%s5683_s9 + $0x638] sm:$0xff] }
 0x41f   :  { %2468 = vmatpush1.msra.mxu1 %v2124_v62  ;;  %2775 = vmatpush3.msra.mxu0 %v2537_v3  ;;  %v2164_v62 = vld [vmem:[%s5683_s9 + $0x650] sm:$0xff]  ;;  %v2157_v63 = vld [vmem:[%s5683_s9 + $0x618] sm:$0xff] }
 0x420   :  { %2469 = vmatprep.subr.mxu1 %v2121_v34  ;;  %2776 = vmatprep.subr.mxu0 %v2552_v50  ;;  %v2160_v34 = vld [vmem:[%s5683_s9 + $0x630] sm:$0xff]  ;;  %v2547_v3 = vld [vmem:[%s5685_s11 + $0x98] sm:$0xff] }
 0x421   :  { %2470 = vmatpush1.msra.mxu1 %v2120_v1  ;;  %2777 = vmatpush3.msra.mxu0 %v2536_v6  ;;  %v2156_v1 = vld [vmem:[%s5683_s9 + $0x610] sm:$0xff]  ;;  %v2544_v6 = vld [vmem:[%s5685_s11 + $0x80] sm:$0xff] }
 0x422   :  { %2471 = vmatprep.subr.mxu1 %v2117_v46  ;;  %2778 = vmatprep.subr.mxu0 %v2551_v8  ;;  %v2531_v46 = vld [vmem:[%s5685_s11 + $0x18] sm:$0xff]  ;;  %v2546_v50 = vld [vmem:[%s5685_s11 + $0x90] sm:$0xff] }
 0x423   :  { %2472 = vmatpush1.msra.mxu1 %v2116_v4  ;;  %2779 = vmatpush3.msra.mxu0 %v2535_v9  ;;  %v2529_v4 = vld [vmem:[%s5685_s11 + $0x8] sm:$0xff]  ;;  %v2575_v8 = vld [vmem:[%s5685_s11 + $0x178] sm:$0xff] }
 0x424   :  { %2473 = vmatprep.subr.mxu1 %v2113_v7  ;;  %2780 = vmatprep.subr.mxu0 %v2550_v14  ;;  %v2528_v7 = vld [vmem:[%s5685_s11] sm:$0xff]  ;;  %v2573_v9 = vld [vmem:[%s5685_s11 + $0x168] sm:$0xff]  ;;  %v2571_v14 = vld [vmem:[%s5685_s11 + $0x158] sm:$0xff] }
 0x425   :  { %2474 = vmatpush1.msra.mxu1 %v2112_v57  ;;  %2781 = vmatpush3.msra.mxu0 %v2534_v16  ;;  %v2574_v57 = vld [vmem:[%s5685_s11 + $0x170] sm:$0xff]  ;;  %v2569_v16 = vld [vmem:[%s5685_s11 + $0x148] sm:$0xff] }
 0x426   :  { %2475 = vmatprep.subr.mxu1 %v2109_v10  ;;  %2782 = vmatprep.subr.mxu0 %v2549_v18  ;;  %v2572_v10 = vld [vmem:[%s5685_s11 + $0x160] sm:$0xff]  ;;  %v2567_v18 = vld [vmem:[%s5685_s11 + $0x138] sm:$0xff] }
 0x427   :  { %2476 = vmatpush1.msra.mxu1 %v2108_v15  ;;  %2783 = vmatpush3.msra.mxu0 %v2533_v21  ;;  %v2570_v15 = vld [vmem:[%s5685_s11 + $0x150] sm:$0xff]  ;;  %v2565_v21 = vld [vmem:[%s5685_s11 + $0x128] sm:$0xff] }
 0x428   :  { %2477 = vmatprep.subr.mxu1 %v2105_v17  ;;  %2784 = vmatprep.subr.mxu0 %v2548_v2  ;;  %v2568_v17 = vld [vmem:[%s5685_s11 + $0x140] sm:$0xff]  ;;  %v2563_v2 = vld [vmem:[%s5685_s11 + $0x118] sm:$0xff] }
 0x429   :  { %2478 = vmatpush1.msra.mxu1 %v2104_v19  ;;  %2785 = vmatpush3.msra.mxu0 %v2532_v26  ;;  %v2566_v19 = vld [vmem:[%s5685_s11 + $0x130] sm:$0xff]  ;;  %v2561_v26 = vld [vmem:[%s5685_s11 + $0x108] sm:$0xff] }
 0x42a   :  { %2479 = vmatprep.subr.mxu1 %v2101_v22  ;;  %2786 = vmatprep.subr.mxu0 %v2547_v3  ;;  %v2564_v22 = vld [vmem:[%s5685_s11 + $0x120] sm:$0xff] }
 0x42b   :  { %2480 = vmatpush1.msra.mxu1 %v2100_v23  ;;  %2787 = vmatpush3.msra.mxu0 %v2531_v46  ;;  %v2562_v23 = vld [vmem:[%s5685_s11 + $0x110] sm:$0xff] }
 0x42c   :  { %2481 = vmatprep.subr.mxu1 %v2097_v28  ;;  %2788 = vmatprep.subr.mxu0 %v2546_v50  ;;  %v2560_v28 = vld [vmem:[%s5685_s11 + $0x100] sm:$0xff] }
 0x42d   :  { %2482 = vmatpush1.msra.mxu1 %v2096_v29  ;;  %2789 = vmatpush3.msra.mxu0 %v2530_v27  ;;  %v2589_v29 = vld [vmem:[%s5685_s11 + $0x1e8] sm:$0xff] }
 0x42e   :  { %2483 = vmatprep.subr.mxu1 %v2093_v30  ;;  %v2588_v30 = vld [vmem:[%s5685_s11 + $0x1e0] sm:$0xff] }
 0x42f   :  { %2484 = vmatpush1.msra.mxu1 %v2092_v31  ;;  %v2587_v31 = vld [vmem:[%s5685_s11 + $0x1d8] sm:$0xff] }
 0x430   :  { %2485 = vmatprep.subr.mxu1 %v2217_v33  ;;  %v2586_v33 = vld [vmem:[%s5685_s11 + $0x1d0] sm:$0xff] }
 0x431   :  { %2486 = vmatpush2.msra.mxu1 %v2216_v5  ;;  %v2585_v5 = vld [vmem:[%s5685_s11 + $0x1c8] sm:$0xff] }
 0x432   :  { %2487 = vmatprep.subr.mxu1 %v2213_v35  ;;  %v2584_v35 = vld [vmem:[%s5685_s11 + $0x1c0] sm:$0xff] }
 0x433   :  { %2488 = vmatpush2.msra.mxu1 %v2212_v36  ;;  %v2583_v36 = vld [vmem:[%s5685_s11 + $0x1b8] sm:$0xff] }
 0x434   :  { %2489 = vmatprep.subr.mxu1 %v2209_v38  ;;  %v2582_v38 = vld [vmem:[%s5685_s11 + $0x1b0] sm:$0xff] }
 0x435   :  { %2490 = vmatpush2.msra.mxu1 %v2208_v39  ;;  %v2581_v39 = vld [vmem:[%s5685_s11 + $0x1a8] sm:$0xff] }
 0x436   :  { %2491 = vmatprep.subr.mxu1 %v2205_v11  ;;  %v2580_v11 = vld [vmem:[%s5685_s11 + $0x1a0] sm:$0xff] }
 0x437   :  { %2492 = vmatpush2.msra.mxu1 %v2204_v49  ;;  %v2579_v49 = vld [vmem:[%s5685_s11 + $0x198] sm:$0xff] }
 0x438   :  { %2493 = vmatprep.subr.mxu1 %v2201_v12  ;;  %v2578_v12 = vld [vmem:[%s5685_s11 + $0x190] sm:$0xff] }
 0x439   :  { %2494 = vmatpush2.msra.mxu1 %v2200_v41  ;;  %v2577_v41 = vld [vmem:[%s5685_s11 + $0x188] sm:$0xff] }
 0x43a   :  { %2495 = vmatprep.subr.mxu1 %v2197_v43  ;;  %v2576_v43 = vld [vmem:[%s5685_s11 + $0x180] sm:$0xff] }
 0x43b   :  { %2496 = vmatpush2.msra.mxu1 %v2196_v44  ;;  %v2218_v44 = vld [vmem:[%s5684_s10] sm:$0xf] }
 0x43c   :  { %2497 = vmatprep.subr.mxu1 %v2193_v24 }
 0x43d   :  { %2498 = vmatpush2.msra.mxu1 %v2192_v47  ;;  %v2223_v47 = vrot.slane %v2218_v44, %v3421_v40 }
 0x43e   :  { %2499 = vmatprep.subr.mxu1 %v2189_v48  ;;  %v2227_v48 = vrot.slane %v2218_v44, %v3426_v42 }
 0x43f   :  { %2500 = vmatpush2.msra.mxu1 %v2188_v51 }
 0x440   :  { %2501 = vmatprep.subr.mxu1 %v2185_v52 }
 0x441   :  { %2502 = vmatpush2.msra.mxu1 %v2184_v53 }
 0x442   :  { %2503 = vmatprep.subr.mxu1 %v2181_v54 }
 0x443   :  { %2504 = vmatpush2.msra.mxu1 %v2180_v55 }
 0x444   :  { %2505 = vmatprep.subr.mxu1 %v2177_v20 }
 0x445   :  { %2506 = vmatpush2.msra.mxu1 %v2176_v37 }
 0x446   :  { %2507 = vmatprep.subr.mxu1 %v2173_v45 }
 0x447   :  { %2508 = vmatpush2.msra.mxu1 %v2172_v25 }
 0x448   :  { %2509 = vmatprep.subr.mxu1 %v2169_v59  ;;  %v2231_v59 = vrot.slane %v2218_v44, %v3450_v56  ;;  %v2760_v56 = vld [vmem:[%s5686_s12] ss:$0 sm:$0xff] }
 0x449   :  { %2510 = vmatpush2.msra.mxu1 %v2168_v60  ;;  %v2235_v60 = vrot.slane %v2218_v44, %v3455_v58 }
 0x44a   :  { %2511 = vmatprep.subr.mxu1 %v2165_v61 }
 0x44b   :  { %2512 = vmatpush2.msra.mxu1 %v2164_v62 }
 0x44c   :  { %2513 = vmatprep.subr.mxu1 %v2161_v32 }
 0x44d   :  { %2514 = vmatpush2.msra.mxu1 %v2160_v34 }
 0x44e   :  { %2515 = vmatprep.subr.mxu1 %v2157_v63 }
 0x44f   :  { %2516 = vmatpush2.msra.mxu1 %v2156_v1 }
 0x450   :  { %2518 = vmatmul.mubr.f32.vlgmr.msra.gmra.mxu1 %v1960_v13  ;;  %2671 = vmatprep.subr.mxu1 %v2849_v0  ;;  %v2545_v13 = vld [vmem:[%s5685_s11 + $0x88] sm:$0xff] }
 0x451   :  { %2790 = vmatprep.subr.mxu0 %v2545_v13  ;;  %2672 = vmatpush1.msra.mxu1 %v2575_v8 }
 0x452   :  { %2791 = vmatpush3.msra.mxu0 %v2529_v4  ;;  %2673 = vmatprep.subr.mxu1 %v2849_v0 }
 0x453   :  { %2792 = vmatprep.subr.mxu0 %v2544_v6  ;;  %2674 = vmatpush1.msra.mxu1 %v2574_v57 }
 0x454   :  { %2793 = vmatpush3.msra.mxu0 %v2528_v7  ;;  %2675 = vmatprep.subr.mxu1 %v2849_v0 }
 0x455   :  { %2676 = vmatpush1.msra.mxu1 %v2573_v9 }
 0x456   :  { %2677 = vmatprep.subr.mxu1 %v2849_v0 }
 0x457   :  { %2678 = vmatpush1.msra.mxu1 %v2572_v10 }
 0x458   :  { %2679 = vmatprep.subr.mxu1 %v2849_v0 }
 0x459   :  { %2680 = vmatpush1.msra.mxu1 %v2571_v14 }
 0x45a   :  { %2681 = vmatprep.subr.mxu1 %v2849_v0 }
 0x45b   :  { %2682 = vmatpush1.msra.mxu1 %v2570_v15 }
 0x45c   :  { %2683 = vmatprep.subr.mxu1 %v2849_v0 }
 0x45d   :  { %2684 = vmatpush1.msra.mxu1 %v2569_v16 }
 0x45e   :  { %2685 = vmatprep.subr.mxu1 %v2849_v0 }
 0x45f   :  { %2686 = vmatpush1.msra.mxu1 %v2568_v17 }
 0x460   :  { %2687 = vmatprep.subr.mxu1 %v2849_v0 }
 0x461   :  { %2688 = vmatpush1.msra.mxu1 %v2567_v18 }
 0x462   :  { %2689 = vmatprep.subr.mxu1 %v2849_v0 }
 0x463   :  { %2690 = vmatpush1.msra.mxu1 %v2566_v19 }
 0x464   :  { %2691 = vmatprep.subr.mxu1 %v2849_v0 }
 0x465   :  { %2692 = vmatpush1.msra.mxu1 %v2565_v21 }
 0x466   :  { %2693 = vmatprep.subr.mxu1 %v2849_v0 }
 0x467   :  { %2694 = vmatpush1.msra.mxu1 %v2564_v22 }
 0x468   :  { %2695 = vmatprep.subr.mxu1 %v2849_v0 }
 0x469   :  { %2696 = vmatpush1.msra.mxu1 %v2563_v2 }
 0x46a   :  { %2697 = vmatprep.subr.mxu1 %v2849_v0 }
 0x46b   :  { %2698 = vmatpush1.msra.mxu1 %v2562_v23 }
 0x46c   :  { %2699 = vmatprep.subr.mxu1 %v2849_v0 }
 0x46d   :  { %2700 = vmatpush1.msra.mxu1 %v2561_v26 }
 0x46e   :  { %2701 = vmatprep.subr.mxu1 %v2849_v0 }
 0x46f   :  { %2702 = vmatpush1.msra.mxu1 %v2560_v28 }
 0x470   :  { %2707 = vmatprep.subr.mxu1 %v2849_v0 }
 0x471   :  { %2708 = vmatpush2.msra.mxu1 %v2589_v29 }
 0x472   :  { %2709 = vmatprep.subr.mxu1 %v2849_v0 }
 0x473   :  { %2710 = vmatpush2.msra.mxu1 %v2588_v30 }
 0x474   :  { %2711 = vmatprep.subr.mxu1 %v2849_v0 }
 0x475   :  { %2712 = vmatpush2.msra.mxu1 %v2587_v31 }
 0x476   :  { %2713 = vmatprep.subr.mxu1 %v2849_v0 }
 0x477   :  { %2714 = vmatpush2.msra.mxu1 %v2586_v33 }
 0x478   :  { %2715 = vmatprep.subr.mxu1 %v2849_v0 }
 0x479   :  { %2716 = vmatpush2.msra.mxu1 %v2585_v5 }
 0x47a   :  { %2717 = vmatprep.subr.mxu1 %v2849_v0 }
 0x47b   :  { %2718 = vmatpush2.msra.mxu1 %v2584_v35 }
 0x47c   :  { %2719 = vmatprep.subr.mxu1 %v2849_v0 }
 0x47d   :  { %2720 = vmatpush2.msra.mxu1 %v2583_v36 }
 0x47e   :  { %2721 = vmatprep.subr.mxu1 %v2849_v0 }
 0x47f   :  { %2722 = vmatpush2.msra.mxu1 %v2582_v38 }
 0x480   :  { %2723 = vmatprep.subr.mxu1 %v2849_v0 }
 0x481   :  { %2724 = vmatpush2.msra.mxu1 %v2581_v39 }
 0x482   :  { %2725 = vmatprep.subr.mxu1 %v2849_v0 }
 0x483   :  { %2726 = vmatpush2.msra.mxu1 %v2580_v11 }
 0x484   :  { %2727 = vmatprep.subr.mxu1 %v2849_v0 }
 0x485   :  { %2728 = vmatpush2.msra.mxu1 %v2579_v49 }
 0x486   :  { %2729 = vmatprep.subr.mxu1 %v2849_v0 }
 0x487   :  { %2730 = vmatpush2.msra.mxu1 %v2578_v12 }
 0x488   :  { %2731 = vmatprep.subr.mxu1 %v2849_v0 }
 0x489   :  { %2732 = vmatpush2.msra.mxu1 %v2577_v41 }
 0x48a   :  { %2733 = vmatprep.subr.mxu1 %v2849_v0 }
 0x48b   :  { %2734 = vmatpush2.msra.mxu1 %v2576_v43 }
 0x490   :  { %v2306_v24 = vpop.f32.mrf.mxu0 }
 0x491   :  { %v2307_v52 = vadd.f32 %v2306_v24, %v2223_v47 }
 0x492   :  { %v2308_v51 = vpop.f32.mrf.mxu0 }
 0x493   :  { %v2309_v54 = vadd.f32 %v2308_v51, %v2227_v48 }
 0x4d0   :  { %v2377_v53 = vpop.f32.mrf.mxu1  ;;  %v2448_v0 = vpop.f32.mrf.mxu0 }
 0x4d1   :  { %v2378_v55 = vadd.f32 %v2377_v53, %v2307_v52  ;;  %v2449_v40 = vadd.f32 %v2448_v0, %v2231_v59 }
 0x4d2   :  { %v2379_v20 = vpop.f32.mrf.mxu1  ;;  %v2450_v61 = vpop.f32.mrf.mxu0 }
 0x4d3   :  { %v2380_v37 = vadd.f32 %v2379_v20, %v2309_v54  ;;  %v2524_v25 = vmax.f32 %v2378_v55, 0.0  ;;  %v2451_v42 = vadd.f32 %v2450_v61, %v2235_v60 }
 0x4d5   :  { %v2525_v45 = vmax.f32 %v2380_v37, 0.0 }
 0x4d7   :  { %2665 = vmatprep.mubr.f32.mxu0 %v2525_v45 }
 0x4d8   :  { %2666 = vmatmul.mubr.f32.vlgmr.msra.gmra.mxu0 %v2524_v25 }
 0x510   :  { %v2519_v62 = vpop.f32.mrf.mxu1 }
 0x511   :  { %v2520_v32 = vadd.f32 %v2519_v62, %v2449_v40 }
 0x512   :  { %v2521_v34 = vpop.f32.mrf.mxu1 }
 0x513   :  { %v2522_v63 = vadd.f32 %v2521_v34, %v2451_v42  ;;  %v2526_v3 = vmax.f32 %v2520_v32, 0.0 }
 0x515   :  { %v2527_v1 = vmax.f32 %v2522_v63, 0.0 }
 0x517   :  { %2761 = vmatprep.mubr.msk.f32.mxu1 %vm2597_vm1, %v2527_v1 }
 0x518   :  { %2736 = vmatmul.mubr.f32.vlgmr.msra.gmra.mxu1 %v2526_v3 }
 0x598   :  { %v2794_v46 = vpop.f32.mrf.mxu0 }
 0x59a   :  { %v2795_v50 = vpop.f32.mrf.mxu0 }
 0x59b   :  { %v2796_v27 = vadd.f32 %v2795_v50, %v2794_v46 }
 0x59d   :  { %v2668_v58 = vadd.f32 %v2796_v27, %v2760_v56 }
 0x5d8   :  { %v2737_v13 = vpop.f32.mrf.mxu1 }
 0x5d9   :  { %v2738_v4 = vadd.f32 %v2737_v13, %v2668_v58 }
 0x5da   :  { %v2739_v6 = vpop.f32.mrf.mxu1 }
 0x5db   :  { %2742 = vst.msk [vmem:[#allocation5] sm:$0x3] %vm2741_vm2, %v2738_v4 }
 0x5dc   :  { %2833 = shalt.err (!%p2830_p9)
}
 0x5dd   :  { %2752 = dma.vmem_to_hbm [thread:$0]  %s2750_s5, 32, %s5687_s13, [#allocation4]  }
 0x5de   :  { %2844 = dma.done.wait [#allocation4], 32  }
 0x5df   :  { %2845 = vsyncadd [#allocation4], 4294967264 }
 0x5e0   :  { %2756 = vsyncpa [#allocation3], 1 }
 0x5e1   :  { %2757 = vsyncpa [#allocation4], 1 }

</bundles_post_ra>
